<compile_context>
chip_gen: v6e
topology: v6e:2x2x1
jax: 0.10.0
libtpu: 0.0.40
codegen_flags: <defaults>
</compile_context>

<pallas_src>
import functools

import jax
import jax.numpy as jnp
from jax import lax
from jax.experimental import pallas as pl
from jax.experimental.pallas import tpu as pltpu

EPS = 1e-12


def _layernorm_kernel(x_ref, g_ref, b_ref, o_ref, *, eps):
    # x_ref: (tile_rows, H) block in VMEM; g_ref/b_ref: (1, H).
    x = x_ref[...]
    if x.dtype != jnp.float32:
        x = x.astype(jnp.float32)

    h = x.shape[-1]
    inv_h = jnp.float32(1.0 / h)

    # One-pass statistics: the two reductions are independent (no mean -> var
    # dependency chain), halving the serialized XLU passes per tile.
    s1 = jnp.sum(x, axis=-1, keepdims=True)
    s2 = jnp.sum(x * x, axis=-1, keepdims=True)
    mean = s1 * inv_h
    var = jnp.maximum(s2 * inv_h - mean * mean, 0.0)
    inv = lax.rsqrt(var + eps)                       # (tile_rows, 1)

    g = g_ref[...]
    b = b_ref[...]
    if g.dtype != jnp.float32:
        g = g.astype(jnp.float32)
    if b.dtype != jnp.float32:
        b = b.astype(jnp.float32)

    # Fold gamma into the per-row inverse stddev: y = (x - mean) * (inv*g) + b
    scale = inv * g                                  # (tile_rows, H)
    o_ref[...] = ((x - mean) * scale + b).astype(o_ref.dtype)


def _choose_tile_rows(rows: int) -> int:
    """Cover all rows with at most ~2 large blocks (sublane-aligned)."""
    # 1024 x 768 f32 = 3 MiB per (double-buffered) block: far under any VMEM
    # budget, so cap there for very long sequences.
    max_tile = 1024
    if rows <= 8:
        return 8
    target = -(-rows // 2)              # aim for a grid of 2 (feeds 2 TCs on v7x)
    tile = ((target + 7) // 8) * 8      # keep sublane dim a multiple of 8
    return min(tile, max_tile)


def layernorm_pallas(x, gamma, beta, *, eps=EPS):
    """x: (B, S, H); gamma, beta: (H,). Normalizes over the last axis."""
    B, S, H = x.shape
    assert H % 128 == 0, "hidden size must be lane-aligned (multiple of 128)"
    rows = B * S
    x2d = x.reshape(rows, H)
    g2d = gamma.reshape(1, H)
    b2d = beta.reshape(1, H)

    tile_rows = _choose_tile_rows(rows)
    grid = (pl.cdiv(rows, tile_rows),)

    out = pl.pallas_call(
        functools.partial(_layernorm_kernel, eps=eps),
        out_shape=jax.ShapeDtypeStruct((rows, H), x.dtype),
        grid_spec=pltpu.PrefetchScalarGridSpec(
            num_scalar_prefetch=0,
            grid=grid,
            in_specs=[
                pl.BlockSpec((tile_rows, H), lambda i: (i, 0)),
                pl.BlockSpec((1, H), lambda i: (0, 0)),
                pl.BlockSpec((1, H), lambda i: (0, 0)),
            ],
            out_specs=pl.BlockSpec((tile_rows, H), lambda i: (i, 0)),
        ),
        compiler_params=pltpu.CompilerParams(
            dimension_semantics=("parallel",)),
    )(x2d, g2d, b2d)
    return out.reshape(B, S, H)


if __name__ == "__main__":
    key = jax.random.PRNGKey(0)
    # Shape implied by the module's forward: (1, 384, 768)
    HIDDEN = 768
    x = jax.random.normal(key, (1, 384, HIDDEN), dtype=jnp.float32)
    # nn.LayerNorm default init: weight = 1, bias = 0 (elementwise_affine=True)
    gamma = jnp.ones((HIDDEN,), dtype=jnp.float32)
    beta = jnp.zeros((HIDDEN,), dtype=jnp.float32)

    y = layernorm_pallas(x, gamma, beta)
    y = jax.block_until_ready(y)

    # Reference check (pure JAX, matches torch.nn.LayerNorm semantics).
    mean = jnp.mean(x, axis=-1, keepdims=True)
    var = jnp.mean((x - mean) ** 2, axis=-1, keepdims=True)
    ref = (x - mean) / jnp.sqrt(var + EPS) * gamma + beta
    assert jnp.allclose(y, ref, atol=1e-5, rtol=1e-5), "mismatch vs reference"

    print("KERNEL_OK")
</pallas_src>

<mosaic_0001>
module attributes {stable_mosaic.version = 11 : i64} {
  func.func @_layernorm_kernel(%arg0: i32, %arg1: memref<192x768xf32, #tpu.memory_space<vmem>>, %arg2: memref<1x768xf32, #tpu.memory_space<vmem>>, %arg3: memref<1x768xf32, #tpu.memory_space<vmem>>, %arg4: memref<192x768xf32, #tpu.memory_space<vmem>>) attributes {dimension_semantics = [#tpu.dimension_semantics<parallel>], iteration_bounds = array<i64: 2>, scalar_prefetch = 0 : i64, scratch_operands = 0 : i64, tpu.core_type = #tpu.core_type<tc>, window_params = [{transform_indices = @transform_0, window_bounds = array<i64: 192, 768>}, {pipeline_mode = #tpu.pipeline_mode<synchronous>, transform_indices = @transform_1, window_bounds = array<i64: 1, 768>}, {pipeline_mode = #tpu.pipeline_mode<synchronous>, transform_indices = @transform_2, window_bounds = array<i64: 1, 768>}, {transform_indices = @transform_3, window_bounds = array<i64: 192, 768>}]} {
    %c0 = arith.constant 0 : index
    %c0_0 = arith.constant 0 : index
    %0 = vector.load %arg1[%c0, %c0_0] : memref<192x768xf32, #tpu.memory_space<vmem>>, vector<192x768xf32>
    %cst = arith.constant dense<0.000000e+00> : vector<192xf32>
    %1 = vector.multi_reduction <add>, %0, %cst [1] : vector<192x768xf32> to vector<192xf32>
    %2 = vector.shape_cast %1 : vector<192xf32> to vector<192x1xf32>
    %3 = arith.mulf %0, %0 : vector<192x768xf32>
    %cst_1 = arith.constant dense<0.000000e+00> : vector<192xf32>
    %4 = vector.multi_reduction <add>, %3, %cst_1 [1] : vector<192x768xf32> to vector<192xf32>
    %5 = vector.shape_cast %4 : vector<192xf32> to vector<192x1xf32>
    %cst_2 = arith.constant 0.00130208337 : f32
    %6 = vector.broadcast %cst_2 : f32 to vector<192x1xf32>
    %7 = arith.mulf %2, %6 : vector<192x1xf32>
    %cst_3 = arith.constant 0.00130208337 : f32
    %8 = vector.broadcast %cst_3 : f32 to vector<192x1xf32>
    %9 = arith.mulf %5, %8 : vector<192x1xf32>
    %10 = arith.mulf %7, %7 : vector<192x1xf32>
    %11 = arith.subf %9, %10 : vector<192x1xf32>
    %cst_4 = arith.constant 0.000000e+00 : f32
    %12 = vector.broadcast %cst_4 : f32 to vector<192x1xf32>
    %13 = arith.maximumf %11, %12 : vector<192x1xf32>
    %cst_5 = arith.constant 9.99999996E-13 : f32
    %14 = vector.broadcast %cst_5 : f32 to vector<192x1xf32>
    %15 = arith.addf %13, %14 : vector<192x1xf32>
    %16 = math.rsqrt %15 : vector<192x1xf32>
    %c0_6 = arith.constant 0 : index
    %c0_7 = arith.constant 0 : index
    %17 = vector.load %arg2[%c0_6, %c0_7] : memref<1x768xf32, #tpu.memory_space<vmem>>, vector<1x768xf32>
    %c0_8 = arith.constant 0 : index
    %c0_9 = arith.constant 0 : index
    %18 = vector.load %arg3[%c0_8, %c0_9] : memref<1x768xf32, #tpu.memory_space<vmem>>, vector<1x768xf32>
    %19 = vector.broadcast %16 : vector<192x1xf32> to vector<192x768xf32>
    %20 = vector.broadcast %17 : vector<1x768xf32> to vector<192x768xf32>
    %21 = arith.mulf %19, %20 : vector<192x768xf32>
    %22 = vector.broadcast %7 : vector<192x1xf32> to vector<192x768xf32>
    %23 = arith.subf %0, %22 : vector<192x768xf32>
    %24 = arith.mulf %23, %21 : vector<192x768xf32>
    %25 = vector.broadcast %18 : vector<1x768xf32> to vector<192x768xf32>
    %26 = arith.addf %24, %25 : vector<192x768xf32>
    %c0_10 = arith.constant 0 : index
    %c0_11 = arith.constant 0 : index
    %27 = vector.load %arg4[%c0_10, %c0_11] : memref<192x768xf32, #tpu.memory_space<vmem>>, vector<192x768xf32>
    tpu.vector_store %arg4[%c0_10, %c0_11], %26 {strides = array<i32>} : memref<192x768xf32, #tpu.memory_space<vmem>>, vector<192x768xf32>,
    return
  }
  func.func @transform_0(%arg0: i32) -> (i32, i32) {
    %c0_i32 = arith.constant 0 : i32
    %c0_i32_0 = arith.constant 0 : i32
    return %arg0, %c0_i32 : i32, i32
  }
  func.func @transform_1(%arg0: i32) -> (i32, i32) {
    %c0_i32 = arith.constant 0 : i32
    %c0_i32_0 = arith.constant 0 : i32
    %c0_i32_1 = arith.constant 0 : i32
    return %c0_i32, %c0_i32_0 : i32, i32
  }
  func.func @transform_2(%arg0: i32) -> (i32, i32) {
    %c0_i32 = arith.constant 0 : i32
    %c0_i32_0 = arith.constant 0 : i32
    %c0_i32_1 = arith.constant 0 : i32
    return %c0_i32, %c0_i32_0 : i32, i32
  }
  func.func @transform_3(%arg0: i32) -> (i32, i32) {
    %c0_i32 = arith.constant 0 : i32
    %c0_i32_0 = arith.constant 0 : i32
    return %arg0, %c0_i32 : i32, i32
  }
}

</mosaic_0001>

<bundles_post_ra>
// kernel: tpu_custom_call.1
= control target key start
LH: loop header
LB: loop body
LE: loop exit
PB: predicated region body
PF: predicated region fallthrough
CT: control target
= control target key end

     0   :  { %8 = vsyncpa [#allocation3], 0  ;;  %s5310_s0 = inlined_call_operand.hbm [shape: f32[384,768], index: 0, kind: input, shape index: {}]   ;;  %s5311_s1 = inlined_call_operand.hbm [shape: f32[1,768], index: 1, kind: input, shape index: {}]   ;;  %s5312_s2 = inlined_call_operand.hbm [shape: f32[1,768], index: 2, kind: input, shape index: {}]   ;;  %s5313_s3 = inlined_call_operand.hbm [shape: f32[384,768], index: 3, kind: output, shape index: {}]  }
   0x1   :  { %10 = vsyncpa [#allocation3 + $0x1], 0 }
   0x2   :  { %11 = vsyncpa [#allocation6], 0 }
   0x3   :  { %12 = vsyncpa [#allocation4], 0 }
   0x4   :  { %14 = vsyncpa [#allocation4 + $0x1], 0  ;;  %s2357_s12 = smov 0   ;;  %s2359_s13 = smov 0  }
   0x5   :  { %s2361_s14 = smov 0   ;;  %s2363_s15 = smov 0  }
   0x6 LB: > { %s2378_s16 = sadd.s32 4294967295, %s2327_s15   ;;  %s1900_s17 = sadd.s32 4294967294, %s2327_s15   ;;  %s2327_s15 = sphi %s2363_s15, %s6033_s15   ;;  %s2323_s14 = sphi %s2361_s14, %s6032_s14   ;;  %s2319_s13 = sphi %s2359_s13, %s6031_s13   ;;  %s2315_s12 = sphi %s2357_s12, %s6030_s12  }
   0x7   : > { %s2382_s18 = sadd.s32 1, %s2327_s15   ;;  %s27_s19 = sadd.s32 1, %s2323_s14 }
   0x8   : > { %s24_s20 = ssub.s32 %s2327_s15, %s2382_s18  ;;  %p34_p0 = scmp.ne.s32.totalorder %s2323_s14, %s2319_s13 }
   0x9   : > { %p25_p1 = scmp.eq.s32.totalorder %s24_s20, 0  ;;  %p35_p2 = scmp.eq.s32.totalorder %s2327_s15, 0 }
   0xa   : > { %p40_p3 = scmp.ne.s32.totalorder %s2319_s13, %s2315_s12  ;;  %p5314_p4 = scmp.eq.s32.totalorder %s2378_s16, 0 }
   0xb   : > { %s2394_s21 = scalar_select %p25_p1, %s2323_s14, %s27_s19  }
   0xc   : > { %p2396_p5 = por %p35_p2, %p34_p0  ;;  %p2402_p6 = por %p5314_p4, %p40_p3 }
   0xd   : > { %p106_p7 = scmp.eq.s32.totalorder %s2378_s16, 1  ;;  %p112_p8 = scmp.eq.s32.totalorder %s1900_s17, 1 }
   0xe   : > { %s5510_s23 = scalar_select %p2402_p6, 1, 0 }
   0xf   : > { %p1901_p9 = scmp.ge.s32.totalorder %s2327_s15, 1  ;;  %p119_p10 = scmp.lt.s32.totalorder %s2327_s15, 3 }
  0x10   : > { %p2409_p11 = por %p106_p7, %p34_p0  ;;  %p2413_p12 = por %p112_p8, %p40_p3 }
  0x11   : > { %p2417_p13 = pnand %p1901_p9, %p119_p10  ;;  %s2329_s27 = smov [#allocation5]  }
  0x12   : > { %s5511_s24 = scalar_select %p2409_p11, 1, 0 }
  0x13   : > { %s5512_s25 = scalar_select %p2413_p12, 1, 0 }
  0x14   : > { %s5513_s26 = scalar_select %p2417_p13, 1, 0 }
  0x15   : > { %p1928_p2 = pneg %p2417_p13  ;;  %s132_s28 = sshll.u32 %s2329_s27, 4  ;;  %s133_s28 = int_to_ptr.vmem [resolvable:$true] %s132_s28 }
  0x16   : > { %p1945_p4 = scmp.lt.s32.totalorder %s2327_s15, 2  ;;  %p5514_p0 = scmp.eq.s32.totalorder %s2378_s16, 0 }
  0x17   : > { %s2330_s4 = smov [#allocation7]   ;;  %s2190_s6 = scalar_lea.vmem %s133_s28, 96 }
  0x18   : > { %p2427_p7 = pnand %p1928_p2, %p5514_p0  ;;  %p2433_p3 = pnand %p1945_p4, %p2396_p5 }
  0x19   : > { %s143_s5 = sshll.u32 %s2330_s4, 4  ;;  %p2191_p9 = scmp.ne.s32.totalorder %s133_s28, %s2190_s6  ;;  %s144_s5 = int_to_ptr.vmem [resolvable:$true] %s143_s5 }
  0x1a   : > { %p2181_p8 = pneg %p2427_p7  ;;  %p2198_p0 = scmp.lt.s32.totalorder %s133_s28, %s133_s28 }
  0x1b   : > { %p2199_p1 = scmp.lt.s32.totalorder %s2190_s6, %s2190_s6 }
  0x1c   : > { %p2193_p10 = pnand %p2191_p9, %p2181_p8 }
  0x1d   : > { %p2200_p12 = por %p2199_p1, %p2198_p0 }
  0x1e   : > { %p2194_p2 = pneg %p2193_p10 }
  0x20   : > { %p2201_p11 = pnand %p2200_p12, %p2194_p2 }
  0x22   : > { %2204 = shalt.err (!%p2201_p11)
}
  0x23   : > { %1931 = dma.hbm_to_vmem [thread:$0]  (!%p2427_p7), %s5311_s1, 96, %s133_s28, [#allocation6]  }
  0x24   : > { %s2216_s9 = scalar_lea.vmem %s144_s5, 96  ;;  %p2224_p10 = scmp.lt.s32.totalorder %s144_s5, %s144_s5 }
  0x25   : > { %p2217_p4 = scmp.ne.s32.totalorder %s144_s5, %s2216_s9  ;;  %p2225_p6 = scmp.lt.s32.totalorder %s2216_s9, %s2216_s9 }
  0x27   : > { %p2219_p5 = pnand %p2217_p4, %p2181_p8  ;;  %p2226_p13 = por %p2225_p6, %p2224_p10 }
  0x29   : > { %p2220_p9 = pneg %p2219_p5 }
  0x2b   : > { %p2227_p1 = pnand %p2226_p13, %p2220_p9 }
  0x2d   : > { %2230 = shalt.err (!%p2227_p1)
}
  0x2e   : > { %1934 = dma.hbm_to_vmem [thread:$0]  (!%p2427_p7), %s5312_s2, 96, %s144_s5, [#allocation6]  }
  0x2f   : > { %s154_s17 = sand.u32 1, %s2323_s14   ;;  %s1946_s19 = smul.u32 18432, %s2327_s15 }
  0x30   : > { %s1912_s20 = smul.u32 1152, %s154_s17  ;;  %s2464_s6 = scalar_lea.sflag [#allocation3], %s154_s17 }
  0x31   : > { %s2460_s28 = scalar_lea.hbm %s5310_s0, %s1946_s19  ;;  %p2233_p11 = pneg %p2433_p3 }
  0x32   : > { %s158_s4 = scalar_lea.vmem [#allocation2], %s1912_s20  ;;  %s2231_s7 = scalar_lea.hbm %s2460_s28, 18432 }
  0x33   : > { %s166_s29 = sshll.u32 %s158_s4, 4  ;;  %p2232_p6 = scmp.ne.s32.totalorder %s2460_s28, %s2231_s7  ;;  %s2462_s29 = int_to_ptr.vmem [resolvable:$true] %s166_s29 }
  0x34   : > { %s2236_s9 = scalar_lea.hbm %s5310_s0, 36864  ;;  %p2237_p7 = scmp.lt.s32.totalorder %s2460_s28, %s5310_s0 }
  0x35   : > { %p2234_p12 = pnand %p2233_p11, %p2232_p6  ;;  %p2238_p8 = scmp.lt.s32.totalorder %s2236_s9, %s2231_s7 }
  0x37   : > { %p2235_p13 = pneg %p2234_p12  ;;  %p2239_p2 = por %p2238_p8, %p2237_p7 }
  0x39   : > { %p2240_p0 = pnand %p2239_p2, %p2235_p13 }
  0x3b   : > { %2243 = shalt.err (!%p2240_p0)
}
  0x3c   : > { %s2244_s17 = scalar_lea.vmem %s2462_s29, 18432  ;;  %s2331_s19 = smov [#allocation2]  }
  0x3d   : > { %p2245_p4 = scmp.ne.s32.totalorder %s2462_s29, %s2244_s17  ;;  %s2249_s20 = sshll.u32 %s2331_s19, 4  ;;  %s2250_s20 = int_to_ptr.vmem [resolvable:$false] %s2249_s20 }
  0x3e   : > { %s2251_s22 = scalar_lea.vmem %s2250_s20, 36864  ;;  %p2252_p10 = scmp.lt.s32.totalorder %s2462_s29, %s2250_s20 }
  0x3f   : > { %p2247_p5 = pnand %p2245_p4, %p2233_p11  ;;  %p2253_p1 = scmp.lt.s32.totalorder %s2251_s22, %s2244_s17 }
  0x41   : > { %p2248_p9 = pneg %p2247_p5  ;;  %p2254_p6 = por %p2253_p1, %p2252_p10 }
  0x43   : > { %p2255_p12 = pnand %p2254_p6, %p2248_p9 }
  0x45   : > { %2258 = shalt.err (!%p2255_p12)
}
  0x46   : > { %s2332_s27 = smov 768   ;;  %s2333_s4 = smov 48  }
  0x47   : > { %1938 = dma.hbm_to_vmem [thread:$0]  (!%p2433_p3), %s2460_s28, 18432, %s2462_s29, %s2464_s6, %s2332_s27, %s2332_s27, %s2333_s4  }
  0x48   : > { %p5517_p11 = scmp.ne.s32.totalorder %s5513_s26, 0 }
  0x4a   : > { %178 = sbr.rel (%p5517_p11) target bundleno = 506 (0x1fa), region = 32 }
  0x4f   : > { %s2488_s7 = sand.u32 1, %s2319_s13   ;;  %p5518_p13 = scmp.ne.s32.totalorder %s5510_s23, 0 }
  0x50   : > { %s1914_s5 = smul.u32 1152, %s2488_s7  ;;  %s181_s8 = scalar_lea.sflag [#allocation3], %s2488_s7 }
  0x52   : > { %s2494_s9 = scalar_lea.vmem [#allocation2], %s1914_s5 }
  0x53   : > { %2302 = dma.done.wait (%p5518_p13), %s181_s8, 18432  }
  0x54   : > { %2304 = vsyncadd (%p5518_p13), %s181_s8, 4294948864  ;;  %p5519_p3 = scmp.eq.s32.totalorder %s2378_s16, 0 }
  0x56   : > { %2306 = dma.done.wait (%p5519_p3), [#allocation6], 192   ;;  %p5520_p7 = pmov %p5519_p3 }
  0x57   : > { %v229_v0 = vld [vmem:[%s2494_s9 + $0x60] sm:$0xff]  ;;  %v230_v1 = vld [vmem:[%s2494_s9 + $0x68] sm:$0xff]  ;;  %v231_v2 = vld [vmem:[%s2494_s9 + $0x70] sm:$0xff]  ;;  %s4131_s23 = scalar_lea.vmem [#allocation8], %s1914_s5  ;;  %s1949_s26 = smul.u32 18432, %s2378_s16 }
  0x58   : > { %2308 = vsyncadd (%p5520_p7), [#allocation6], 4294967104  ;;  %v232_v3 = vld [vmem:[%s2494_s9 + $0x78] sm:$0xff]  ;;  %v375_v4 = vadd.f32 %v230_v1, %v229_v0  ;;  %v217_v5 = vld [vmem:[%s2494_s9] sm:$0xff]  ;;  %v2511_v8 = vmul.f32 %v229_v0, %v229_v0  ;;  %v2513_v9 = vmul.f32 %v230_v1, %v230_v1  ;;  %v2521_v20 = vmul.f32 %v231_v2, %v231_v2  ;;  %s1808_s30 = sshll.u32 %s4131_s23, 4  ;;  %s1794_s6 = scalar_lea.sflag [#allocation4], %s2488_s7  ;;  %s5259_s30 = int_to_ptr.vmem [resolvable:$true] %s1808_s30 }
  0x59   : > { %v218_v6 = vld [vmem:[%s2494_s9 + $0x8] sm:$0xff]  ;;  %v219_v7 = vld [vmem:[%s2494_s9 + $0x10] sm:$0xff]  ;;  %v233_v10 = vld [vmem:[%s2494_s9 + $0x80] sm:$0xff]  ;;  %v529_v15 = vmul.f32 %v217_v5, %v217_v5  ;;  %v2523_v21 = vmul.f32 %v232_v3, %v232_v3  ;;  %s5257_s29 = scalar_lea.hbm %s5313_s3, %s1949_s26  ;;  %s2259_s10 = scalar_lea.vmem %s5259_s30, 18432 }
  0x5a   : > { %v234_v11 = vld [vmem:[%s2494_s9 + $0x88] sm:$0xff]  ;;  %v376_v12 = vadd.f32 %v375_v4, %v231_v2  ;;  %v220_v13 = vld [vmem:[%s2494_s9 + $0x18] sm:$0xff]  ;;  %v361_v14 = vadd.f32 %v218_v6, %v217_v5  ;;  %v530_v16 = vmul.f32 %v218_v6, %v218_v6  ;;  %v235_v17 = vld [vmem:[%s2494_s9 + $0x90] sm:$0xff]  ;;  %v2525_v22 = vmul.f32 %v233_v10, %v233_v10  ;;  %p2260_p8 = scmp.ne.s32.totalorder %s5259_s30, %s2259_s10  ;;  %p6027_p2 = scmp.ne.s32.totalorder %s5511_s24, 0 }
  0x5b   : > { %v236_v18 = vld [vmem:[%s2494_s9 + $0x98] sm:$0xff]  ;;  %v237_v19 = vld [vmem:[%s2494_s9 + $0xa0] sm:$0xff]  ;;  %v2527_v23 = vmul.f32 %v234_v11, %v234_v11  ;;  %v222_v26 = vld [vmem:[%s2494_s9 + $0x28] sm:$0xff]  ;;  %v2532_v30 = vmul.f32 %v219_v7, %v219_v7  ;;  %v2537_v34 = vmul.f32 %v220_v13, %v220_v13  ;;  %v547_v49 = vmul.f32 %v235_v17, %v235_v17  ;;  %s2334_s11 = smov [#allocation8]  }
  0x5c   : > { %v377_v24 = vadd.f32 %v376_v12, %v232_v3  ;;  %v221_v25 = vld [vmem:[%s2494_s9 + $0x20] sm:$0xff]  ;;  %v362_v27 = vadd.f32 %v361_v14, %v219_v7  ;;  %v238_v28 = vld [vmem:[%s2494_s9 + $0xa8] sm:$0xff]  ;;  %v382_v29 = vadd.f32 %v236_v18, %v235_v17  ;;  %v223_v31 = vld [vmem:[%s2494_s9 + $0x30] sm:$0xff]  ;;  %v2541_v36 = vmul.f32 %v222_v26, %v222_v26  ;;  %p2261_p0 = pnand %p2260_p8, %p6027_p2  ;;  %s2263_s17 = sshll.u32 %s2334_s11, 4  ;;  %s2264_s17 = int_to_ptr.vmem [resolvable:$false] %s2263_s17 }
  0x5d   : > { %v224_v32 = vld [vmem:[%s2494_s9 + $0x38] sm:$0xff]  ;;  %v225_v33 = vld [vmem:[%s2494_s9 + $0x40] sm:$0xff]  ;;  %v2539_v35 = vmul.f32 %v221_v25, %v221_v25  ;;  %v673_v37 = vadd.f32 %v530_v16, %v529_v15  ;;  %v2544_v40 = vld [vmem:[%s2494_s9 + $0xb0] sm:$0xff]  ;;  %v535_v46 = vmul.f32 %v223_v31, %v223_v31  ;;  %v548_v0 = vmul.f32 %v236_v18, %v236_v18  ;;  %s2265_s19 = scalar_lea.vmem %s2264_s17, 36864  ;;  %p2266_p5 = scmp.lt.s32.totalorder %s5259_s30, %s2264_s17 }
  0x5e   : > { %v378_v38 = vadd.f32 %v377_v24, %v233_v10  ;;  %v363_v39 = vadd.f32 %v362_v27, %v220_v13  ;;  %v383_v41 = vadd.f32 %v382_v29, %v237_v19  ;;  %v368_v42 = vadd.f32 %v224_v32, %v223_v31  ;;  %v226_v43 = vld [vmem:[%s2494_s9 + $0x48] sm:$0xff]  ;;  %v2548_v44 = vld [vmem:[%s2494_s9 + $0xf0] sm:$0xff]  ;;  %v2551_v45 = vld [vmem:[%s2494_s9 + $0xf8] sm:$0xff]  ;;  %p2262_p4 = pneg %p2261_p0  ;;  %p2267_p9 = scmp.lt.s32.totalorder %s2265_s19, %s2259_s10 }
  0x5f   : > { %v536_v47 = vmul.f32 %v224_v32, %v224_v32  ;;  %v537_v48 = vmul.f32 %v225_v33, %v225_v33  ;;  %v2554_v52 = vld [vmem:[%s2494_s9 + $0xb8] sm:$0xff]  ;;  %v227_v54 = vld [vmem:[%s2494_s9 + $0x50] sm:$0xff]  ;;  %v2558_v56 = vld [vmem:[%s2494_s9 + $0x100] sm:$0xff]  ;;  %v396_v58 = vadd.f32 %v2551_v45, %v2548_v44  ;;  %v538_v62 = vmul.f32 %v226_v43, %v226_v43 }
  0x60   : > { %v379_v50 = vadd.f32 %v378_v38, %v234_v11  ;;  %v364_v51 = vadd.f32 %v363_v39, %v221_v25  ;;  %v384_v53 = vadd.f32 %v383_v41, %v238_v28  ;;  %v369_v55 = vadd.f32 %v368_v42, %v225_v33  ;;  %v228_v57 = vld [vmem:[%s2494_s9 + $0x58] sm:$0xff]  ;;  %v2564_v59 = vld [vmem:[%s2494_s9 + $0xc0] sm:$0xff]  ;;  %v2567_v60 = vld [vmem:[%s2494_s9 + $0xc8] sm:$0xff]  ;;  %p2268_p10 = por %p2267_p9, %p2266_p5 }
  0x61   : > { %v2570_v61 = vld [vmem:[%s2494_s9 + $0xd0] sm:$0xff]  ;;  %v680_v63 = vadd.f32 %v536_v47, %v535_v46  ;;  %v2574_v4 = vld [vmem:[%s2494_s9 + $0x108] sm:$0xff]  ;;  %v2580_v6 = vld [vmem:[%s2494_s9 + $0xd8] sm:$0xff]  ;;  %v389_v7 = vadd.f32 %v2567_v60, %v2564_v59  ;;  %v397_v10 = vadd.f32 %v396_v58, %v2558_v56  ;;  %v549_v15 = vmul.f32 %v237_v19, %v237_v19 }
  0x62   : > { %380 = vadd.xlane.f32.xlu1 %v379_v50  ;;  %v365_v1 = vadd.f32 %v364_v51, %v222_v26  ;;  %v385_v2 = vadd.f32 %v384_v53, %v2544_v40  ;;  %v370_v3 = vadd.f32 %v369_v55, %v226_v43  ;;  %v2577_v5 = vld [vmem:[%s2494_s9 + $0x110] sm:$0xff]  ;;  %v2589_v12 = vld [vmem:[%s2494_s9 + $0x158] sm:$0xff]  ;;  %v2592_v13 = vld [vmem:[%s2494_s9 + $0x160] sm:$0xff]  ;;  %v550_v16 = vmul.f32 %v238_v28, %v238_v28  ;;  %p2269_p1 = pnand %p2268_p10, %p2262_p4 }
  0x63   : > { %v2586_v11 = vld [vmem:[%s2494_s9 + $0x150] sm:$0xff]  ;;  %v681_v14 = vadd.f32 %v680_v63, %v537_v48  ;;  %v2596_v24 = vld [vmem:[%s2494_s9 + $0x118] sm:$0xff]  ;;  %v2599_v25 = vld [vmem:[%s2494_s9 + $0xe0] sm:$0xff]  ;;  %v390_v26 = vadd.f32 %v389_v7, %v2570_v61  ;;  %v398_v19 = vadd.f32 %v397_v10, %v2574_v4  ;;  %v539_v33 = vmul.f32 %v227_v54, %v227_v54 }
  0x64   : > { %366 = vadd.xlane.f32.xlu0 %v365_v1  ;;  %v386_v17 = vadd.f32 %v385_v2, %v2554_v52  ;;  %v371_v18 = vadd.f32 %v370_v3, %v227_v54  ;;  %v2603_v27 = vld [vmem:[%s2494_s9 + $0x168] sm:$0xff]  ;;  %v410_v29 = vadd.f32 %v2589_v12, %v2586_v11  ;;  %v2609_v28 = vld [vmem:[%s2494_s9 + $0x120] sm:$0xff]  ;;  %v2615_v32 = vld [vmem:[%s2494_s9 + $0x130] sm:$0xff]  ;;  %v674_v39 = vadd.f32 %v673_v37, %v2532_v30 }
  0x65   : > { %v2612_v31 = vld [vmem:[%s2494_s9 + $0x128] sm:$0xff]  ;;  %v682_v38 = vadd.f32 %v681_v14, %v538_v62  ;;  %v391_v43 = vadd.f32 %v390_v26, %v2580_v6  ;;  %v2623_v46 = vld [vmem:[%s2494_s9 + $0x170] sm:$0xff]  ;;  %v2627_v48 = vld [vmem:[%s2494_s9 + $0x138] sm:$0xff]  ;;  %v399_v30 = vadd.f32 %v398_v19, %v2577_v5  ;;  %v540_v54 = vmul.f32 %v228_v57, %v228_v57 }
  0x66   : > { %387 = vadd.xlane.f32.xlu1 %v386_v17  ;;  %v372_v41 = vadd.f32 %v371_v18, %v228_v57  ;;  %v2619_v42 = vld [vmem:[%s2494_s9 + $0xe8] sm:$0xff]  ;;  %v411_v47 = vadd.f32 %v410_v29, %v2592_v13  ;;  %v403_v50 = vadd.f32 %v2612_v31, %v2609_v28  ;;  %v2633_v37 = vld [vmem:[%s2494_s9 + $0x1b0] sm:$0xff]  ;;  %v2636_v51 = vld [vmem:[%s2494_s9 + $0x1b8] sm:$0xff]  ;;  %v551_v55 = vmul.f32 %v2544_v40, %v2544_v40 }
  0x67   : > { %v2639_v53 = vld [vmem:[%s2494_s9 + $0x1c0] sm:$0xff]  ;;  %v694_v58 = vadd.f32 %v548_v0, %v547_v49  ;;  %v392_v62 = vadd.f32 %v391_v43, %v2599_v25  ;;  %v2645_v63 = vld [vmem:[%s2494_s9 + $0x178] sm:$0xff]  ;;  %v424_v57 = vadd.f32 %v2636_v51, %v2633_v37  ;;  %v400_v40 = vadd.f32 %v399_v30, %v2596_v24  ;;  %v2656_v49 = vld [vmem:[%s2494_s9 + $0x1c8] sm:$0xff] }
  0x68   : > { %373 = vadd.xlane.f32.xlu0 %v372_v41  ;;  %v412_v1 = vadd.f32 %v411_v47, %v2603_v27  ;;  %v2649_v2 = vld [vmem:[%s2494_s9 + $0x140] sm:$0xff]  ;;  %v404_v3 = vadd.f32 %v403_v50, %v2615_v32  ;;  %v2662_v7 = vld [vmem:[%s2494_s9 + $0x188] sm:$0xff]  ;;  %v683_v10 = vadd.f32 %v682_v38, %v539_v33  ;;  %v675_v14 = vadd.f32 %v674_v39, %v2537_v34  ;;  %v2672_v41 = vld [vmem:[%s2494_s9 + $0x1d0] sm:$0xff] }
  0x69   : > { %v2659_v0 = vld [vmem:[%s2494_s9 + $0x180] sm:$0xff]  ;;  %5522 = vst [vmem:[#allocation13_spill] sm:$0xff] %v2662_v7  ;;  %v695_v17 = vadd.f32 %v694_v58, %v549_v15  ;;  %v393_v18 = vadd.f32 %v392_v62, %v2619_v42  ;;  %v2668_v29 = vld [vmem:[%s2494_s9 + $0x148] sm:$0xff]  ;;  %v425_v43 = vadd.f32 %v424_v57, %v2639_v53  ;;  %v2676_v47 = vld [vmem:[%s2494_s9 + $0x190] sm:$0xff]  ;;  %v552_v50 = vmul.f32 %v2554_v52, %v2554_v52 }
  0x6a   : > { %5521 = vst [vmem:[#allocation12_spill] sm:$0xff] %v2659_v0  ;;  %v413_v26 = vadd.f32 %v412_v1, %v2623_v46  ;;  %v405_v19 = vadd.f32 %v404_v3, %v2627_v48  ;;  %5523 = vst [vmem:[#allocation14_spill] sm:$0xff] %v2676_v47  ;;  %401 = vadd.xlane.f32.xlu1 %v400_v40  ;;  %v2679_v34 = vld [vmem:[%s2494_s9 + $0x1d8] sm:$0xff]  ;;  %v417_v15 = vadd.f32 %v2662_v7, %v2659_v0  ;;  %v2684_v33 = vld [vmem:[%s2494_s9 + $0x210] sm:$0xff] }
  0x6b   : > { %5524 = vst [vmem:[#allocation15_spill] sm:$0xff] %v2684_v33  ;;  %v2687_v38 = vld [vmem:[%s2494_s9 + $0x218] sm:$0xff]  ;;  %v2690_v39 = vld [vmem:[%s2494_s9 + $0x220] sm:$0xff]  ;;  %v696_v30 = vadd.f32 %v695_v17, %v550_v16  ;;  %v687_v58 = vadd.f32 %v2513_v9, %v2511_v8  ;;  %v426_v3 = vadd.f32 %v425_v43, %v2656_v49  ;;  %v2706_v7 = vld [vmem:[%s2494_s9 + $0x228] sm:$0xff] }
  0x6c   : > { %5525 = vst [vmem:[#allocation16_spill] sm:$0xff] %v2687_v38  ;;  %394 = vadd.xlane.f32.xlu0 %v393_v18  ;;  %v414_v62 = vadd.f32 %v413_v26, %v2645_v63  ;;  %v406_v1 = vadd.f32 %v405_v19, %v2649_v2  ;;  %v2700_v57 = vld [vmem:[%s2494_s9 + $0x198] sm:$0xff]  ;;  %v2703_v40 = vld [vmem:[%s2494_s9 + $0x1a0] sm:$0xff]  ;;  %5526 = vst [vmem:[#allocation17_spill] sm:$0xff] %v2706_v7  ;;  %v438_v52 = vadd.f32 %v2687_v38, %v2684_v33 }
  0x6d   : > { %v418_v8 = vadd.f32 %v417_v15, %v2676_v47  ;;  %v2712_v9 = vld [vmem:[%s2494_s9 + $0x1e0] sm:$0xff]  ;;  %v2715_v16 = vld [vmem:[%s2494_s9 + $0x1e8] sm:$0xff]  ;;  %v2718_v17 = vld [vmem:[%s2494_s9 + $0x1f0] sm:$0xff]  ;;  %v2720_v18 = vadd.f32 %v683_v10, %v540_v54  ;;  %v676_v26 = vadd.f32 %v675_v14, %v2539_v35  ;;  %v688_v19 = vadd.f32 %v687_v58, %v2521_v20 }
  0x6e   : > { %5527 = vst [vmem:[#allocation18_spill] sm:$0xff] %v2712_v9  ;;  %5528 = vst [vmem:[#allocation19_spill] sm:$0xff] %v2715_v16  ;;  %v407_v43 = vadd.f32 %v406_v1, %v2668_v29  ;;  %v427_v38 = vadd.f32 %v426_v3, %v2672_v41  ;;  %v2727_v15 = vld [vmem:[%s2494_s9 + $0x1a8] sm:$0xff]  ;;  %v2730_v33 = vld [vmem:[%s2494_s9 + $0x230] sm:$0xff]  ;;  %v439_v47 = vadd.f32 %v438_v52, %v2690_v39  ;;  %415 = vadd.xlane.f32.xlu1 %v414_v62 }
  0x6f   : > { %5529 = vst [vmem:[#allocation20_spill] sm:$0xff] %v2718_v17  ;;  %5530 = vst [vmem:[#allocation21_spill] sm:$0xff] %v2720_v18  ;;  %v2734_v0 = vld [vmem:[%s2494_s9 + $0x1f8] sm:$0xff]  ;;  %v431_v35 = vadd.f32 %v2715_v16, %v2712_v9  ;;  %v419_v20 = vadd.f32 %v418_v8, %v2700_v57  ;;  %v2740_v54 = vld [vmem:[%s2494_s9 + $0x270] sm:$0xff]  ;;  %v697_v58 = vadd.f32 %v696_v30, %v551_v55 }
  0x70   : > { %5531 = vst [vmem:[#allocation22_spill] sm:$0xff] %v2740_v54  ;;  %v2743_v10 = vld [vmem:[%s2494_s9 + $0x278] sm:$0xff]  ;;  %v2746_v14 = vld [vmem:[%s2494_s9 + $0x280] sm:$0xff]  ;;  %v559_v1 = vmul.f32 %v2548_v44, %v2548_v44  ;;  %v560_v3 = vmul.f32 %v2551_v45, %v2551_v45  ;;  %408 = vadd.xlane.f32.xlu0 %v407_v43  ;;  %v428_v62 = vadd.f32 %v427_v38, %v2679_v34  ;;  %v2762_v55 = vld [vmem:[%s2494_s9 + $0x288] sm:$0xff] }
  0x71   : > { %5532 = vst [vmem:[#allocation23_spill] sm:$0xff] %v2743_v10  ;;  %5533 = vst [vmem:[#allocation24_spill] sm:$0xff] %v2746_v14  ;;  %v2754_v52 = vld [vmem:[%s2494_s9 + $0x238] sm:$0xff]  ;;  %v440_v8 = vadd.f32 %v439_v47, %v2706_v7  ;;  %v2758_v18 = vld [vmem:[%s2494_s9 + $0x200] sm:$0xff]  ;;  %v432_v16 = vadd.f32 %v431_v35, %v2718_v17  ;;  %v452_v44 = vadd.f32 %v2743_v10, %v2740_v54 }
  0x72   : > { %5534 = vst [vmem:[#allocation25_spill] sm:$0xff] %v2762_v55  ;;  %v420_v45 = vadd.f32 %v419_v20, %v2703_v40  ;;  %v2768_v30 = vld [vmem:[%s2494_s9 + $0x240] sm:$0xff]  ;;  %v2771_v38 = vld [vmem:[%s2494_s9 + $0x248] sm:$0xff]  ;;  %v2774_v43 = vld [vmem:[%s2494_s9 + $0x250] sm:$0xff]  ;;  %v2777_v47 = vadd.f32 %v676_v26, %v2541_v36  ;;  %v689_v35 = vadd.f32 %v688_v19, %v2523_v21  ;;  %v561_v17 = vmul.f32 %v2558_v56, %v2558_v56 }
  0x73   : > { %5535 = vst [vmem:[#allocation26_spill] sm:$0xff] %v2768_v30  ;;  %5536 = vst [vmem:[#allocation27_spill] sm:$0xff] %v2771_v38  ;;  %v441_v10 = vadd.f32 %v440_v8, %v2730_v33  ;;  %v2784_v20 = vld [vmem:[%s2494_s9 + $0x208] sm:$0xff]  ;;  %v433_v54 = vadd.f32 %v432_v16, %v2734_v0  ;;  %v2788_v9 = vld [vmem:[%s2494_s9 + $0x290] sm:$0xff]  ;;  %v453_v7 = vadd.f32 %v452_v44, %v2746_v14  ;;  %429 = vadd.xlane.f32.xlu1 %v428_v62 }
  0x74   : > { %5537 = vst [vmem:[#allocation28_spill] sm:$0xff] %v2774_v43  ;;  %5538 = vst [vmem:[#allocation29_spill] sm:$0xff] %v2777_v47  ;;  %v445_v36 = vadd.f32 %v2771_v38, %v2768_v30  ;;  %v421_v21 = vadd.f32 %v420_v45, %v2727_v15  ;;  %v2795_v56 = vld [vmem:[%s2494_s9 + $0x258] sm:$0xff]  ;;  %v2798_v26 = vld [vmem:[%s2494_s9 + $0x2d0] sm:$0xff]  ;;  %v2803_v19 = vadd.f32 %v697_v58, %v552_v50 }
  0x75   : > { %5539 = vst [vmem:[#allocation30_spill] sm:$0xff] %v2798_v26  ;;  %v2801_v16 = vld [vmem:[%s2494_s9 + $0x2d8] sm:$0xff]  ;;  %v562_v8 = vmul.f32 %v2574_v4, %v2574_v4  ;;  %v708_v44 = vadd.f32 %v560_v3, %v559_v1  ;;  %v442_v62 = vadd.f32 %v441_v10, %v2754_v52  ;;  %v434_v38 = vadd.f32 %v433_v54, %v2758_v18  ;;  %v2814_v14 = vld [vmem:[%s2494_s9 + $0x260] sm:$0xff]  ;;  %v2821_v4 = vld [vmem:[%s2494_s9 + $0x268] sm:$0xff] }
  0x76   : > { %5540 = vst [vmem:[#allocation31_spill] sm:$0xff] %v2801_v16  ;;  %5541 = vst [vmem:[#allocation32_spill] sm:$0xff] %v2803_v19  ;;  %v2810_v45 = vld [vmem:[%s2494_s9 + $0x298] sm:$0xff]  ;;  %v454_v30 = vadd.f32 %v453_v7, %v2762_v55  ;;  %v446_v47 = vadd.f32 %v445_v36, %v2774_v43  ;;  %v2818_v50 = vld [vmem:[%s2494_s9 + $0x2e0] sm:$0xff]  ;;  %422 = vadd.xlane.f32.xlu0 %v421_v21  ;;  %v466_v10 = vadd.f32 %v2801_v16, %v2798_v26 }
  0x77   : > { %5542 = vst [vmem:[#allocation33_spill] sm:$0xff] %v2814_v14  ;;  %5543 = vst [vmem:[#allocation34_spill] sm:$0xff] %v2818_v50  ;;  %v2826_v54 = vld [vmem:[%s2494_s9 + $0x2a0] sm:$0xff]  ;;  %v2829_v7 = vld [vmem:[%s2494_s9 + $0x2a8] sm:$0xff]  ;;  %v690_v1 = vadd.f32 %v689_v35, %v2525_v22  ;;  %v563_v3 = vmul.f32 %v2577_v5, %v2577_v5  ;;  %v709_v36 = vadd.f32 %v708_v44, %v561_v17  ;;  %443 = vadd.xlane.f32.xlu1 %v442_v62 }
  0x78   : > { %5544 = vst [vmem:[#allocation35_spill] sm:$0xff] %v2821_v4  ;;  %5545 = vst [vmem:[#allocation36_spill] sm:$0xff] %v2826_v54  ;;  %v2832_v58 = vld [vmem:[%s2494_s9 + $0x2b0] sm:$0xff]  ;;  %v435_v21 = vadd.f32 %v434_v38, %v2784_v20  ;;  %v455_v43 = vadd.f32 %v454_v30, %v2788_v9  ;;  %v447_v16 = vadd.f32 %v446_v47, %v2795_v56  ;;  %v2841_v26 = vld [vmem:[%s2494_s9 + $0x2e8] sm:$0xff] }
  0x79   : > { %5546 = vst [vmem:[#allocation37_spill] sm:$0xff] %v2829_v7  ;;  %5547 = vst [vmem:[#allocation38_spill] sm:$0xff] %v2832_v58  ;;  %v2844_v55 = vld [vmem:[%s2494_s9 + $0x2f0] sm:$0xff]  ;;  %v2847_v19 = vld [vmem:[%s2494_s9 + $0x2b8] sm:$0xff]  ;;  %v459_v22 = vadd.f32 %v2829_v7, %v2826_v54  ;;  %v467_v5 = vadd.f32 %v466_v10, %v2818_v50  ;;  %v710_v47 = vadd.f32 %v709_v36, %v562_v8 }
  0x7a   : > { %5548 = vst [vmem:[#allocation39_spill] sm:$0xff] %v2841_v26  ;;  %5549 = vst [vmem:[#allocation40_spill] sm:$0xff] %v2847_v19  ;;  %v2853_v17 = vld [vmem:[%s2494_s9 + $0x330] sm:$0xff]  ;;  %v2856_v30 = vld [vmem:[%s2494_s9 + $0x338] sm:$0xff]  ;;  %v553_v35 = vmul.f32 %v2564_v59, %v2564_v59  ;;  %v554_v44 = vmul.f32 %v2567_v60, %v2567_v60  ;;  %v456_v62 = vadd.f32 %v455_v43, %v2810_v45  ;;  %436 = vadd.xlane.f32.xlu0 %v435_v21 }
  0x7b   : > { %5550 = vst [vmem:[#allocation41_spill] sm:$0xff] %v2853_v17  ;;  %5551 = vst [vmem:[#allocation42_spill] sm:$0xff] %v2856_v30  ;;  %v2859_v38 = vld [vmem:[%s2494_s9 + $0x340] sm:$0xff]  ;;  %v448_v10 = vadd.f32 %v447_v16, %v2814_v14  ;;  %v2868_v7 = vld [vmem:[%s2494_s9 + $0x2f8] sm:$0xff]  ;;  %v460_v50 = vadd.f32 %v459_v22, %v2832_v58  ;;  %v480_v59 = vadd.f32 %v2856_v30, %v2853_v17 }
  0x7c   : > { %5552 = vst [vmem:[#allocation43_spill] sm:$0xff] %v2859_v38  ;;  %5553 = vst [vmem:[#allocation44_spill] sm:$0xff] %v2868_v7  ;;  %v2871_v54 = vld [vmem:[%s2494_s9 + $0x2c0] sm:$0xff]  ;;  %v2875_v8 = vld [vmem:[%s2494_s9 + $0x348] sm:$0xff]  ;;  %v468_v60 = vadd.f32 %v467_v5, %v2841_v26  ;;  %v2890_v22 = vadd.f32 %v690_v1, %v2527_v23  ;;  %v564_v58 = vmul.f32 %v2596_v24, %v2596_v24  ;;  %457 = vadd.xlane.f32.xlu1 %v456_v62 }
  0x7d   : > { %5554 = vst [vmem:[#allocation45_spill] sm:$0xff] %v2875_v8  ;;  %v2881_v43 = vld [vmem:[%s2494_s9 + $0x300] sm:$0xff]  ;;  %v2884_v16 = vld [vmem:[%s2494_s9 + $0x308] sm:$0xff]  ;;  %v2887_v36 = vld [vmem:[%s2494_s9 + $0x310] sm:$0xff]  ;;  %v555_v21 = vmul.f32 %v2570_v61, %v2570_v61  ;;  %v449_v5 = vadd.f32 %v448_v10, %v2821_v4  ;;  %v461_v17 = vadd.f32 %v460_v50, %v2847_v19  ;;  %v481_v14 = vadd.f32 %v480_v59, %v2859_v38 }
  0x7e   : > { %5555 = vst [vmem:[#allocation46_spill] sm:$0xff] %v2881_v43  ;;  %5556 = vst [vmem:[#allocation47_spill] sm:$0xff] %v2884_v16  ;;  %v2898_v30 = vld [vmem:[%s2494_s9 + $0x2c8] sm:$0xff]  ;;  %v2902_v26 = vld [vmem:[%s2494_s9 + $0x350] sm:$0xff]  ;;  %v473_v24 = vadd.f32 %v2884_v16, %v2881_v43  ;;  %v469_v61 = vadd.f32 %v468_v60, %v2844_v55  ;;  %v711_v19 = vadd.f32 %v710_v47, %v563_v3 }
  0x7f   : > { %5557 = vst [vmem:[#allocation48_spill] sm:$0xff] %v2887_v36  ;;  %5558 = vst [vmem:[#allocation49_spill] sm:$0xff] %v2898_v30  ;;  %v2906_v23 = vld [vmem:[%s2494_s9 + $0x318] sm:$0xff]  ;;  %v2912_v1 = vld [vmem:[%s2494_s9 + $0x390] sm:$0xff]  ;;  %v556_v59 = vmul.f32 %v2580_v6, %v2580_v6  ;;  %v701_v38 = vadd.f32 %v554_v44, %v553_v35  ;;  %v462_v4 = vadd.f32 %v461_v17, %v2871_v54  ;;  %450 = vadd.xlane.f32.xlu0 %v449_v5 }
  0x80   : > { %5559 = vst [vmem:[#allocation50_spill] sm:$0xff] %v2902_v26  ;;  %5560 = vst [vmem:[#allocation51_spill] sm:$0xff] %v2906_v23  ;;  %v2915_v10 = vld [vmem:[%s2494_s9 + $0x398] sm:$0xff]  ;;  %v2918_v50 = vld [vmem:[%s2494_s9 + $0x3a0] sm:$0xff]  ;;  %v482_v60 = vadd.f32 %v481_v14, %v2875_v8  ;;  %v474_v43 = vadd.f32 %v473_v24, %v2887_v36  ;;  %v470_v6 = vadd.f32 %v469_v61, %v2868_v7 }
  0x81   : > { %5561 = vst [vmem:[#allocation52_spill] sm:$0xff] %v2912_v1  ;;  %5562 = vst [vmem:[#allocation53_spill] sm:$0xff] %v2915_v10  ;;  %v2924_v62 = vld [vmem:[%s2494_s9 + $0x358] sm:$0xff]  ;;  %v2928_v16 = vld [vmem:[%s2494_s9 + $0x320] sm:$0xff]  ;;  %v494_v3 = vadd.f32 %v2915_v10, %v2912_v1  ;;  %v702_v35 = vadd.f32 %v701_v38, %v555_v21  ;;  %v571_v44 = vmul.f32 %v2586_v11, %v2586_v11 }
  0x82   : > { %5563 = vst [vmem:[#allocation54_spill] sm:$0xff] %v2918_v50  ;;  %5564 = vst [vmem:[#allocation55_spill] sm:$0xff] %v2924_v62  ;;  %v2935_v47 = vld [vmem:[%s2494_s9 + $0x3a8] sm:$0xff]  ;;  %v2938_v17 = vld [vmem:[%s2494_s9 + $0x360] sm:$0xff]  ;;  %v572_v24 = vmul.f32 %v2589_v12, %v2589_v12  ;;  %v463_v5 = vadd.f32 %v462_v4, %v2898_v30  ;;  %v483_v61 = vadd.f32 %v482_v60, %v2902_v26  ;;  %471 = vadd.xlane.f32.xlu1 %v470_v6 }
  0x83   : > { %5565 = vst [vmem:[#allocation56_spill] sm:$0xff] %v2928_v16  ;;  %5566 = vst [vmem:[#allocation57_spill] sm:$0xff] %v2935_v47  ;;  %v2941_v14 = vld [vmem:[%s2494_s9 + $0x368] sm:$0xff]  ;;  %v475_v1 = vadd.f32 %v474_v43, %v2906_v23  ;;  %v2954_v36 = vld [vmem:[%s2494_s9 + $0x3b0] sm:$0xff]  ;;  %v495_v38 = vadd.f32 %v494_v3, %v2918_v50  ;;  %v557_v3 = vmul.f32 %v2599_v25, %v2599_v25 }
  0x84   : > { %5567 = vst [vmem:[#allocation58_spill] sm:$0xff] %v2938_v17  ;;  %5568 = vst [vmem:[#allocation59_spill] sm:$0xff] %v2941_v14  ;;  %v2950_v10 = vld [vmem:[%s2494_s9 + $0x328] sm:$0xff]  ;;  %v2958_v21 = vld [vmem:[%s2494_s9 + $0x370] sm:$0xff]  ;;  %v487_v12 = vadd.f32 %v2941_v14, %v2938_v17  ;;  %v2978_v6 = vmul.f32 %v2619_v42, %v2619_v42  ;;  %v573_v50 = vmul.f32 %v2592_v13, %v2592_v13  ;;  %464 = vadd.xlane.f32.xlu0 %v463_v5 }
  0x85   : > { %5569 = vst [vmem:[#allocation60_spill] sm:$0xff] %v2958_v21  ;;  %v2961_v11 = vld [vmem:[%s2494_s9 + $0x3b8] sm:$0xff]  ;;  %v2966_v4 = vld [vmem:[%s2494_s9 + $0x3f0] sm:$0xff]  ;;  %v2972_v60 = vld [vmem:[%s2494_s9 + $0x400] sm:$0xff]  ;;  %v484_v14 = vadd.f32 %v483_v61, %v2924_v62  ;;  %v476_v17 = vadd.f32 %v475_v1, %v2928_v16  ;;  %v496_v23 = vadd.f32 %v495_v38, %v2935_v47  ;;  %v3006_v47 = vadd.f32 %v711_v19, %v564_v58 }
  0x86   : > { %5570 = vst [vmem:[#allocation61_spill] sm:$0xff] %v2966_v4  ;;  %v2969_v43 = vld [vmem:[%s2494_s9 + $0x3f8] sm:$0xff]  ;;  %5572 = vst [vmem:[#allocation63_spill] sm:$0xff] %v2972_v60  ;;  %v2989_v30 = vld [vmem:[%s2494_s9 + $0x380] sm:$0xff]  ;;  %v488_v13 = vadd.f32 %v487_v12, %v2958_v21  ;;  %v703_v16 = vadd.f32 %v702_v35, %v556_v59  ;;  %v722_v62 = vadd.f32 %v572_v24, %v571_v44 }
  0x87   : > { %5571 = vst [vmem:[#allocation62_spill] sm:$0xff] %v2969_v43  ;;  %v2986_v26 = vld [vmem:[%s2494_s9 + $0x378] sm:$0xff]  ;;  %v2992_v25 = vld [vmem:[%s2494_s9 + $0x408] sm:$0xff]  ;;  %v508_v42 = vadd.f32 %v2969_v43, %v2966_v4  ;;  %v2998_v61 = vld [vmem:[%s2494_s9 + $0x3c0] sm:$0xff]  ;;  %v477_v8 = vadd.f32 %v476_v17, %v2950_v10  ;;  %v497_v5 = vadd.f32 %v496_v23, %v2954_v36  ;;  %485 = vadd.xlane.f32.xlu1 %v484_v14 }
  0x88   : > { %5573 = vst [vmem:[#allocation64_spill] sm:$0xff] %v2992_v25  ;;  %5574 = vst [vmem:[#allocation65_spill] sm:$0xff] %v2998_v61  ;;  %v3001_v1 = vld [vmem:[%s2494_s9 + $0x3c8] sm:$0xff]  ;;  %v3004_v38 = vld [vmem:[%s2494_s9 + $0x3d0] sm:$0xff]  ;;  %v489_v58 = vadd.f32 %v488_v13, %v2986_v26  ;;  %v574_v35 = vmul.f32 %v2603_v27, %v2603_v27  ;;  %v575_v44 = vmul.f32 %v2623_v46, %v2623_v46 }
  0x89   : > { %5575 = vst [vmem:[#allocation66_spill] sm:$0xff] %v3001_v1  ;;  %5576 = vst [vmem:[#allocation67_spill] sm:$0xff] %v3004_v38  ;;  %v3011_v43 = vld [vmem:[%s2494_s9 + $0x388] sm:$0xff]  ;;  %v3014_v12 = vld [vmem:[%s2494_s9 + $0x410] sm:$0xff]  ;;  %v509_v4 = vadd.f32 %v508_v42, %v2972_v60  ;;  %v501_v19 = vadd.f32 %v3001_v1, %v2998_v61  ;;  %v723_v24 = vadd.f32 %v722_v62, %v573_v50  ;;  %478 = vadd.xlane.f32.xlu0 %v477_v8 }
  0x8a   : > { %v3018_v21 = vld [vmem:[%s2494_s9 + $0x3d8] sm:$0xff]  ;;  %v3024_v59 = vld [vmem:[%s2494_s9 + $0x450] sm:$0xff]  ;;  %v3030_v17 = vld [vmem:[%s2494_s9 + $0x460] sm:$0xff]  ;;  %v498_v14 = vadd.f32 %v497_v5, %v2961_v11  ;;  %v490_v46 = vadd.f32 %v489_v58, %v2989_v30  ;;  %v704_v5 = vadd.f32 %v703_v16, %v557_v3 }
  0x8b   : > { %5577 = vst [vmem:[#allocation68_spill] sm:$0xff] %v3024_v59  ;;  %v3027_v23 = vld [vmem:[%s2494_s9 + $0x458] sm:$0xff]  ;;  %5579 = vst [vmem:[#allocation70_spill] sm:$0xff] %v3030_v17  ;;  %v510_v13 = vadd.f32 %v509_v4, %v2992_v25  ;;  %v3042_v1 = vld [vmem:[%s2494_s9 + $0x3e0] sm:$0xff]  ;;  %v502_v61 = vadd.f32 %v501_v19, %v3004_v38  ;;  %v565_v19 = vmul.f32 %v2609_v28, %v2609_v28 }
  0x8c   : > { %5578 = vst [vmem:[#allocation69_spill] sm:$0xff] %v3027_v23  ;;  %v3038_v42 = vld [vmem:[%s2494_s9 + $0x418] sm:$0xff]  ;;  %v3046_v60 = vld [vmem:[%s2494_s9 + $0x468] sm:$0xff]  ;;  %v522_v27 = vadd.f32 %v3027_v23, %v3024_v59  ;;  %v3052_v50 = vld [vmem:[%s2494_s9 + $0x420] sm:$0xff]  ;;  %v566_v38 = vmul.f32 %v2612_v31, %v2612_v31  ;;  %499 = vadd.xlane.f32.xlu1 %v498_v14  ;;  %v491_v16 = vadd.f32 %v490_v46, %v3011_v43 }
  0x8d   : > { %5580 = vst [vmem:[#allocation71_spill] sm:$0xff] %v3052_v50  ;;  %v3055_v62 = vld [vmem:[%s2494_s9 + $0x428] sm:$0xff]  ;;  %v3058_v4 = vld [vmem:[%s2494_s9 + $0x430] sm:$0xff]  ;;  %v511_v23 = vadd.f32 %v510_v13, %v3014_v12  ;;  %v503_v8 = vadd.f32 %v502_v61, %v3018_v21  ;;  %v3077_v25 = vld [vmem:[%s2494_s9 + $0x438] sm:$0xff]  ;;  %v576_v31 = vmul.f32 %v2645_v63, %v2645_v63  ;;  %v724_v61 = vadd.f32 %v723_v24, %v574_v35 }
  0x8e   : > { %5581 = vst [vmem:[#allocation72_spill] sm:$0xff] %v3055_v62  ;;  %v523_v58 = vadd.f32 %v522_v27, %v3030_v17  ;;  %v515_v59 = vadd.f32 %v3055_v62, %v3052_v50  ;;  %v3071_v3 = vld [vmem:[%s2494_s9 + $0x3e8] sm:$0xff]  ;;  %v3074_v28 = vld [vmem:[%s2494_s9 + $0x470] sm:$0xff]  ;;  %v567_v13 = vmul.f32 %v2615_v32, %v2615_v32  ;;  %492 = vadd.xlane.f32.xlu0 %v491_v16  ;;  %v3088_v50 = vld [vmem:[%s2494_s9 + $0x478] sm:$0xff] }
  0x8f   : > { %v512_v27 = vadd.f32 %v511_v23, %v3038_v42  ;;  %v504_v14 = vadd.f32 %v503_v8, %v3042_v1  ;;  %v3091_v17 = vld [vmem:[%s2494_s9 + $0x440] sm:$0xff]  ;;  %v3094_v63 = vadd.f32 %v704_v5, %v2978_v6  ;;  %v568_v32 = vmul.f32 %v2627_v48, %v2627_v48  ;;  %v3106_v16 = vld [vmem:[%s2494_s9 + $0x448] sm:$0xff] }
  0x90   : > { %v524_v46 = vadd.f32 %v523_v58, %v3046_v60  ;;  %v516_v62 = vadd.f32 %v515_v59, %v3058_v4  ;;  %v715_v35 = vadd.f32 %v566_v38, %v565_v19  ;;  %v583_v23 = vmul.f32 %v2633_v37, %v2633_v37 }
  0x91   : > { %v505_v24 = vadd.f32 %v504_v14, %v3071_v3  ;;  %v584_v58 = vmul.f32 %v2636_v51, %v2636_v51  ;;  %513 = vadd.xlane.f32.xlu1 %v512_v27  ;;  %v725_v6 = vadd.f32 %v724_v61, %v575_v44  ;;  %v569_v48 = vmul.f32 %v2649_v2, %v2649_v2  ;;  %v5582_v27 = vld [vmem:[#allocation12_spill] sm:$0xff]  ;;  %v5583_v61 = vld [vmem:[#allocation13_spill] sm:$0xff] }
  0x92   : > { %v525_v8 = vadd.f32 %v524_v46, %v3074_v28  ;;  %v517_v59 = vadd.f32 %v516_v62, %v3077_v25  ;;  %v716_v38 = vadd.f32 %v715_v35, %v567_v13  ;;  %v585_v37 = vmul.f32 %v2639_v53, %v2639_v53  ;;  %v5584_v13 = vld [vmem:[#allocation14_spill] sm:$0xff] }
  0x93   : > { %v586_v62 = vmul.f32 %v2656_v49, %v2656_v49  ;;  %v736_v14 = vadd.f32 %v584_v58, %v583_v23  ;;  %506 = vadd.xlane.f32.xlu0 %v505_v24  ;;  %v577_v44 = vmul.f32 %v5582_v27, %v5582_v27  ;;  %v578_v2 = vmul.f32 %v5583_v61, %v5583_v61 }
  0x94   : > { %v526_v5 = vadd.f32 %v525_v8, %v3088_v50  ;;  %v518_v19 = vadd.f32 %v517_v59, %v3091_v17  ;;  %v717_v51 = vadd.f32 %v716_v38, %v568_v32  ;;  %v579_v46 = vmul.f32 %v5584_v13, %v5584_v13  ;;  %v5585_v59 = vld [vmem:[#allocation15_spill] sm:$0xff] }
  0x95   : > { %v570_v35 = vmul.f32 %v2668_v29, %v2668_v29  ;;  %v587_v49 = vmul.f32 %v2672_v41, %v2672_v41  ;;  %v737_v23 = vadd.f32 %v736_v14, %v585_v37  ;;  %v580_v24 = vmul.f32 %v2700_v57, %v2700_v57 }
  0x96   : > { %v519_v53 = vadd.f32 %v518_v19, %v3106_v16  ;;  %527 = vadd.xlane.f32.xlu1 %v526_v5  ;;  %v718_v32 = vadd.f32 %v717_v51, %v569_v48  ;;  %v729_v8 = vadd.f32 %v578_v2, %v577_v44  ;;  %v595_v58 = vmul.f32 %v5585_v59, %v5585_v59  ;;  %v5586_v19 = vld [vmem:[#allocation16_spill] sm:$0xff]  ;;  %v5589_v51 = vld [vmem:[#allocation19_spill] sm:$0xff]  ;;  %v5590_v44 = vld [vmem:[#allocation21_spill] sm:$0xff] }
  0x97   : > { %v3131_v38 = vadd.f32 %v725_v6, %v576_v31  ;;  %v738_v27 = vadd.f32 %v737_v23, %v586_v62  ;;  %v596_v61 = vmul.f32 %v5586_v19, %v5586_v19  ;;  %v597_v29 = vmul.f32 %v2690_v39, %v2690_v39  ;;  %v5587_v31 = vld [vmem:[#allocation17_spill] sm:$0xff]  ;;  %v5588_v62 = vld [vmem:[#allocation18_spill] sm:$0xff] }
  0x98   : > { %520 = vadd.xlane.f32.xlu0 %v519_v53  ;;  %v588_v41 = vmul.f32 %v2679_v34, %v2679_v34  ;;  %v581_v57 = vmul.f32 %v2703_v40, %v2703_v40  ;;  %v582_v48 = vmul.f32 %v2727_v15, %v2727_v15  ;;  %v730_v37 = vadd.f32 %v729_v8, %v579_v46  ;;  %v5591_v40 = vld [vmem:[#allocation20_spill] sm:$0xff]  ;;  %v5592_v59 = vld [vmem:[#allocation29_spill] sm:$0xff]  ;;  %v5593_v19 = vld [vmem:[#allocation22_spill] sm:$0xff] }
  0x99   : > { %v598_v6 = vmul.f32 %v5587_v31, %v5587_v31  ;;  %v750_v5 = vadd.f32 %v596_v61, %v595_v58  ;;  %v589_v14 = vmul.f32 %v5588_v62, %v5588_v62  ;;  %v590_v39 = vmul.f32 %v5589_v51, %v5589_v51  ;;  %v5597_v31 = vld [vmem:[#allocation25_spill] sm:$0xff] }
  0x9a   : > { %685 = vadd.xlane.f32.xlu1 %v5590_v44  ;;  %v719_v34 = vadd.f32 %v718_v32, %v570_v35  ;;  %v739_v2 = vadd.f32 %v738_v27, %v587_v49  ;;  %v731_v13 = vadd.f32 %v730_v37, %v580_v24  ;;  %v591_v53 = vmul.f32 %v5591_v40, %v5591_v40  ;;  %v5594_v35 = vld [vmem:[#allocation23_spill] sm:$0xff]  ;;  %v5595_v32 = vld [vmem:[#allocation24_spill] sm:$0xff] }
  0x9b   : > { %v599_v15 = vmul.f32 %v2730_v33, %v2730_v33  ;;  %v751_v46 = vadd.f32 %v750_v5, %v597_v29  ;;  %v592_v23 = vmul.f32 %v2734_v0, %v2734_v0  ;;  %v743_v8 = vadd.f32 %v590_v39, %v589_v14  ;;  %v5596_v37 = vld [vmem:[#allocation32_spill] sm:$0xff]  ;;  %v5598_v14 = vld [vmem:[#allocation26_spill] sm:$0xff] }
  0x9c   : > { %678 = vadd.xlane.f32.xlu0 %v5592_v59  ;;  %v732_v58 = vadd.f32 %v731_v13, %v581_v57  ;;  %v607_v61 = vmul.f32 %v5593_v19, %v5593_v19  ;;  %v608_v49 = vmul.f32 %v5594_v35, %v5594_v35  ;;  %v609_v24 = vmul.f32 %v5595_v32, %v5595_v32  ;;  %v5599_v13 = vld [vmem:[#allocation27_spill] sm:$0xff]  ;;  %v5603_v19 = vld [vmem:[#allocation34_spill] sm:$0xff]  ;;  %v5604_v35 = vld [vmem:[#allocation33_spill] sm:$0xff] }
  0x9d   : > { %v600_v33 = vmul.f32 %v2754_v52, %v2754_v52  ;;  %v752_v27 = vadd.f32 %v751_v46, %v598_v6  ;;  %v593_v0 = vmul.f32 %v2758_v18, %v2758_v18  ;;  %v744_v29 = vadd.f32 %v743_v8, %v591_v53  ;;  %v5600_v6 = vld [vmem:[#allocation28_spill] sm:$0xff]  ;;  %v5601_v8 = vld [vmem:[#allocation30_spill] sm:$0xff] }
  0x9e   : > { %699 = vadd.xlane.f32.xlu1 %v5596_v37  ;;  %v740_v57 = vadd.f32 %v739_v2, %v588_v41  ;;  %v610_v5 = vmul.f32 %v5597_v31, %v5597_v31  ;;  %v764_v62 = vadd.f32 %v608_v49, %v607_v61  ;;  %v601_v51 = vmul.f32 %v5598_v14, %v5598_v14  ;;  %v5605_v49 = vld [vmem:[#allocation35_spill] sm:$0xff]  ;;  %v5608_v37 = vld [vmem:[#allocation37_spill] sm:$0xff]  ;;  %v5609_v14 = vld [vmem:[#allocation38_spill] sm:$0xff] }
  0x9f   : > { %v753_v39 = vadd.f32 %v752_v27, %v599_v15  ;;  %v745_v44 = vadd.f32 %v744_v29, %v592_v23  ;;  %v602_v52 = vmul.f32 %v5599_v13, %v5599_v13  ;;  %v603_v40 = vmul.f32 %v5600_v6, %v5600_v6 }
  0xa0   : > { %692 = vadd.xlane.f32.xlu0 %v2890_v22  ;;  %v733_v18 = vadd.f32 %v732_v58, %v582_v48  ;;  %v594_v41 = vmul.f32 %v2784_v20, %v2784_v20  ;;  %v611_v2 = vmul.f32 %v2788_v9, %v2788_v9  ;;  %v765_v53 = vadd.f32 %v764_v62, %v609_v24  ;;  %v5602_v58 = vld [vmem:[#allocation31_spill] sm:$0xff] }
  0xa1   : > { %v746_v46 = vadd.f32 %v745_v44, %v593_v0  ;;  %v604_v15 = vmul.f32 %v2795_v56, %v2795_v56  ;;  %v757_v23 = vadd.f32 %v602_v52, %v601_v51  ;;  %v619_v59 = vmul.f32 %v5601_v8, %v5601_v8  ;;  %v5607_v0 = vld [vmem:[#allocation36_spill] sm:$0xff] }
  0xa2   : > { %713 = vadd.xlane.f32.xlu1 %v3006_v47  ;;  %v612_v22 = vmul.f32 %v2810_v45, %v2810_v45  ;;  %v766_v48 = vadd.f32 %v765_v53, %v610_v5  ;;  %v620_v20 = vmul.f32 %v5602_v58, %v5602_v58  ;;  %v621_v9 = vmul.f32 %v5603_v19, %v5603_v19  ;;  %v5606_v47 = vld [vmem:[#allocation39_spill] sm:$0xff]  ;;  %v5610_v44 = vld [vmem:[#allocation40_spill] sm:$0xff]  ;;  %v5615_v19 = vld [vmem:[#allocation46_spill] sm:$0xff] }
  0xa3   : > { %v754_v61 = vadd.f32 %v753_v39, %v600_v33  ;;  %v605_v56 = vmul.f32 %v5604_v35, %v5604_v35  ;;  %v606_v32 = vmul.f32 %v5605_v49, %v5605_v49  ;;  %v758_v24 = vadd.f32 %v757_v23, %v603_v40  ;;  %v5611_v40 = vld [vmem:[#allocation41_spill] sm:$0xff] }
  0xa4   : > { %706 = vadd.xlane.f32.xlu0 %v3094_v63  ;;  %v622_v45 = vmul.f32 %v5606_v47, %v5606_v47  ;;  %v778_v27 = vadd.f32 %v620_v20, %v619_v59  ;;  %v613_v29 = vmul.f32 %v5607_v0, %v5607_v0  ;;  %v614_v31 = vmul.f32 %v5608_v37, %v5608_v37 }
  0xa5   : > { %v747_v33 = vadd.f32 %v746_v46, %v594_v41  ;;  %v767_v5 = vadd.f32 %v766_v48, %v611_v2  ;;  %v759_v62 = vadd.f32 %v758_v24, %v604_v15  ;;  %v615_v51 = vmul.f32 %v5609_v14, %v5609_v14  ;;  %v5612_v41 = vld [vmem:[#allocation42_spill] sm:$0xff]  ;;  %v5613_v46 = vld [vmem:[#allocation43_spill] sm:$0xff]  ;;  %v5614_v48 = vld [vmem:[#allocation45_spill] sm:$0xff] }
  0xa6   : > { %727 = vadd.xlane.f32.xlu1 %v3131_v38  ;;  %v623_v63 = vmul.f32 %v2844_v55, %v2844_v55  ;;  %v779_v39 = vadd.f32 %v778_v27, %v621_v9  ;;  %v616_v13 = vmul.f32 %v5610_v44, %v5610_v44  ;;  %v771_v52 = vadd.f32 %v614_v31, %v613_v29  ;;  %v5617_v24 = vld [vmem:[#allocation48_spill] sm:$0xff]  ;;  %v5619_v27 = vld [vmem:[#allocation50_spill] sm:$0xff]  ;;  %v5620_v31 = vld [vmem:[#allocation51_spill] sm:$0xff] }
  0xa7   : > { %v760_v6 = vadd.f32 %v759_v62, %v605_v56  ;;  %v631_v53 = vmul.f32 %v5611_v40, %v5611_v40  ;;  %v632_v2 = vmul.f32 %v5612_v41, %v5612_v41  ;;  %v633_v15 = vmul.f32 %v5613_v46, %v5613_v46  ;;  %v5621_v62 = vld [vmem:[#allocation52_spill] sm:$0xff] }
  0xa8   : > { %720 = vadd.xlane.f32.xlu0 %v719_v34  ;;  %v624_v38 = vmul.f32 %v2868_v7, %v2868_v7  ;;  %v780_v55 = vadd.f32 %v779_v39, %v622_v45  ;;  %v617_v23 = vmul.f32 %v2871_v54, %v2871_v54  ;;  %v772_v8 = vadd.f32 %v771_v52, %v615_v51  ;;  %v5616_v34 = vld [vmem:[#allocation47_spill] sm:$0xff]  ;;  %v5618_v54 = vld [vmem:[#allocation49_spill] sm:$0xff] }
  0xa9   : > { %v768_v59 = vadd.f32 %v767_v5, %v612_v22  ;;  %v634_v58 = vmul.f32 %v5614_v48, %v5614_v48  ;;  %v792_v20 = vadd.f32 %v632_v2, %v631_v53  ;;  %v625_v9 = vmul.f32 %v5615_v19, %v5615_v19  ;;  %v5622_v51 = vld [vmem:[#allocation55_spill] sm:$0xff]  ;;  %v5623_v39 = vld [vmem:[#allocation53_spill] sm:$0xff] }
  0xaa   : > { %741 = vadd.xlane.f32.xlu1 %v740_v57  ;;  %v781_v35 = vadd.f32 %v780_v55, %v623_v63  ;;  %v773_v56 = vadd.f32 %v772_v8, %v616_v13  ;;  %v626_v49 = vmul.f32 %v5616_v34, %v5616_v34  ;;  %v627_v47 = vmul.f32 %v5617_v24, %v5617_v24  ;;  %v5624_v13 = vld [vmem:[#allocation54_spill] sm:$0xff]  ;;  %v5626_v2 = vld [vmem:[#allocation57_spill] sm:$0xff]  ;;  %v5628_v8 = vld [vmem:[#allocation59_spill] sm:$0xff] }
  0xab   : > { %v761_v45 = vadd.f32 %v760_v6, %v606_v32  ;;  %v618_v22 = vmul.f32 %v5618_v54, %v5618_v54  ;;  %v635_v0 = vmul.f32 %v5619_v27, %v5619_v27  ;;  %v793_v29 = vadd.f32 %v792_v20, %v633_v15  ;;  %v5625_v6 = vld [vmem:[#allocation56_spill] sm:$0xff]  ;;  %v5627_v55 = vld [vmem:[#allocation58_spill] sm:$0xff] }
  0xac   : > { %734 = vadd.xlane.f32.xlu0 %v733_v18  ;;  %v774_v37 = vadd.f32 %v773_v56, %v617_v23  ;;  %v628_v57 = vmul.f32 %v5620_v31, %v5620_v31  ;;  %v785_v5 = vadd.f32 %v626_v49, %v625_v9  ;;  %v643_v14 = vmul.f32 %v5621_v62, %v5621_v62  ;;  %v5629_v20 = vld [vmem:[#allocation60_spill] sm:$0xff]  ;;  %v5630_v49 = vld [vmem:[#allocation61_spill] sm:$0xff] }
  0xad   : > { %v636_v63 = vmul.f32 %v5622_v51, %v5622_v51  ;;  %v794_v32 = vadd.f32 %v793_v29, %v634_v58  ;;  %v644_v44 = vmul.f32 %v5623_v39, %v5623_v39  ;;  %v645_v52 = vmul.f32 %v5624_v13, %v5624_v13  ;;  %v4007_v54 = vld [vmem:[%s2494_s9 + $0x308] sm:$0xff] }
  0xae   : > { %755 = vadd.xlane.f32.xlu1 %v754_v61  ;;  %v782_v18 = vadd.f32 %v781_v35, %v624_v38  ;;  %v629_v40 = vmul.f32 %v5625_v6, %v5625_v6  ;;  %v630_v53 = vmul.f32 %v2950_v10, %v2950_v10  ;;  %v786_v41 = vadd.f32 %v785_v5, %v627_v47  ;;  %v5634_v5 = vld [vmem:[#allocation65_spill] sm:$0xff] }
  0xaf   : > { %v646_v46 = vmul.f32 %v5626_v2, %v5626_v2  ;;  %v806_v15 = vadd.f32 %v644_v44, %v643_v14  ;;  %v637_v23 = vmul.f32 %v5627_v55, %v5627_v55  ;;  %v638_v48 = vmul.f32 %v5628_v8, %v5628_v8  ;;  %5744 = vst [vmem:[#allocation116_spill] sm:$0xff] %v4007_v54 }
  0xb0   : > { %748 = vadd.xlane.f32.xlu0 %v747_v33  ;;  %v775_v61 = vadd.f32 %v774_v37, %v618_v22  ;;  %v795_v38 = vadd.f32 %v794_v32, %v635_v0  ;;  %v787_v58 = vadd.f32 %v786_v41, %v628_v57  ;;  %v639_v19 = vmul.f32 %v5629_v20, %v5629_v20  ;;  %v5631_v33 = vld [vmem:[#allocation62_spill] sm:$0xff]  ;;  %v5632_v22 = vld [vmem:[#allocation63_spill] sm:$0xff]  ;;  %v5633_v37 = vld [vmem:[#allocation64_spill] sm:$0xff] }
  0xb1   : > { %v647_v10 = vmul.f32 %v2954_v36, %v2954_v36  ;;  %v807_v9 = vadd.f32 %v806_v15, %v645_v52  ;;  %v640_v35 = vmul.f32 %v2986_v26, %v2986_v26  ;;  %v799_v56 = vadd.f32 %v638_v48, %v637_v23  ;;  %v5635_v32 = vld [vmem:[#allocation66_spill] sm:$0xff]  ;;  %v5637_v41 = vld [vmem:[#allocation68_spill] sm:$0xff] }
  0xb2   : > { %769 = vadd.xlane.f32.xlu1 %v768_v59  ;;  %v788_v34 = vadd.f32 %v787_v58, %v629_v40  ;;  %v655_v24 = vmul.f32 %v5630_v49, %v5630_v49  ;;  %v656_v47 = vmul.f32 %v5631_v33, %v5631_v33  ;;  %v657_v27 = vmul.f32 %v5632_v22, %v5632_v22  ;;  %v5639_v15 = vld [vmem:[#allocation70_spill] sm:$0xff]  ;;  %v5641_v58 = vld [vmem:[#allocation72_spill] sm:$0xff] }
  0xb3   : > { %v648_v0 = vmul.f32 %v2961_v11, %v2961_v11  ;;  %v808_v36 = vadd.f32 %v807_v9, %v646_v46  ;;  %v641_v29 = vmul.f32 %v2989_v30, %v2989_v30  ;;  %v800_v26 = vadd.f32 %v799_v56, %v639_v19  ;;  %v5636_v11 = vld [vmem:[#allocation67_spill] sm:$0xff]  ;;  %v5638_v46 = vld [vmem:[#allocation69_spill] sm:$0xff] }
  0xb4   : > { %762 = vadd.xlane.f32.xlu0 %v761_v45  ;;  %v796_v59 = vadd.f32 %v795_v38, %v636_v63  ;;  %v658_v31 = vmul.f32 %v5633_v37, %v5633_v37  ;;  %v820_v57 = vadd.f32 %v656_v47, %v655_v24  ;;  %v649_v62 = vmul.f32 %v5634_v5, %v5634_v5  ;;  %v5640_v38 = vld [vmem:[#allocation71_spill] sm:$0xff] }
  0xb5   : > { %v809_v14 = vadd.f32 %v808_v36, %v647_v10  ;;  %v801_v51 = vadd.f32 %v800_v26, %v640_v35  ;;  %v650_v39 = vmul.f32 %v5635_v32, %v5635_v32  ;;  %v651_v44 = vmul.f32 %v5636_v11, %v5636_v11 }
  0xb6   : > { %783 = vadd.xlane.f32.xlu1 %v782_v18  ;;  %v789_v30 = vadd.f32 %v788_v34, %v630_v53  ;;  %v642_v45 = vmul.f32 %v3011_v43, %v3011_v43  ;;  %v659_v63 = vmul.f32 %v3014_v12, %v3014_v12  ;;  %v821_v13 = vadd.f32 %v820_v57, %v657_v27 }
  0xb7   : > { %v802_v52 = vadd.f32 %v801_v51, %v641_v29  ;;  %v652_v6 = vmul.f32 %v3018_v21, %v3018_v21  ;;  %v813_v40 = vadd.f32 %v650_v39, %v649_v62  ;;  %v667_v2 = vmul.f32 %v5637_v41, %v5637_v41  ;;  %v1009_v51 = vld [vmem:[#allocation5] sm:$0x3f] }
  0xb8   : > { %776 = vadd.xlane.f32.xlu0 %v775_v61  ;;  %v660_v18 = vmul.f32 %v3038_v42, %v3038_v42  ;;  %v822_v53 = vadd.f32 %v821_v13, %v658_v31  ;;  %v668_v43 = vmul.f32 %v5638_v46, %v5638_v46  ;;  %v669_v12 = vmul.f32 %v5639_v15, %v5639_v15 }
  0xb9   : > { %v810_v55 = vadd.f32 %v809_v14, %v648_v0  ;;  %v653_v23 = vmul.f32 %v3042_v1, %v3042_v1  ;;  %v814_v21 = vadd.f32 %v813_v40, %v651_v44  ;;  %v670_v8 = vmul.f32 %v3046_v60, %v3046_v60 }
  0xba   : > { %797 = vadd.xlane.f32.xlu1 %v796_v59  ;;  %v823_v48 = vadd.f32 %v822_v53, %v659_v63  ;;  %v834_v61 = vadd.f32 %v668_v43, %v667_v2  ;;  %v661_v42 = vmul.f32 %v5640_v38, %v5640_v38  ;;  %v662_v20 = vmul.f32 %v5641_v58, %v5641_v58  ;;  %v1010_v63 = vld [vmem:[#allocation7] sm:$0x3f]  ;;  %v3365_v58 = vld [vmem:[%s2494_s9 + $0x70] sm:$0xff] }
  0xbb   : > { %v803_v19 = vadd.f32 %v802_v52, %v642_v45  ;;  %v654_v10 = vmul.f32 %v3071_v3, %v3071_v3  ;;  %v815_v9 = vadd.f32 %v814_v21, %v652_v6  ;;  %v663_v1 = vmul.f32 %v3058_v4, %v3058_v4  ;;  %v3360_v38 = vld [vmem:[%s2494_s9 + $0x68] sm:$0xff]  ;;  %5645 = vst [vmem:[#allocation15_spill] sm:$0xff] %v3365_v58  ;;  %v3588_v58 = vld [vmem:[%s2494_s9 + $0x158] sm:$0xff] }
  0xbc   : > { %790 = vadd.xlane.f32.xlu0 %v789_v30  ;;  %v671_v60 = vmul.f32 %v3074_v28, %v3074_v28  ;;  %v835_v35 = vadd.f32 %v834_v61, %v669_v12  ;;  %v664_v56 = vmul.f32 %v3077_v25, %v3077_v25  ;;  %v827_v34 = vadd.f32 %v662_v20, %v661_v42  ;;  %v3470_v20 = vld [vmem:[%s2494_s9 + $0x30] sm:$0xff]  ;;  %v3475_v61 = vld [vmem:[%s2494_s9 + $0x38] sm:$0xff] }
  0xbd   : > { %v816_v49 = vadd.f32 %v815_v9, %v653_v23  ;;  %v672_v24 = vmul.f32 %v3088_v50, %v3088_v50  ;;  %v824_v33 = vadd.f32 %v823_v48, %v660_v18  ;;  %v665_v47 = vmul.f32 %v3091_v17, %v3091_v17  ;;  %v3355_v48 = vld [vmem:[%s2494_s9 + $0x60] sm:$0xff]  ;;  %5644 = vst [vmem:[#allocation14_spill] sm:$0xff] %v3360_v38  ;;  %v3374_v9 = vld [vmem:[%s2494_s9 + $0x78] sm:$0xff]  ;;  %v3628_v38 = vld [vmem:[%s2494_s9 + $0x130] sm:$0xff] }
  0xbe   : > { %811 = vadd.xlane.f32.xlu1 %v810_v55  ;;  %v836_v3 = vadd.f32 %v835_v35, %v670_v8  ;;  %v828_v4 = vadd.f32 %v827_v34, %v663_v1  ;;  %v666_v28 = vmul.f32 %v3106_v16, %v3106_v16  ;;  %v1012_v17 = vlaneseq  ;;  %5643 = vst [vmem:[#allocation13_spill] sm:$0xff] %v3355_v48  ;;  %5646 = vst [vmem:[#allocation16_spill] sm:$0xff] %v3374_v9  ;;  %v3457_v34 = vld [vmem:[%s2494_s9 + $0xb8] sm:$0xff]  ;;  %v3518_v35 = vld [vmem:[%s2494_s9 + $0x100] sm:$0xff] }
  0xbf   : > { %v817_v22 = vadd.f32 %v816_v49, %v654_v10  ;;  %5654 = vst [vmem:[#allocation23_spill] sm:$0xff] %v3457_v34  ;;  %5659 = vst [vmem:[#allocation27_spill] sm:$0xff] %v3518_v35  ;;  %v3568_v9 = vld [vmem:[%s2494_s9 + $0xd8] sm:$0xff]  ;;  %v3763_v34 = vld [vmem:[%s2494_s9 + $0x228] sm:$0xff] }
  0xc0   : > { %804 = vadd.xlane.f32.xlu0 %v803_v19  ;;  %v837_v27 = vadd.f32 %v836_v3, %v671_v60  ;;  %v829_v0 = vadd.f32 %v828_v4, %v664_v56  ;;  %v1013_v5 = vshrl.u32 %v1012_v17, 7  ;;  %v3379_v60 = vld [vmem:[%s2494_s9 + $0x80] sm:$0xff]  ;;  %v3384_v56 = vld [vmem:[%s2494_s9 + $0x88] sm:$0xff]  ;;  %v3403_v4 = vld [vmem:[%s2494_s9 + $0x10] sm:$0xff]  ;;  %5667 = vst [vmem:[#allocation36_spill] sm:$0xff] %v3568_v9 }
  0xc1   : > { %5647 = vst [vmem:[#allocation17_spill] sm:$0xff] %v3379_v60  ;;  %5648 = vst [vmem:[#allocation18_spill] sm:$0xff] %v3384_v56  ;;  %v3398_v3 = vld [vmem:[%s2494_s9 + $0x8] sm:$0xff]  ;;  %v3432_v17 = vld [vmem:[%s2494_s9 + $0x98] sm:$0xff] }
  0xc2   : > { %825 = vadd.xlane.f32.xlu1 %v824_v33  ;;  %v838_v25 = vadd.f32 %v837_v27, %v672_v24  ;;  %v830_v36 = vadd.f32 %v829_v0, %v665_v47  ;;  %v1014_v14 = vsub.s32 0, %v1013_v5  ;;  %v1018_v32 = vsub.s32 1, %v1013_v5  ;;  %v3393_v24 = vld [vmem:[%s2494_s9] sm:$0xff]  ;;  %v3412_v0 = vld [vmem:[%s2494_s9 + $0x18] sm:$0xff]  ;;  %5649 = vst [vmem:[#allocation19_spill] sm:$0xff] %v3432_v17  ;;  %v3508_v33 = vld [vmem:[%s2494_s9 + $0xf0] sm:$0xff] }
  0xc3   : > { %v1022_v39 = vsub.s32 2, %v1013_v5  ;;  %v1026_v11 = vsub.s32 3, %v1013_v5  ;;  %v1030_v44 = vsub.s32 4, %v1013_v5  ;;  %v1034_v45 = vsub.s32 5, %v1013_v5  ;;  %5657 = vst [vmem:[#allocation25_spill] sm:$0xff] %v3508_v33  ;;  %5671 = vst [vmem:[#allocation41_spill] sm:$0xff] %v3588_v58 }
  0xc4   : > { %818 = vadd.xlane.f32.xlu0 %v817_v22  ;;  %v831_v29 = vadd.f32 %v830_v36, %v666_v28  ;;  %v3326_v6 = vrot.slane %v1009_v51, %v1014_v14  ;;  %v3328_v40 = vrot.slane %v1009_v51, %v1018_v32  ;;  %v3342_v15 = vrot.slane %v1010_v63, %v1014_v14  ;;  %v3417_v36 = vld [vmem:[%s2494_s9 + $0x20] sm:$0xff]  ;;  %v3500_v22 = vld [vmem:[%s2494_s9 + $0x58] sm:$0xff] }
  0xc5   : > { %v3330_v41 = vrot.slane %v1009_v51, %v1022_v39  ;;  %v3332_v2 = vrot.slane %v1009_v51, %v1026_v11  ;;  %v3334_v18 = vrot.slane %v1009_v51, %v1030_v44  ;;  %v3340_v43 = vrot.slane %v1009_v51, %v1034_v45  ;;  %v3437_v14 = vld [vmem:[%s2494_s9 + $0xa0] sm:$0xff]  ;;  %v3613_v58 = vld [vmem:[%s2494_s9 + $0x178] sm:$0xff]  ;;  %5679 = vst [vmem:[#allocation51_spill] sm:$0xff] %v3628_v38 }
  0xc6   : > { %839 = vadd.xlane.f32.xlu1 %v838_v25  ;;  %v3344_v12 = vrot.slane %v1010_v63, %v1018_v32  ;;  %v3348_v23 = vrot.slane %v1010_v63, %v1022_v39  ;;  %v3350_v21 = vrot.slane %v1010_v63, %v1026_v11  ;;  %v3352_v8 = vrot.slane %v1010_v63, %v1030_v44  ;;  %v3442_v32 = vld [vmem:[%s2494_s9 + $0xa8] sm:$0xff]  ;;  %v3513_v39 = vld [vmem:[%s2494_s9 + $0xf8] sm:$0xff]  ;;  %v3593_v9 = vld [vmem:[%s2494_s9 + $0x160] sm:$0xff] }
  0xc7   : > { %v3371_v10 = vrot.slane %v1010_v63, %v1034_v45  ;;  %5650 = vst [vmem:[#allocation21_spill] sm:$0xff] %v3437_v14  ;;  %5651 = vst [vmem:[#allocation20_spill] sm:$0xff] %v3442_v32  ;;  %v3452_v45 = vld [vmem:[%s2494_s9 + $0xb0] sm:$0xff]  ;;  %v3480_v63 = vld [vmem:[%s2494_s9 + $0x40] sm:$0xff] }
  0xc8   : > { %832 = vadd.xlane.f32.xlu0 %v831_v29  ;;  %5653 = vst [vmem:[#allocation22_spill] sm:$0xff] %v3452_v45  ;;  %v3495_v29 = vld [vmem:[%s2494_s9 + $0x50] sm:$0xff]  ;;  %5658 = vst [vmem:[#allocation26_spill] sm:$0xff] %v3513_v39  ;;  %v3535_v39 = vld [vmem:[%s2494_s9 + $0x118] sm:$0xff] }
  0xc9   : > { %5662 = vst [vmem:[#allocation31_spill] sm:$0xff] %v3535_v39  ;;  %v3557_v39 = vld [vmem:[%s2494_s9 + $0xd0] sm:$0xff]  ;;  %5672 = vst [vmem:[#allocation42_spill] sm:$0xff] %v3593_v9  ;;  %v3618_v9 = vld [vmem:[%s2494_s9 + $0x120] sm:$0xff] }
  0xca   : > { %5666 = vst [vmem:[#allocation39_spill] sm:$0xff] %v3557_v39  ;;  %v3583_v39 = vld [vmem:[%s2494_s9 + $0x150] sm:$0xff]  ;;  %5676 = vst [vmem:[#allocation47_spill] sm:$0xff] %v3613_v58  ;;  %v3638_v58 = vld [vmem:[%s2494_s9 + $0x140] sm:$0xff] }
  0xcb   : > { %5670 = vst [vmem:[#allocation40_spill] sm:$0xff] %v3583_v39  ;;  %5677 = vst [vmem:[#allocation48_spill] sm:$0xff] %v3618_v9  ;;  %v3648_v9 = vld [vmem:[%s2494_s9 + $0x148] sm:$0xff]  ;;  %v3670_v25 = vld [vmem:[%s2494_s9 + $0x1b8] sm:$0xff] }
  0xcc   : > { %5681 = vst [vmem:[#allocation55_spill] sm:$0xff] %v3638_v58  ;;  %5683 = vst [vmem:[#allocation54_spill] sm:$0xff] %v3648_v9  ;;  %v3665_v58 = vld [vmem:[%s2494_s9 + $0x1b0] sm:$0xff]  ;;  %v3675_v38 = vld [vmem:[%s2494_s9 + $0x1c0] sm:$0xff] }
  0xcd   : > { %5684 = vst [vmem:[#allocation56_spill] sm:$0xff] %v3665_v58  ;;  %5685 = vst [vmem:[#allocation57_spill] sm:$0xff] %v3670_v25  ;;  %v3690_v58 = vld [vmem:[%s2494_s9 + $0x1d0] sm:$0xff]  ;;  %v3695_v25 = vld [vmem:[%s2494_s9 + $0x1d8] sm:$0xff] }
  0xce   : > { %5686 = vst [vmem:[#allocation58_spill] sm:$0xff] %v3675_v38  ;;  %5689 = vst [vmem:[#allocation61_spill] sm:$0xff] %v3690_v58  ;;  %v3703_v38 = vld [vmem:[%s2494_s9 + $0x180] sm:$0xff]  ;;  %v3713_v58 = vld [vmem:[%s2494_s9 + $0x190] sm:$0xff] }
  0xcf   : > { %5690 = vst [vmem:[#allocation62_spill] sm:$0xff] %v3695_v25  ;;  %5692 = vst [vmem:[#allocation64_spill] sm:$0xff] %v3703_v38  ;;  %v3783_v45 = vld [vmem:[%s2494_s9 + $0x1e8] sm:$0xff]  ;;  %v3823_v32 = vld [vmem:[%s2494_s9 + $0x280] sm:$0xff] }
  0xd0   : > { %5694 = vst [vmem:[#allocation66_spill] sm:$0xff] %v3713_v58  ;;  %5702 = vst [vmem:[#allocation74_spill] sm:$0xff] %v3763_v34  ;;  %v3788_v34 = vld [vmem:[%s2494_s9 + $0x1f0] sm:$0xff]  ;;  %v3864_v9 = vld [vmem:[%s2494_s9 + $0x248] sm:$0xff] }
  0xd1   : > { %5706 = vst [vmem:[#allocation78_spill] sm:$0xff] %v3783_v45  ;;  %5707 = vst [vmem:[#allocation79_spill] sm:$0xff] %v3788_v34  ;;  %v3808_v45 = vld [vmem:[%s2494_s9 + $0x208] sm:$0xff]  ;;  %v3813_v34 = vld [vmem:[%s2494_s9 + $0x270] sm:$0xff] }
  0xd2   : > { %5710 = vst [vmem:[#allocation82_spill] sm:$0xff] %v3808_v45  ;;  %5711 = vst [vmem:[#allocation83_spill] sm:$0xff] %v3813_v34  ;;  %v3833_v45 = vld [vmem:[%s2494_s9 + $0x290] sm:$0xff]  ;;  %v3843_v34 = vld [vmem:[%s2494_s9 + $0x298] sm:$0xff] }
  0xd3   : > { %5713 = vst [vmem:[#allocation85_spill] sm:$0xff] %v3823_v32  ;;  %5715 = vst [vmem:[#allocation87_spill] sm:$0xff] %v3833_v45  ;;  %v3898_v45 = vld [vmem:[%s2494_s9 + $0x2d8] sm:$0xff]  ;;  %v3913_v14 = vld [vmem:[%s2494_s9 + $0x2f0] sm:$0xff] }
  0xd4   : > { %5717 = vst [vmem:[#allocation89_spill] sm:$0xff] %v3843_v34  ;;  %5721 = vst [vmem:[#allocation93_spill] sm:$0xff] %v3864_v9  ;;  %v3869_v34 = vld [vmem:[%s2494_s9 + $0x250] sm:$0xff]  ;;  %v3888_v9 = vld [vmem:[%s2494_s9 + $0x268] sm:$0xff] }
  0xd5   : > { %5722 = vst [vmem:[#allocation94_spill] sm:$0xff] %v3869_v34  ;;  %5726 = vst [vmem:[#allocation98_spill] sm:$0xff] %v3888_v9  ;;  %v3908_v9 = vld [vmem:[%s2494_s9 + $0x2e8] sm:$0xff]  ;;  %v3935_v17 = vld [vmem:[%s2494_s9 + $0x2b8] sm:$0xff] }
  0xd6   : > { %5728 = vst [vmem:[#allocation100_spill] sm:$0xff] %v3898_v45  ;;  %5730 = vst [vmem:[#allocation102_spill] sm:$0xff] %v3908_v9  ;;  %v3920_v45 = vld [vmem:[%s2494_s9 + $0x2a0] sm:$0xff]  ;;  %v3925_v32 = vld [vmem:[%s2494_s9 + $0x2a8] sm:$0xff] }
  0xd7   : > { %5731 = vst [vmem:[#allocation103_spill] sm:$0xff] %v3913_v14  ;;  %5732 = vst [vmem:[#allocation104_spill] sm:$0xff] %v3920_v45  ;;  %v3977_v14 = vld [vmem:[%s2494_s9 + $0x340] sm:$0xff] }
  0xd8   : > { %5733 = vst [vmem:[#allocation105_spill] sm:$0xff] %v3925_v32  ;;  %5735 = vst [vmem:[#allocation107_spill] sm:$0xff] %v3935_v17 }
  0xd9   : > { %5739 = vst [vmem:[#allocation111_spill] sm:$0xff] %v3977_v14  ;;  %v3997_v14 = vld [vmem:[%s2494_s9 + $0x358] sm:$0xff] }
  0xda   : > { %5742 = vst [vmem:[#allocation114_spill] sm:$0xff] %v3997_v14 }
  0xeb   : > { %v381_v50 = vpop.xlane.xlu1 %380 }
  0xec   : > { %v3322_v13 = vmul.f32 0.0013020834, %v381_v50  ;;  %v3422_v50 = vld [vmem:[%s2494_s9 + $0x28] sm:$0xff] }
  0xed   : > { %v367_v26 = vpop.xlane.xlu0 %366 }
  0xee   : > { %5642 = vst [vmem:[#allocation12_spill] sm:$0xff] %v3322_v13  ;;  %v3336_v53 = vmul.f32 0.0013020834, %v367_v26  ;;  %v3390_v49 = vmul.f32 %v3322_v13, %v3322_v13  ;;  %v3530_v26 = vld [vmem:[%s2494_s9 + $0x110] sm:$0xff]  ;;  %v3685_v13 = vld [vmem:[%s2494_s9 + $0x1c8] sm:$0xff] }
  0xef   : > { %v388_v59 = vpop.xlane.xlu1 %387  ;;  %5661 = vst [vmem:[#allocation30_spill] sm:$0xff] %v3530_v26  ;;  %v3552_v26 = vld [vmem:[%s2494_s9 + $0xc8] sm:$0xff]  ;;  %5688 = vst [vmem:[#allocation60_spill] sm:$0xff] %v3685_v13 }
  0xf0   : > { %v3346_v55 = vmul.f32 0.0013020834, %v388_v59  ;;  %v3427_v59 = vld [vmem:[%s2494_s9 + $0x90] sm:$0xff]  ;;  %v3463_v1 = vmul.f32 %v3336_v53, %v3336_v53  ;;  %5665 = vst [vmem:[#allocation35_spill] sm:$0xff] %v3552_v26  ;;  %v3578_v26 = vld [vmem:[%s2494_s9 + $0xe8] sm:$0xff] }
  0xf1   : > { %v374_v37 = vpop.xlane.xlu0 %373  ;;  %5669 = vst [vmem:[#allocation38_spill] sm:$0xff] %v3578_v26  ;;  %v3608_v26 = vld [vmem:[%s2494_s9 + $0x170] sm:$0xff]  ;;  %v3708_v13 = vld [vmem:[%s2494_s9 + $0x188] sm:$0xff] }
  0xf2   : > { %v3407_v27 = vmul.f32 0.0013020834, %v374_v37  ;;  %v3490_v37 = vld [vmem:[%s2494_s9 + $0x48] sm:$0xff]  ;;  %5675 = vst [vmem:[#allocation46_spill] sm:$0xff] %v3608_v26  ;;  %v3633_v26 = vld [vmem:[%s2494_s9 + $0x138] sm:$0xff]  ;;  %5693 = vst [vmem:[#allocation65_spill] sm:$0xff] %v3708_v13 }
  0xf3   : > { %v3312_v31 = vpop.xlane.xlu1 %401  ;;  %5680 = vst [vmem:[#allocation52_spill] sm:$0xff] %v3633_v26  ;;  %v3725_v26 = vld [vmem:[%s2494_s9 + $0x1a0] sm:$0xff]  ;;  %v3730_v13 = vld [vmem:[%s2494_s9 + $0x1a8] sm:$0xff] }
  0xf4   : > { %v3447_v11 = vmul.f32 0.0013020834, %v3312_v31  ;;  %v3467_v31 = vmul.f32 %v3346_v55, %v3346_v55  ;;  %v3544_v42 = vmul.f32 %v3407_v27, %v3407_v27  ;;  %5696 = vst [vmem:[#allocation68_spill] sm:$0xff] %v3725_v26  ;;  %5697 = vst [vmem:[#allocation69_spill] sm:$0xff] %v3730_v13  ;;  %v3747_v26 = vld [vmem:[%s2494_s9 + $0x218] sm:$0xff]  ;;  %v3752_v13 = vld [vmem:[%s2494_s9 + $0x220] sm:$0xff] }
  0xf5   : > { %v3314_v57 = vpop.xlane.xlu0 %394  ;;  %5700 = vst [vmem:[#allocation72_spill] sm:$0xff] %v3747_v26  ;;  %5701 = vst [vmem:[#allocation73_spill] sm:$0xff] %v3752_v13  ;;  %v3773_v26 = vld [vmem:[%s2494_s9 + $0x238] sm:$0xff]  ;;  %v3778_v13 = vld [vmem:[%s2494_s9 + $0x1e0] sm:$0xff] }
  0xf6   : > { %5652 = vst [vmem:[#allocation29_spill] sm:$0xff] %v3447_v11  ;;  %v3485_v51 = vmul.f32 0.0013020834, %v3314_v57  ;;  %v3565_v60 = vmul.f32 %v3447_v11, %v3447_v11  ;;  %5704 = vst [vmem:[#allocation76_spill] sm:$0xff] %v3773_v26  ;;  %v3803_v26 = vld [vmem:[%s2494_s9 + $0x200] sm:$0xff] }
  0xf7   : > { %v3316_v62 = vpop.xlane.xlu1 %415  ;;  %5705 = vst [vmem:[#allocation77_spill] sm:$0xff] %v3778_v13  ;;  %5709 = vst [vmem:[#allocation81_spill] sm:$0xff] %v3803_v26  ;;  %v3828_v26 = vld [vmem:[%s2494_s9 + $0x288] sm:$0xff] }
  0xf8   : > { %5655 = vst [vmem:[#allocation24_spill] sm:$0xff] %v3485_v51  ;;  %v3505_v47 = vmul.f32 0.0013020834, %v3316_v62  ;;  %v3523_v62 = vld [vmem:[%s2494_s9 + $0x108] sm:$0xff]  ;;  %v3654_v57 = vmul.f32 %v3485_v51, %v3485_v51  ;;  %5714 = vst [vmem:[#allocation86_spill] sm:$0xff] %v3828_v26 }
  0xf9   : > { %v3318_v16 = vpop.xlane.xlu0 %408  ;;  %5660 = vst [vmem:[#allocation28_spill] sm:$0xff] %v3523_v62  ;;  %v3547_v62 = vld [vmem:[%s2494_s9 + $0xc0] sm:$0xff] }
  0xfa   : > { %5656 = vst [vmem:[#allocation32_spill] sm:$0xff] %v3505_v47  ;;  %v3540_v35 = vmul.f32 0.0013020834, %v3318_v16  ;;  %5664 = vst [vmem:[#allocation33_spill] sm:$0xff] %v3547_v62  ;;  %v3573_v62 = vld [vmem:[%s2494_s9 + $0xe0] sm:$0xff]  ;;  %v3658_v16 = vmul.f32 %v3505_v47, %v3505_v47 }
  0xfb   : > { %5668 = vst [vmem:[#allocation37_spill] sm:$0xff] %v3573_v62  ;;  %v3598_v62 = vld [vmem:[%s2494_s9 + $0x168] sm:$0xff] }
  0xfc   : > { %v3320_v30 = vpop.xlane.xlu1 %429  ;;  %5663 = vst [vmem:[#allocation34_spill] sm:$0xff] %v3540_v35  ;;  %5673 = vst [vmem:[#allocation43_spill] sm:$0xff] %v3598_v62 }
  0xfd   : > { %v3603_v11 = vmul.f32 0.0013020834, %v3320_v30  ;;  %v3623_v30 = vld [vmem:[%s2494_s9 + $0x128] sm:$0xff] }
  0xfe   : > { %5678 = vst [vmem:[#allocation50_spill] sm:$0xff] %v3623_v30 }
  0xff   : > { %v3324_v52 = vpop.xlane.xlu0 %422  ;;  %5674 = vst [vmem:[#allocation45_spill] sm:$0xff] %v3603_v11  ;;  %v3739_v25 = vmul.f32 %v3603_v11, %v3603_v11 }
 0x100   : > { %v3338_v46 = vpop.xlane.xlu1 %443  ;;  %v3643_v62 = vmul.f32 0.0013020834, %v3324_v52  ;;  %v3662_v52 = vmul.f32 %v3540_v35, %v3540_v35 }
 0x101   : > { %v3680_v35 = vmul.f32 0.0013020834, %v3338_v46 }
 0x102   : > { %5682 = vst [vmem:[#allocation53_spill] sm:$0xff] %v3643_v62  ;;  %v3760_v11 = vmul.f32 %v3643_v62, %v3643_v62 }
 0x103   : > { %v3369_v19 = vpop.xlane.xlu0 %436  ;;  %5687 = vst [vmem:[#allocation59_spill] sm:$0xff] %v3680_v35  ;;  %v3852_v26 = vmul.f32 %v3680_v35, %v3680_v35 }
 0x104   : > { %v3700_v47 = vmul.f32 0.0013020834, %v3369_v19  ;;  %v3718_v19 = vld [vmem:[%s2494_s9 + $0x198] sm:$0xff] }
 0x105   : > { %v3409_v28 = vpop.xlane.xlu1 %457  ;;  %5695 = vst [vmem:[#allocation67_spill] sm:$0xff] %v3718_v19  ;;  %v3742_v19 = vld [vmem:[%s2494_s9 + $0x210] sm:$0xff] }
 0x106   : > { %5691 = vst [vmem:[#allocation63_spill] sm:$0xff] %v3700_v47  ;;  %v3735_v58 = vmul.f32 0.0013020834, %v3409_v28  ;;  %5699 = vst [vmem:[#allocation71_spill] sm:$0xff] %v3742_v19  ;;  %v3768_v19 = vld [vmem:[%s2494_s9 + $0x230] sm:$0xff]  ;;  %v3859_v28 = vld [vmem:[%s2494_s9 + $0x240] sm:$0xff] }
 0x107   : > { %5703 = vst [vmem:[#allocation75_spill] sm:$0xff] %v3768_v19  ;;  %v3793_v19 = vld [vmem:[%s2494_s9 + $0x1f8] sm:$0xff]  ;;  %5720 = vst [vmem:[#allocation92_spill] sm:$0xff] %v3859_v28  ;;  %v3883_v28 = vld [vmem:[%s2494_s9 + $0x260] sm:$0xff] }
 0x108   : > { %v3449_v44 = vpop.xlane.xlu0 %450  ;;  %5698 = vst [vmem:[#allocation70_spill] sm:$0xff] %v3735_v58  ;;  %5708 = vst [vmem:[#allocation80_spill] sm:$0xff] %v3793_v19  ;;  %v3875_v35 = vmul.f32 %v3735_v58, %v3735_v58  ;;  %v3893_v58 = vld [vmem:[%s2494_s9 + $0x2d0] sm:$0xff] }
 0x109   : > { %v3798_v62 = vmul.f32 0.0013020834, %v3449_v44  ;;  %v3818_v44 = vld [vmem:[%s2494_s9 + $0x278] sm:$0xff]  ;;  %5725 = vst [vmem:[#allocation97_spill] sm:$0xff] %v3883_v28  ;;  %5727 = vst [vmem:[#allocation99_spill] sm:$0xff] %v3893_v58  ;;  %v3903_v28 = vld [vmem:[%s2494_s9 + $0x2e0] sm:$0xff] }
 0x10a   : > { %5712 = vst [vmem:[#allocation84_spill] sm:$0xff] %v3818_v44  ;;  %5723 = vst [vmem:[#allocation95_spill] sm:$0xff] %v3875_v35  ;;  %v3940_v35 = vld [vmem:[%s2494_s9 + $0x2c0] sm:$0xff] }
 0x10b   : > { %v3487_v5 = vpop.xlane.xlu1 %471  ;;  %5729 = vst [vmem:[#allocation101_spill] sm:$0xff] %v3903_v28  ;;  %5736 = vst [vmem:[#allocation108_spill] sm:$0xff] %v3940_v35 }
 0x10c   : > { %v3838_v19 = vmul.f32 0.0013020834, %v3487_v5  ;;  %v3856_v5 = vmul.f32 %v3700_v47, %v3700_v47 }
 0x10d   : > { %v3527_v56 = vpop.xlane.xlu0 %464 }
 0x10e   : > { %5716 = vst [vmem:[#allocation88_spill] sm:$0xff] %v3838_v19  ;;  %v3848_v46 = vmul.f32 0.0013020834, %v3527_v56  ;;  %5719 = vst [vmem:[#allocation91_spill] sm:$0xff] %v3856_v5  ;;  %v3878_v5 = vld [vmem:[%s2494_s9 + $0x258] sm:$0xff]  ;;  %v3962_v35 = vmul.f32 %v3838_v19, %v3838_v19  ;;  %v4013_v19 = vld [vmem:[%s2494_s9 + $0x310] sm:$0xff] }
 0x10f   : > { %5724 = vst [vmem:[#allocation96_spill] sm:$0xff] %v3878_v5  ;;  %5745 = vst [vmem:[#allocation117_spill] sm:$0xff] %v4013_v19  ;;  %v4034_v19 = vld [vmem:[%s2494_s9 + $0x390] sm:$0xff] }
 0x110   : > { %v3561_v33 = vpop.xlane.xlu1 %485  ;;  %5718 = vst [vmem:[#allocation90_spill] sm:$0xff] %v3848_v46  ;;  %5749 = vst [vmem:[#allocation121_spill] sm:$0xff] %v4034_v19  ;;  %v4049_v19 = vld [vmem:[%s2494_s9 + $0x3a0] sm:$0xff] }
 0x111   : > { %v3945_v45 = vmul.f32 0.0013020834, %v3561_v33  ;;  %v3958_v33 = vmul.f32 %v3798_v62, %v3798_v62  ;;  %5752 = vst [vmem:[#allocation124_spill] sm:$0xff] %v4049_v19 }
 0x112   : > { %v3605_v39 = vpop.xlane.xlu0 %478 }
 0x113   : > { %v3951_v56 = vmul.f32 0.0013020834, %v3605_v39 }
 0x115   : > { %v3645_v30 = vpop.xlane.xlu1 %499 }
 0x116   : > { %v3954_v17 = vmul.f32 0.0013020834, %v3645_v30 }
 0x117   : > { %v3682_v51 = vpop.xlane.xlu0 %492 }
 0x11a   : > { %v3722_v48 = vpop.xlane.xlu1 %513 }
 0x11c   : > { %v3756_v38 = vpop.xlane.xlu0 %506 }
 0x11f   : > { %v3800_v13 = vpop.xlane.xlu1 %527 }
 0x121   : > { %v3840_v44 = vpop.xlane.xlu0 %520 }
 0x123   : > { %v686_v47 = vpop.xlane.xlu1 %685 }
 0x124   : > { %v866_v34 = vmul.f32 0.0013020834, %v686_v47  ;;  %v3930_v47 = vld [vmem:[%s2494_s9 + $0x2b0] sm:$0xff] }
 0x125   : > { %v679_v5 = vpop.xlane.xlu0 %678  ;;  %5734 = vst [vmem:[#allocation106_spill] sm:$0xff] %v3930_v47 }
 0x126   : > { %v914_v9 = vsub.f32 %v866_v34, %v3544_v42  ;;  %v865_v47 = vmul.f32 0.0013020834, %v679_v5  ;;  %v3972_v5 = vld [vmem:[%s2494_s9 + $0x338] sm:$0xff] }
 0x127   : > { %v700_v28 = vpop.xlane.xlu1 %699  ;;  %5738 = vst [vmem:[#allocation110_spill] sm:$0xff] %v3972_v5  ;;  %v3992_v5 = vld [vmem:[%s2494_s9 + $0x350] sm:$0xff] }
 0x128   : > { %v868_v7 = vmul.f32 0.0013020834, %v700_v28  ;;  %v938_v32 = vmax.f32 %v914_v9, 0.0  ;;  %v913_v42 = vsub.f32 %v865_v47, %v3463_v1  ;;  %v3967_v28 = vld [vmem:[%s2494_s9 + $0x330] sm:$0xff]  ;;  %5741 = vst [vmem:[#allocation113_spill] sm:$0xff] %v3992_v5 }
 0x129   : > { %v693_v58 = vpop.xlane.xlu0 %692  ;;  %5737 = vst [vmem:[#allocation109_spill] sm:$0xff] %v3967_v28  ;;  %v3987_v28 = vld [vmem:[%s2494_s9 + $0x348] sm:$0xff] }
 0x12a   : > { %v916_v34 = vsub.f32 %v868_v7, %v3467_v31  ;;  %v867_v39 = vmul.f32 0.0013020834, %v693_v58  ;;  %v3983_v58 = vmul.f32 %v3848_v46, %v3848_v46  ;;  %v962_v1 = vadd.f32 1e-12, %v938_v32  ;;  %5740 = vst [vmem:[#allocation112_spill] sm:$0xff] %v3987_v28 }
 0x12b   : > { %v714_v7 = vpop.xlane.xlu1 %713  ;;  %v937_v31 = vmax.f32 %v913_v42, 0.0 }
 0x12c   : > { %v940_v47 = vmax.f32 %v916_v34, 0.0  ;;  %v915_v30 = vsub.f32 %v867_v39, %v3390_v49  ;;  %v870_v42 = vmul.f32 0.0013020834, %v714_v7  ;;  %v4002_v49 = vld [vmem:[%s2494_s9 + $0x300] sm:$0xff]  ;;  %1989 = vrsqrt.f32 %v962_v1 }
 0x12d   : > { %v707_v34 = vpop.xlane.xlu0 %706  ;;  %5743 = vst [vmem:[#allocation115_spill] sm:$0xff] %v4002_v49  ;;  %v961_v5 = vadd.f32 1e-12, %v937_v31  ;;  %v4018_v49 = vld [vmem:[%s2494_s9 + $0x318] sm:$0xff]  ;;  %v4023_v31 = vld [vmem:[%s2494_s9 + $0x320] sm:$0xff] }
 0x12e   : > { %v964_v28 = vadd.f32 1e-12, %v940_v47  ;;  %v939_v46 = vmax.f32 %v915_v30, 0.0  ;;  %v918_v32 = vsub.f32 %v870_v42, %v3565_v60  ;;  %v869_v7 = vmul.f32 0.0013020834, %v707_v34  ;;  %5746 = vst [vmem:[#allocation118_spill] sm:$0xff] %v4018_v49 }
 0x12f   : > { %v728_v14 = vpop.xlane.xlu1 %727  ;;  %1991 = vrsqrt.f32 %v961_v5  ;;  %5747 = vst [vmem:[#allocation119_spill] sm:$0xff] %v4023_v31  ;;  %v4028_v30 = vld [vmem:[%s2494_s9 + $0x328] sm:$0xff]  ;;  %v4039_v5 = vld [vmem:[%s2494_s9 + $0x398] sm:$0xff]  ;;  %v4045_v47 = vmul.f32 0.0013020834, %v3682_v51 }
 0x130   : > { %v872_v1 = vmul.f32 0.0013020834, %v728_v14  ;;  %5748 = vst [vmem:[#allocation120_spill] sm:$0xff] %v4028_v30  ;;  %v942_v42 = vmax.f32 %v918_v32, 0.0  ;;  %v917_v34 = vsub.f32 %v869_v7, %v3654_v57  ;;  %5750 = vst [vmem:[#allocation122_spill] sm:$0xff] %v4039_v5  ;;  %1993 = vrsqrt.f32 %v964_v28 }
 0x131   : > { %v721_v39 = vpop.xlane.xlu0 %720  ;;  %5751 = vst [vmem:[#allocation123_spill] sm:$0xff] %v4045_v47  ;;  %v963_v57 = vadd.f32 1e-12, %v939_v46  ;;  %v4057_v51 = vmul.f32 0.0013020834, %v3756_v38  ;;  %v4070_v38 = vmul.f32 %v3954_v17, %v3954_v17  ;;  %v5756_v5 = vsub.f32 %v3480_v63, %v3407_v27 }
 0x132   : > { %v920_v9 = vsub.f32 %v872_v1, %v3658_v16  ;;  %v871_v31 = vmul.f32 0.0013020834, %v721_v39  ;;  %v941_v32 = vmax.f32 %v917_v34, 0.0  ;;  %v966_v30 = vadd.f32 1e-12, %v942_v42 }
 0x133   : > { %v742_v7 = vpop.xlane.xlu1 %741  ;;  %v4054_v16 = vmul.f32 0.0013020834, %v3722_v48  ;;  %1995 = vrsqrt.f32 %v963_v57  ;;  %v4066_v48 = vmul.f32 %v3951_v56, %v3951_v56  ;;  %v4074_v34 = vmul.f32 0.0013020834, %v3800_v13 }
 0x134   : > { %v944_v49 = vmax.f32 %v920_v9, 0.0  ;;  %v919_v54 = vsub.f32 %v871_v31, %v3662_v52  ;;  %v874_v14 = vmul.f32 0.0013020834, %v742_v7  ;;  %v965_v28 = vadd.f32 1e-12, %v941_v32 }
 0x135   : > { %5753 = vst [vmem:[#allocation125_spill] sm:$0xff] %v4054_v16  ;;  %v735_v46 = vpop.xlane.xlu0 %734  ;;  %v4062_v31 = vmul.f32 %v3945_v45, %v3945_v45  ;;  %1997 = vrsqrt.f32 %v966_v30  ;;  %v4083_v30 = vmul.f32 %v4045_v47, %v4045_v47  ;;  %v5755_v13 = vsub.f32 %v3475_v61, %v3407_v27 }
 0x136   : > { %v968_v39 = vadd.f32 1e-12, %v944_v49  ;;  %v943_v1 = vmax.f32 %v919_v54, 0.0  ;;  %v922_v9 = vsub.f32 %v874_v14, %v3739_v25  ;;  %v873_v42 = vmul.f32 0.0013020834, %v735_v46 }
 0x137   : > { %v756_v52 = vpop.xlane.xlu1 %755  ;;  %v4077_v14 = vmul.f32 0.0013020834, %v3840_v44  ;;  %1999 = vrsqrt.f32 %v965_v28  ;;  %v4091_v44 = vmul.f32 %v4054_v16, %v4054_v16  ;;  %v5757_v47 = vsub.f32 %v3490_v37, %v3407_v27 }
 0x138   : > { %v967_v49 = vadd.f32 1e-12, %v943_v1  ;;  %v946_v54 = vmax.f32 %v922_v9, 0.0  ;;  %v921_v25 = vsub.f32 %v873_v42, %v3760_v11  ;;  %v4079_v57 = vmul.f32 0.0013020834, %v756_v52 }
 0x139   : > { %v749_v32 = vpop.xlane.xlu0 %748  ;;  %2001 = vrsqrt.f32 %v968_v39  ;;  %v1990_v1 = vpop.eup %1989 }
 0x13a   : > { %v970_v7 = vadd.f32 1e-12, %v946_v54  ;;  %v945_v46 = vmax.f32 %v921_v25, 0.0  ;;  %2003 = vrsqrt.f32 %v967_v49  ;;  %v4087_v11 = vmul.f32 0.0013020834, %v749_v32 }
 0x13b   : > { %v1048_v28 = vmul.f32 %v1990_v1, %v3326_v6  ;;  %v1049_v39 = vmul.f32 %v1990_v1, %v3328_v40  ;;  %v1050_v9 = vmul.f32 %v1990_v1, %v3330_v41  ;;  %v1051_v42 = vmul.f32 %v1990_v1, %v3332_v2 }
 0x13c   : > { %v1992_v52 = vpop.eup %1991  ;;  %v1052_v49 = vmul.f32 %v1990_v1, %v3334_v18  ;;  %v1053_v54 = vmul.f32 %v1990_v1, %v3340_v43  ;;  %2005 = vrsqrt.f32 %v970_v7  ;;  %v4099_v25 = vadd.f32 1e-12, %v945_v46 }
 0x13d   : > { %v5754_v32 = vsub.f32 %v3470_v20, %v3407_v27  ;;  %v1337_v19 = vmul.f32 %v5755_v13, %v1049_v39  ;;  %v1338_v16 = vmul.f32 %v5756_v5, %v1050_v9  ;;  %v1339_v1 = vmul.f32 %v5757_v47, %v1051_v42  ;;  %v1994_v39 = vpop.eup %1993 }
 0x13e   : > { %v5758_v7 = vsub.f32 %v3495_v29, %v3407_v27  ;;  %v5759_v20 = vsub.f32 %v3500_v22, %v3407_v27  ;;  %v1042_v61 = vmul.f32 %v1992_v52, %v3326_v6  ;;  %v1043_v13 = vmul.f32 %v1992_v52, %v3328_v40 }
 0x13f   : > { %v1336_v60 = vmul.f32 %v5754_v32, %v1048_v28  ;;  %v1512_v5 = vadd.f32 %v3344_v12, %v1337_v19  ;;  %v1513_v37 = vadd.f32 %v3348_v23, %v1338_v16  ;;  %v1514_v47 = vadd.f32 %v3350_v21, %v1339_v1 }
 0x140   : > { %v1340_v46 = vmul.f32 %v5758_v7, %v1052_v49  ;;  %v1341_v28 = vmul.f32 %v5759_v20, %v1053_v54  ;;  %v1044_v22 = vmul.f32 %v1992_v52, %v3330_v41  ;;  %v1045_v27 = vmul.f32 %v1992_v52, %v3332_v2  ;;  %v1996_v20 = vpop.eup %1995 }
 0x141   : > { %v1511_v63 = vadd.f32 %v3342_v15, %v1336_v60  ;;  %1656 = vst [vmem:[%s4131_s23 + $0x38] sm:$0xff] %v1512_v5  ;;  %1657 = vst [vmem:[%s4131_s23 + $0x40] sm:$0xff] %v1513_v37  ;;  %v1046_v19 = vmul.f32 %v1992_v52, %v3334_v18  ;;  %v1047_v60 = vmul.f32 %v1992_v52, %v3340_v43  ;;  %2007 = vrsqrt.f32 %v4099_v25  ;;  %v5856_v25 = vld [vmem:[#allocation91_spill] sm:$0xff] }
 0x142   : > { %v1515_v29 = vadd.f32 %v3352_v8, %v1340_v46  ;;  %v1516_v9 = vadd.f32 %v3371_v10, %v1341_v28  ;;  %1658 = vst [vmem:[%s4131_s23 + $0x48] sm:$0xff] %v1514_v47  ;;  %v5760_v16 = vsub.f32 %v3393_v24, %v3336_v53  ;;  %v5761_v49 = vsub.f32 %v3398_v3, %v3336_v53 }
 0x143   : > { %1655 = vst [vmem:[%s4131_s23 + $0x30] sm:$0xff] %v1511_v63  ;;  %v5762_v32 = vsub.f32 %v3403_v4, %v3336_v53  ;;  %v5763_v7 = vsub.f32 %v3412_v0, %v3336_v53  ;;  %v1060_v52 = vmul.f32 %v1994_v39, %v3326_v6  ;;  %v1061_v24 = vmul.f32 %v1994_v39, %v3328_v40  ;;  %v4163_v63 = vpop.eup %1997 }
 0x144   : > { %v1330_v42 = vmul.f32 %v5760_v16, %v1042_v61  ;;  %v1331_v54 = vmul.f32 %v5761_v49, %v1043_v13  ;;  %1659 = vst [vmem:[%s4131_s23 + $0x50] sm:$0xff] %v1515_v29  ;;  %1660 = vst [vmem:[%s4131_s23 + $0x58] sm:$0xff] %v1516_v9  ;;  %v5764_v3 = vsub.f32 %v3417_v36, %v3336_v53  ;;  %v4169_v29 = vpop.eup %1999  ;;  %v5767_v16 = vld [vmem:[#allocation19_spill] sm:$0xff] }
 0x145   : > { %v1332_v1 = vmul.f32 %v5762_v32, %v1044_v22  ;;  %v1333_v46 = vmul.f32 %v5763_v7, %v1045_v27  ;;  %v5765_v61 = vsub.f32 %v3422_v50, %v3336_v53  ;;  %v1062_v47 = vmul.f32 %v1994_v39, %v3330_v41  ;;  %v5771_v7 = vld [vmem:[#allocation20_spill] sm:$0xff] }
 0x146   : > { %v1334_v28 = vmul.f32 %v5764_v3, %v1046_v19  ;;  %v1505_v13 = vadd.f32 %v3342_v15, %v1330_v42  ;;  %v1506_v0 = vadd.f32 %v3344_v12, %v1331_v54  ;;  %v1063_v36 = vmul.f32 %v1994_v39, %v3332_v2  ;;  %v4177_v27 = vpop.eup %2001  ;;  %v5769_v54 = vld [vmem:[#allocation21_spill] sm:$0xff] }
 0x147   : > { %v1335_v4 = vmul.f32 %v5765_v61, %v1047_v60  ;;  %v1507_v5 = vadd.f32 %v3348_v23, %v1332_v1  ;;  %v1508_v37 = vadd.f32 %v3350_v21, %v1333_v46  ;;  %v1064_v9 = vmul.f32 %v1994_v39, %v3334_v18  ;;  %v4193_v3 = vpop.eup %2003 }
 0x148   : > { %v1509_v53 = vadd.f32 %v3352_v8, %v1334_v28  ;;  %1649 = vst [vmem:[%s4131_s23] sm:$0xff] %v1505_v13  ;;  %1650 = vst [vmem:[%s4131_s23 + $0x8] sm:$0xff] %v1506_v0  ;;  %v1065_v22 = vmul.f32 %v1994_v39, %v3340_v43  ;;  %v5766_v19 = vsub.f32 %v3427_v59, %v3346_v55  ;;  %v5773_v59 = vld [vmem:[#allocation22_spill] sm:$0xff] }
 0x149   : > { %v1510_v50 = vadd.f32 %v3371_v10, %v1335_v4  ;;  %1651 = vst [vmem:[%s4131_s23 + $0x10] sm:$0xff] %v1507_v5  ;;  %1652 = vst [vmem:[%s4131_s23 + $0x18] sm:$0xff] %v1508_v37  ;;  %v5768_v42 = vsub.f32 %v5767_v16, %v3346_v55  ;;  %v5770_v32 = vsub.f32 %v5769_v54, %v3346_v55  ;;  %v5777_v16 = vld [vmem:[#allocation13_spill] sm:$0xff] }
 0x14a   : > { %v1348_v60 = vmul.f32 %v5766_v19, %v1060_v52  ;;  %v5772_v46 = vsub.f32 %v5771_v7, %v3346_v55  ;;  %1653 = vst [vmem:[%s4131_s23 + $0x20] sm:$0xff] %v1509_v53  ;;  %v5774_v52 = vsub.f32 %v5773_v59, %v3346_v55  ;;  %v1054_v13 = vmul.f32 %v1996_v20, %v3326_v6  ;;  %v4209_v53 = vpop.eup %2005 }
 0x14b   : > { %v1349_v49 = vmul.f32 %v5768_v42, %v1061_v24  ;;  %v1350_v1 = vmul.f32 %v5770_v32, %v1062_v47  ;;  %1654 = vst [vmem:[%s4131_s23 + $0x28] sm:$0xff] %v1510_v50  ;;  %v5775_v24 = vld [vmem:[#allocation23_spill] sm:$0xff]  ;;  %v1055_v0 = vmul.f32 %v1996_v20, %v3328_v40  ;;  %v1058_v19 = vmul.f32 %v1996_v20, %v3334_v18  ;;  %v5778_v42 = vld [vmem:[#allocation12_spill] sm:$0xff]  ;;  %v5780_v32 = vld [vmem:[#allocation14_spill] sm:$0xff] }
 0x14c   : > { %v1351_v39 = vmul.f32 %v5772_v46, %v1063_v36  ;;  %v1352_v28 = vmul.f32 %v5774_v52, %v1064_v9  ;;  %v5776_v61 = vsub.f32 %v5775_v24, %v3346_v55  ;;  %v1523_v5 = vadd.f32 %v3342_v15, %v1348_v60  ;;  %v5782_v46 = vld [vmem:[#allocation15_spill] sm:$0xff]  ;;  %v5784_v52 = vld [vmem:[#allocation16_spill] sm:$0xff] }
 0x14d   : > { %v1524_v37 = vadd.f32 %v3344_v12, %v1349_v49  ;;  %v1525_v47 = vadd.f32 %v3348_v23, %v1350_v1  ;;  %v1056_v9 = vmul.f32 %v1996_v20, %v3330_v41  ;;  %v1059_v60 = vmul.f32 %v1996_v20, %v3340_v43 }
 0x14e   : > { %v1353_v4 = vmul.f32 %v5776_v61, %v1065_v22  ;;  %v1526_v36 = vadd.f32 %v3350_v21, %v1351_v39  ;;  %v1527_v55 = vadd.f32 %v3352_v8, %v1352_v28  ;;  %v1057_v22 = vmul.f32 %v1996_v20, %v3332_v2  ;;  %1667 = vst [vmem:[%s4131_s23 + $0x90] sm:$0xff] %v1523_v5  ;;  %v5788_v5 = vld [vmem:[#allocation18_spill] sm:$0xff] }
 0x14f   : > { %1668 = vst [vmem:[%s4131_s23 + $0x98] sm:$0xff] %v1524_v37  ;;  %1669 = vst [vmem:[%s4131_s23 + $0xa0] sm:$0xff] %v1525_v47  ;;  %v5779_v49 = vsub.f32 %v5777_v16, %v5778_v42  ;;  %v5781_v1 = vsub.f32 %v5780_v32, %v5778_v42  ;;  %v5783_v39 = vsub.f32 %v5782_v46, %v5778_v42  ;;  %v4253_v16 = vpop.xlane.xlu1 %769  ;;  %v5790_v32 = vld [vmem:[#allocation25_spill] sm:$0xff] }
 0x150   : > { %v1528_v50 = vadd.f32 %v3371_v10, %v1353_v4  ;;  %1670 = vst [vmem:[%s4131_s23 + $0xa8] sm:$0xff] %v1526_v36  ;;  %1671 = vst [vmem:[%s4131_s23 + $0xb0] sm:$0xff] %v1527_v55  ;;  %v5785_v28 = vsub.f32 %v5784_v52, %v5778_v42  ;;  %v1072_v24 = vmul.f32 %v4163_v63, %v3326_v6  ;;  %v5786_v4 = vld [vmem:[#allocation17_spill] sm:$0xff] }
 0x151   : > { %v1342_v54 = vmul.f32 %v5779_v49, %v1054_v13  ;;  %v1343_v7 = vmul.f32 %v5781_v1, %v1055_v0  ;;  %v1344_v59 = vmul.f32 %v5783_v39, %v1056_v9  ;;  %v1073_v61 = vmul.f32 %v4163_v63, %v3328_v40  ;;  %v5791_v1 = vld [vmem:[#allocation29_spill] sm:$0xff]  ;;  %v5793_v39 = vld [vmem:[#allocation26_spill] sm:$0xff] }
 0x152   : > { %1672 = vst [vmem:[%s4131_s23 + $0xb8] sm:$0xff] %v1528_v50  ;;  %v1345_v20 = vmul.f32 %v5785_v28, %v1057_v22  ;;  %v5787_v13 = vsub.f32 %v5786_v4, %v5778_v42  ;;  %v5789_v37 = vsub.f32 %v5788_v5, %v5778_v42  ;;  %v1074_v22 = vmul.f32 %v4163_v63, %v3330_v41  ;;  %v5795_v28 = vld [vmem:[#allocation27_spill] sm:$0xff] }
 0x153   : > { %v1517_v36 = vadd.f32 %v3342_v15, %v1342_v54  ;;  %v1518_v55 = vadd.f32 %v3344_v12, %v1343_v7  ;;  %v1519_v50 = vadd.f32 %v3348_v23, %v1344_v59  ;;  %v1076_v49 = vmul.f32 %v4163_v63, %v3334_v18 }
 0x154   : > { %v1346_v0 = vmul.f32 %v5787_v13, %v1058_v19  ;;  %v1347_v47 = vmul.f32 %v5789_v37, %v1059_v60  ;;  %v1520_v9 = vadd.f32 %v3350_v21, %v1345_v20  ;;  %v1075_v19 = vmul.f32 %v4163_v63, %v3332_v2  ;;  %v5797_v13 = vld [vmem:[#allocation28_spill] sm:$0xff] }
 0x155   : > { %1661 = vst [vmem:[%s4131_s23 + $0x60] sm:$0xff] %v1517_v36  ;;  %1662 = vst [vmem:[%s4131_s23 + $0x68] sm:$0xff] %v1518_v55  ;;  %v1077_v54 = vmul.f32 %v4163_v63, %v3340_v43  ;;  %v5792_v7 = vsub.f32 %v5790_v32, %v5791_v1  ;;  %v5794_v59 = vsub.f32 %v5793_v39, %v5791_v1  ;;  %v5799_v63 = vld [vmem:[#allocation30_spill] sm:$0xff]  ;;  %v5803_v39 = vld [vmem:[#allocation33_spill] sm:$0xff] }
 0x156   : > { %v1521_v60 = vadd.f32 %v3352_v8, %v1346_v0  ;;  %v1522_v42 = vadd.f32 %v3371_v10, %v1347_v47  ;;  %1663 = vst [vmem:[%s4131_s23 + $0x70] sm:$0xff] %v1519_v50  ;;  %1664 = vst [vmem:[%s4131_s23 + $0x78] sm:$0xff] %v1520_v9  ;;  %v5796_v20 = vsub.f32 %v5795_v28, %v5791_v1  ;;  %v5801_v47 = vld [vmem:[#allocation31_spill] sm:$0xff] }
 0x157   : > { %v1360_v46 = vmul.f32 %v5792_v7, %v1072_v24  ;;  %v1361_v52 = vmul.f32 %v5794_v59, %v1073_v61  ;;  %v5798_v0 = vsub.f32 %v5797_v13, %v5791_v1  ;;  %v5800_v37 = vsub.f32 %v5799_v63, %v5791_v1  ;;  %v5804_v59 = vld [vmem:[#allocation24_spill] sm:$0xff] }
 0x158   : > { %v1362_v4 = vmul.f32 %v5796_v20, %v1074_v22  ;;  %1665 = vst [vmem:[%s4131_s23 + $0x80] sm:$0xff] %v1521_v60  ;;  %1666 = vst [vmem:[%s4131_s23 + $0x88] sm:$0xff] %v1522_v42  ;;  %v5802_v61 = vsub.f32 %v5801_v47, %v5791_v1  ;;  %v1066_v55 = vmul.f32 %v4169_v29, %v3326_v6  ;;  %v4299_v1 = vpop.xlane.xlu0 %762  ;;  %v5806_v20 = vld [vmem:[#allocation35_spill] sm:$0xff] }
 0x159   : > { %v1363_v5 = vmul.f32 %v5798_v0, %v1075_v19  ;;  %v1364_v24 = vmul.f32 %v5800_v37, %v1076_v49  ;;  %v1067_v50 = vmul.f32 %v4169_v29, %v3328_v40  ;;  %v1535_v9 = vadd.f32 %v3342_v15, %v1360_v46  ;;  %v4315_v0 = vpop.xlane.xlu1 %783 }
 0x15a   : > { %v1365_v36 = vmul.f32 %v5802_v61, %v1077_v54  ;;  %v1536_v22 = vadd.f32 %v3344_v12, %v1361_v52  ;;  %v1537_v19 = vadd.f32 %v3348_v23, %v1362_v4  ;;  %v1068_v54 = vmul.f32 %v4169_v29, %v3330_v41 }
 0x15b   : > { %v1538_v60 = vadd.f32 %v3350_v21, %v1363_v5  ;;  %v1539_v42 = vadd.f32 %v3352_v8, %v1364_v24  ;;  %v1069_v32 = vmul.f32 %v4169_v29, %v3332_v2  ;;  %1679 = vst [vmem:[%s4131_s23 + $0xf0] sm:$0xff] %v1535_v9  ;;  %v1070_v7 = vmul.f32 %v4169_v29, %v3334_v18  ;;  %v5808_v5 = vld [vmem:[#allocation39_spill] sm:$0xff]  ;;  %v5810_v24 = vld [vmem:[#allocation36_spill] sm:$0xff] }
 0x15c   : > { %v1540_v49 = vadd.f32 %v3371_v10, %v1365_v36  ;;  %1680 = vst [vmem:[%s4131_s23 + $0xf8] sm:$0xff] %v1536_v22  ;;  %1681 = vst [vmem:[%s4131_s23 + $0x100] sm:$0xff] %v1537_v19  ;;  %v1071_v46 = vmul.f32 %v4169_v29, %v3340_v43  ;;  %v5805_v52 = vsub.f32 %v5803_v39, %v5804_v59  ;;  %v5814_v22 = vld [vmem:[#allocation38_spill] sm:$0xff] }
 0x15d   : > { %1682 = vst [vmem:[%s4131_s23 + $0x108] sm:$0xff] %v1538_v60  ;;  %v5807_v4 = vsub.f32 %v5806_v20, %v5804_v59  ;;  %1683 = vst [vmem:[%s4131_s23 + $0x110] sm:$0xff] %v1539_v42  ;;  %v5809_v63 = vsub.f32 %v5808_v5, %v5804_v59  ;;  %v5811_v29 = vsub.f32 %v5810_v24, %v5804_v59  ;;  %v5816_v20 = vld [vmem:[#allocation40_spill] sm:$0xff] }
 0x15e   : > { %v1354_v28 = vmul.f32 %v5805_v52, %v1066_v55  ;;  %1684 = vst [vmem:[%s4131_s23 + $0x118] sm:$0xff] %v1540_v49  ;;  %v1084_v61 = vmul.f32 %v4177_v27, %v3326_v6  ;;  %v1085_v36 = vmul.f32 %v4177_v27, %v3328_v40  ;;  %v5812_v55 = vld [vmem:[#allocation37_spill] sm:$0xff]  ;;  %v5815_v19 = vsub.f32 %v5814_v22, %v5804_v59 }
 0x15f   : > { %v1355_v13 = vmul.f32 %v5807_v4, %v1067_v50  ;;  %v1356_v37 = vmul.f32 %v5809_v63, %v1068_v54  ;;  %v1357_v47 = vmul.f32 %v5811_v29, %v1069_v32  ;;  %v5813_v50 = vsub.f32 %v5812_v55, %v5804_v59  ;;  %v5817_v4 = vld [vmem:[#allocation32_spill] sm:$0xff]  ;;  %v5819_v63 = vld [vmem:[#allocation41_spill] sm:$0xff]  ;;  %v5821_v29 = vld [vmem:[#allocation42_spill] sm:$0xff] }
 0x160   : > { %v1359_v60 = vmul.f32 %v5815_v19, %v1071_v46  ;;  %v1529_v42 = vadd.f32 %v3342_v15, %v1354_v28  ;;  %v1086_v39 = vmul.f32 %v4177_v27, %v3330_v41  ;;  %v1088_v59 = vmul.f32 %v4177_v27, %v3334_v18  ;;  %v4365_v19 = vpop.xlane.xlu0 %776 }
 0x161   : > { %v1358_v9 = vmul.f32 %v5813_v50, %v1070_v7  ;;  %v1530_v49 = vadd.f32 %v3344_v12, %v1355_v13  ;;  %v1531_v54 = vadd.f32 %v3348_v23, %v1356_v37  ;;  %v1532_v32 = vadd.f32 %v3350_v21, %v1357_v47  ;;  %v5823_v50 = vld [vmem:[#allocation43_spill] sm:$0xff] }
 0x162   : > { %v1087_v7 = vmul.f32 %v4177_v27, %v3332_v2  ;;  %v1534_v46 = vadd.f32 %v3371_v10, %v1359_v60  ;;  %1673 = vst [vmem:[%s4131_s23 + $0xc0] sm:$0xff] %v1529_v42  ;;  %v1089_v28 = vmul.f32 %v4177_v27, %v3340_v43  ;;  %v5818_v13 = vsub.f32 %v5816_v20, %v5817_v4  ;;  %v5825_v27 = vld [vmem:[#allocation46_spill] sm:$0xff] }
 0x163   : > { %v1533_v52 = vadd.f32 %v3352_v8, %v1358_v9  ;;  %1674 = vst [vmem:[%s4131_s23 + $0xc8] sm:$0xff] %v1530_v49  ;;  %1675 = vst [vmem:[%s4131_s23 + $0xd0] sm:$0xff] %v1531_v54  ;;  %v5820_v37 = vsub.f32 %v5819_v63, %v5817_v4  ;;  %v5822_v47 = vsub.f32 %v5821_v29, %v5817_v4 }
 0x164   : > { %1676 = vst [vmem:[%s4131_s23 + $0xd8] sm:$0xff] %v1532_v32  ;;  %v1372_v5 = vmul.f32 %v5818_v13, %v1084_v61  ;;  %v5824_v9 = vsub.f32 %v5823_v50, %v5817_v4  ;;  %1678 = vst [vmem:[%s4131_s23 + $0xe8] sm:$0xff] %v1534_v46  ;;  %v5826_v61 = vsub.f32 %v5825_v27, %v5817_v4 }
 0x165   : > { %v1373_v24 = vmul.f32 %v5820_v37, %v1085_v36  ;;  %v1374_v55 = vmul.f32 %v5822_v47, %v1086_v39  ;;  %1677 = vst [vmem:[%s4131_s23 + $0xe0] sm:$0xff] %v1533_v52  ;;  %v5827_v36 = vld [vmem:[#allocation47_spill] sm:$0xff]  ;;  %v1078_v54 = vmul.f32 %v4193_v3, %v3326_v6  ;;  %v1079_v32 = vmul.f32 %v4193_v3, %v3328_v40  ;;  %v4379_v39 = vpop.xlane.xlu1 %797  ;;  %v5829_v37 = vld [vmem:[#allocation48_spill] sm:$0xff] }
 0x166   : > { %v1375_v22 = vmul.f32 %v5824_v9, %v1087_v7  ;;  %v1376_v60 = vmul.f32 %v5826_v61, %v1088_v59  ;;  %v5828_v42 = vsub.f32 %v5827_v36, %v5817_v4  ;;  %v1547_v7 = vadd.f32 %v3342_v15, %v1372_v5 }
 0x167   : > { %v1548_v52 = vadd.f32 %v3344_v12, %v1373_v24  ;;  %v1549_v46 = vadd.f32 %v3348_v23, %v1374_v55  ;;  %v1080_v4 = vmul.f32 %v4193_v3, %v3330_v41  ;;  %v1081_v13 = vmul.f32 %v4193_v3, %v3332_v2  ;;  %v5830_v24 = vld [vmem:[#allocation34_spill] sm:$0xff] }
 0x168   : > { %v1377_v49 = vmul.f32 %v5828_v42, %v1089_v28  ;;  %v1550_v59 = vadd.f32 %v3350_v21, %v1375_v22  ;;  %v1551_v28 = vadd.f32 %v3352_v8, %v1376_v60  ;;  %1691 = vst [vmem:[%s4131_s23 + $0x150] sm:$0xff] %v1547_v7  ;;  %v1082_v5 = vmul.f32 %v4193_v3, %v3334_v18  ;;  %v5832_v55 = vld [vmem:[#allocation50_spill] sm:$0xff]  ;;  %v5834_v22 = vld [vmem:[#allocation51_spill] sm:$0xff]  ;;  %v5836_v60 = vld [vmem:[#allocation52_spill] sm:$0xff] }
 0x169   : > { %1692 = vst [vmem:[%s4131_s23 + $0x158] sm:$0xff] %v1548_v52  ;;  %1693 = vst [vmem:[%s4131_s23 + $0x160] sm:$0xff] %v1549_v46  ;;  %v1083_v63 = vmul.f32 %v4193_v3, %v3340_v43  ;;  %v5831_v29 = vsub.f32 %v5829_v37, %v5830_v24  ;;  %v5833_v50 = vsub.f32 %v5832_v55, %v5830_v24  ;;  %v5840_v52 = vld [vmem:[#allocation54_spill] sm:$0xff] }
 0x16a   : > { %v1552_v20 = vadd.f32 %v3371_v10, %v1377_v49  ;;  %1694 = vst [vmem:[%s4131_s23 + $0x168] sm:$0xff] %v1550_v59  ;;  %1695 = vst [vmem:[%s4131_s23 + $0x170] sm:$0xff] %v1551_v28  ;;  %v5835_v27 = vsub.f32 %v5834_v22, %v5830_v24  ;;  %v5837_v36 = vsub.f32 %v5836_v60, %v5830_v24  ;;  %v5843_v22 = vld [vmem:[#allocation45_spill] sm:$0xff] }
 0x16b   : > { %v1366_v47 = vmul.f32 %v5831_v29, %v1078_v54  ;;  %v1367_v9 = vmul.f32 %v5833_v50, %v1079_v32  ;;  %v1096_v3 = vmul.f32 %v4209_v53, %v3326_v6  ;;  %v1097_v49 = vmul.f32 %v4209_v53, %v3328_v40  ;;  %v5838_v54 = vld [vmem:[#allocation55_spill] sm:$0xff]  ;;  %v5845_v60 = vld [vmem:[#allocation57_spill] sm:$0xff] }
 0x16c   : > { %1696 = vst [vmem:[%s4131_s23 + $0x178] sm:$0xff] %v1552_v20  ;;  %v1368_v61 = vmul.f32 %v5835_v27, %v1080_v4  ;;  %v1369_v42 = vmul.f32 %v5837_v36, %v1081_v13  ;;  %v5839_v32 = vsub.f32 %v5838_v54, %v5830_v24  ;;  %v5841_v46 = vsub.f32 %v5840_v52, %v5830_v24  ;;  %v791_v4 = vpop.xlane.xlu0 %790  ;;  %v812_v24 = vpop.xlane.xlu1 %811  ;;  %v5847_v54 = vld [vmem:[#allocation58_spill] sm:$0xff]  ;;  %v5849_v52 = vld [vmem:[#allocation60_spill] sm:$0xff] }
 0x16d   : > { %v1541_v28 = vadd.f32 %v3342_v15, %v1366_v47  ;;  %v1542_v20 = vadd.f32 %v3344_v12, %v1367_v9  ;;  %v1098_v29 = vmul.f32 %v4209_v53, %v3330_v41  ;;  %v1100_v55 = vmul.f32 %v4209_v53, %v3334_v18  ;;  %v5842_v9 = vld [vmem:[#allocation56_spill] sm:$0xff] }
 0x16e   : > { %v1370_v7 = vmul.f32 %v5839_v32, %v1082_v5  ;;  %v1371_v59 = vmul.f32 %v5841_v46, %v1083_v63  ;;  %v1543_v13 = vadd.f32 %v3348_v23, %v1368_v61  ;;  %v1544_v37 = vadd.f32 %v3350_v21, %v1369_v42 }
 0x16f   : > { %v1099_v5 = vmul.f32 %v4209_v53, %v3332_v2  ;;  %1685 = vst [vmem:[%s4131_s23 + $0x120] sm:$0xff] %v1541_v28  ;;  %1686 = vst [vmem:[%s4131_s23 + $0x128] sm:$0xff] %v1542_v20  ;;  %v1101_v50 = vmul.f32 %v4209_v53, %v3340_v43  ;;  %v5844_v27 = vsub.f32 %v5842_v9, %v5843_v22  ;;  %v5851_v53 = vld [vmem:[#allocation61_spill] sm:$0xff]  ;;  %v5853_v20 = vld [vmem:[#allocation62_spill] sm:$0xff] }
 0x170   : > { %v1545_v63 = vadd.f32 %v3352_v8, %v1370_v7  ;;  %v1546_v47 = vadd.f32 %v3371_v10, %v1371_v59  ;;  %1687 = vst [vmem:[%s4131_s23 + $0x130] sm:$0xff] %v1543_v13  ;;  %1688 = vst [vmem:[%s4131_s23 + $0x138] sm:$0xff] %v1544_v37  ;;  %v5846_v36 = vsub.f32 %v5845_v60, %v5843_v22  ;;  %v880_v60 = vmul.f32 0.0013020834, %v4315_v0 }
 0x171   : > { %v1384_v61 = vmul.f32 %v5844_v27, %v1096_v3  ;;  %v5848_v32 = vsub.f32 %v5847_v54, %v5843_v22  ;;  %v5850_v46 = vsub.f32 %v5849_v52, %v5843_v22  ;;  %v5852_v28 = vsub.f32 %v5851_v53, %v5843_v22 }
 0x172   : > { %v1385_v42 = vmul.f32 %v5846_v36, %v1097_v49  ;;  %1689 = vst [vmem:[%s4131_s23 + $0x140] sm:$0xff] %v1545_v63  ;;  %1690 = vst [vmem:[%s4131_s23 + $0x148] sm:$0xff] %v1546_v47  ;;  %v5854_v49 = vsub.f32 %v5853_v20, %v5843_v22  ;;  %v5855_v37 = vsub.f32 %v4079_v57, %v3852_v26  ;;  %v805_v26 = vpop.xlane.xlu0 %804  ;;  %v878_v57 = vmul.f32 0.0013020834, %v4253_v16  ;;  %v826_v36 = vpop.xlane.xlu1 %825 }
 0x173   : > { %v1386_v7 = vmul.f32 %v5848_v32, %v1098_v29  ;;  %v1387_v59 = vmul.f32 %v5850_v46, %v1099_v5  ;;  %v1388_v3 = vmul.f32 %v5852_v28, %v1100_v55  ;;  %v1559_v5 = vadd.f32 %v3342_v15, %v1384_v61 }
 0x174   : > { %v1389_v13 = vmul.f32 %v5854_v49, %v1101_v50  ;;  %v948_v29 = vmax.f32 %v5855_v37, 0.0  ;;  %v1560_v63 = vadd.f32 %v3344_v12, %v1385_v42  ;;  %v923_v27 = vsub.f32 %v4087_v11, %v5856_v25  ;;  %v2008_v25 = vpop.eup %2007 }
 0x175   : > { %v1561_v47 = vadd.f32 %v3348_v23, %v1386_v7  ;;  %v1562_v55 = vadd.f32 %v3350_v21, %v1387_v59  ;;  %v1563_v9 = vadd.f32 %v3352_v8, %v1388_v3  ;;  %1703 = vst [vmem:[%s4131_s23 + $0x1b0] sm:$0xff] %v1559_v5  ;;  %v877_v61 = vmul.f32 0.0013020834, %v4299_v1  ;;  %v5857_v7 = vld [vmem:[#allocation95_spill] sm:$0xff] }
 0x176   : > { %v1564_v50 = vadd.f32 %v3371_v10, %v1389_v13  ;;  %v972_v22 = vadd.f32 1e-12, %v948_v29  ;;  %1704 = vst [vmem:[%s4131_s23 + $0x1b8] sm:$0xff] %v1560_v63  ;;  %v4482_v42 = vmul.f32 %v4057_v51, %v4057_v51  ;;  %v947_v11 = vmax.f32 %v923_v27, 0.0 }
 0x177   : > { %1705 = vst [vmem:[%s4131_s23 + $0x1c0] sm:$0xff] %v1561_v47  ;;  %1706 = vst [vmem:[%s4131_s23 + $0x1c8] sm:$0xff] %v1562_v55  ;;  %v879_v54 = vmul.f32 0.0013020834, %v4365_v19  ;;  %v882_v32 = vmul.f32 0.0013020834, %v4379_v39  ;;  %v926_v52 = vsub.f32 %v878_v57, %v5857_v7  ;;  %v925_v16 = vsub.f32 %v877_v61, %v3958_v33  ;;  %v819_v33 = vpop.xlane.xlu0 %818 }
 0x178   : > { %1707 = vst [vmem:[%s4131_s23 + $0x1d0] sm:$0xff] %v1563_v9  ;;  %1708 = vst [vmem:[%s4131_s23 + $0x1d8] sm:$0xff] %v1564_v50  ;;  %2009 = vrsqrt.f32 %v972_v22  ;;  %v928_v1 = vsub.f32 %v880_v60, %v3962_v35  ;;  %v881_v0 = vmul.f32 0.0013020834, %v791_v4  ;;  %v971_v46 = vadd.f32 1e-12, %v947_v11 }
 0x179   : > { %v927_v59 = vsub.f32 %v879_v54, %v3983_v58  ;;  %v930_v53 = vsub.f32 %v882_v32, %v4062_v31  ;;  %v884_v28 = vmul.f32 0.0013020834, %v812_v24  ;;  %v950_v3 = vmax.f32 %v926_v52, 0.0  ;;  %v840_v31 = vpop.xlane.xlu1 %839  ;;  %v5859_v52 = vld [vmem:[#allocation53_spill] sm:$0xff] }
 0x17a   : > { %v949_v20 = vmax.f32 %v925_v16, 0.0  ;;  %v952_v49 = vmax.f32 %v928_v1, 0.0  ;;  %v929_v19 = vsub.f32 %v881_v0, %v4066_v48  ;;  %2011 = vrsqrt.f32 %v971_v46  ;;  %v5861_v1 = vld [vmem:[#allocation65_spill] sm:$0xff] }
 0x17b   : > { %v951_v39 = vmax.f32 %v927_v59, 0.0  ;;  %v954_v13 = vmax.f32 %v930_v53, 0.0  ;;  %v932_v37 = vsub.f32 %v884_v28, %v4070_v38  ;;  %v974_v29 = vadd.f32 1e-12, %v950_v3  ;;  %v5863_v59 = vld [vmem:[#allocation66_spill] sm:$0xff]  ;;  %v5865_v3 = vld [vmem:[#allocation67_spill] sm:$0xff] }
 0x17c   : > { %v973_v35 = vadd.f32 1e-12, %v949_v20  ;;  %v976_v4 = vadd.f32 1e-12, %v952_v49  ;;  %v4497_v58 = vmul.f32 %v4074_v34, %v4074_v34  ;;  %v953_v63 = vmax.f32 %v929_v19, 0.0 }
 0x17d   : > { %v975_v24 = vadd.f32 1e-12, %v951_v39  ;;  %v978_v5 = vadd.f32 1e-12, %v954_v13  ;;  %v956_v47 = vmax.f32 %v932_v37, 0.0  ;;  %2013 = vrsqrt.f32 %v974_v29  ;;  %v5867_v39 = vld [vmem:[#allocation68_spill] sm:$0xff] }
 0x17e   : > { %v883_v48 = vmul.f32 0.0013020834, %v805_v26  ;;  %v886_v55 = vmul.f32 0.0013020834, %v826_v36  ;;  %v4499_v9 = vmul.f32 0.0013020834, %v819_v33  ;;  %2015 = vrsqrt.f32 %v973_v35 }
 0x17f   : > { %v977_v38 = vadd.f32 1e-12, %v953_v63  ;;  %v4501_v50 = vadd.f32 1e-12, %v956_v47  ;;  %v4503_v22 = vmul.f32 0.0013020834, %v840_v31  ;;  %2017 = vrsqrt.f32 %v976_v4 }
 0x180   : > { %v931_v27 = vsub.f32 %v883_v48, %v4083_v30  ;;  %v934_v57 = vsub.f32 %v886_v55, %v4091_v44  ;;  %v933_v61 = vsub.f32 %v4499_v9, %v4482_v42  ;;  %v1090_v26 = vmul.f32 %v2008_v25, %v3326_v6  ;;  %v5858_v30 = vld [vmem:[#allocation64_spill] sm:$0xff]  ;;  %v5869_v33 = vld [vmem:[#allocation69_spill] sm:$0xff] }
 0x181   : > { %v1091_v60 = vmul.f32 %v2008_v25, %v3328_v40  ;;  %v1092_v36 = vmul.f32 %v2008_v25, %v3330_v41  ;;  %v1093_v11 = vmul.f32 %v2008_v25, %v3332_v2  ;;  %v1094_v54 = vmul.f32 %v2008_v25, %v3334_v18 }
 0x182   : > { %v1095_v32 = vmul.f32 %v2008_v25, %v3340_v43  ;;  %2019 = vrsqrt.f32 %v975_v24  ;;  %v955_v7 = vmax.f32 %v931_v27, 0.0  ;;  %v5860_v44 = vsub.f32 %v5858_v30, %v5859_v52 }
 0x183   : > { %v5862_v0 = vsub.f32 %v5861_v1, %v5859_v52  ;;  %v5864_v53 = vsub.f32 %v5863_v59, %v5859_v52  ;;  %v5866_v20 = vsub.f32 %v5865_v3, %v5859_v52  ;;  %v5868_v13 = vsub.f32 %v5867_v39, %v5859_v52  ;;  %v5882_v39 = vld [vmem:[#allocation76_spill] sm:$0xff] }
 0x184   : > { %v1378_v16 = vmul.f32 %v5860_v44, %v1090_v26  ;;  %v5870_v29 = vsub.f32 %v5869_v33, %v5859_v52  ;;  %2021 = vrsqrt.f32 %v978_v5  ;;  %v4533_v4 = vadd.f32 1e-12, %v955_v7  ;;  %v5874_v52 = vld [vmem:[#allocation72_spill] sm:$0xff] }
 0x185   : > { %v1379_v46 = vmul.f32 %v5862_v0, %v1091_v60  ;;  %v1380_v28 = vmul.f32 %v5864_v53, %v1092_v36  ;;  %v1381_v49 = vmul.f32 %v5866_v20, %v1093_v11  ;;  %v2010_v19 = vpop.eup %2009  ;;  %v1382_v37 = vmul.f32 %v5868_v13, %v1094_v54  ;;  %v5871_v54 = vld [vmem:[#allocation71_spill] sm:$0xff]  ;;  %v5876_v0 = vld [vmem:[#allocation73_spill] sm:$0xff]  ;;  %v5878_v53 = vld [vmem:[#allocation74_spill] sm:$0xff] }
 0x186   : > { %v1383_v35 = vmul.f32 %v5870_v29, %v1095_v32  ;;  %v1553_v31 = vadd.f32 %v3342_v15, %v1378_v16  ;;  %v1108_v25 = vmul.f32 %v2010_v19, %v3326_v6  ;;  %v1109_v5 = vmul.f32 %v2010_v19, %v3328_v40  ;;  %v5872_v32 = vld [vmem:[#allocation59_spill] sm:$0xff] }
 0x187   : > { %v1554_v24 = vadd.f32 %v3344_v12, %v1379_v46  ;;  %v1555_v63 = vadd.f32 %v3348_v23, %v1380_v28  ;;  %v1556_v47 = vadd.f32 %v3350_v21, %v1381_v49  ;;  %v1557_v48 = vadd.f32 %v3352_v8, %v1382_v37  ;;  %v2012_v11 = vpop.eup %2011  ;;  %v5880_v20 = vld [vmem:[#allocation75_spill] sm:$0xff] }
 0x188   : > { %v1558_v55 = vadd.f32 %v3371_v10, %v1383_v35  ;;  %1697 = vst [vmem:[%s4131_s23 + $0x180] sm:$0xff] %v1553_v31  ;;  %v1110_v27 = vmul.f32 %v2010_v19, %v3330_v41  ;;  %v1111_v26 = vmul.f32 %v2010_v19, %v3332_v2  ;;  %v1112_v60 = vmul.f32 %v2010_v19, %v3334_v18 }
 0x189   : > { %1698 = vst [vmem:[%s4131_s23 + $0x188] sm:$0xff] %v1554_v24  ;;  %1699 = vst [vmem:[%s4131_s23 + $0x190] sm:$0xff] %v1555_v63  ;;  %v1113_v36 = vmul.f32 %v2010_v19, %v3340_v43  ;;  %v5873_v7 = vsub.f32 %v5871_v54, %v5872_v32  ;;  %v5875_v44 = vsub.f32 %v5874_v52, %v5872_v32  ;;  %2023 = vrsqrt.f32 %v977_v38 }
 0x18a   : > { %1700 = vst [vmem:[%s4131_s23 + $0x198] sm:$0xff] %v1556_v47  ;;  %1701 = vst [vmem:[%s4131_s23 + $0x1a0] sm:$0xff] %v1557_v48  ;;  %v4559_v1 = vmax.f32 %v934_v57, 0.0  ;;  %v5877_v46 = vsub.f32 %v5876_v0, %v5872_v32  ;;  %v5879_v28 = vsub.f32 %v5878_v53, %v5872_v32  ;;  %v5881_v49 = vsub.f32 %v5880_v20, %v5872_v32  ;;  %v2014_v35 = vpop.eup %2013 }
 0x18b   : > { %1702 = vst [vmem:[%s4131_s23 + $0x1a8] sm:$0xff] %v1558_v55  ;;  %v1396_v30 = vmul.f32 %v5873_v7, %v1108_v25  ;;  %v1397_v16 = vmul.f32 %v5875_v44, %v1109_v5  ;;  %v5883_v13 = vsub.f32 %v5882_v39, %v5872_v32  ;;  %v1102_v33 = vmul.f32 %v2012_v11, %v3326_v6  ;;  %v2016_v48 = vpop.eup %2015  ;;  %v5887_v7 = vld [vmem:[#allocation78_spill] sm:$0xff] }
 0x18c   : > { %v1398_v59 = vmul.f32 %v5877_v46, %v1110_v27  ;;  %v1399_v3 = vmul.f32 %v5879_v28, %v1111_v26  ;;  %v1400_v19 = vmul.f32 %v5881_v49, %v1112_v60  ;;  %v1103_v29 = vmul.f32 %v2012_v11, %v3328_v40  ;;  %v4587_v26 = vpop.eup %2017  ;;  %v5884_v60 = vld [vmem:[#allocation77_spill] sm:$0xff] }
 0x18d   : > { %v1401_v38 = vmul.f32 %v5883_v13, %v1113_v36  ;;  %v1571_v57 = vadd.f32 %v3342_v15, %v1396_v30  ;;  %v1572_v37 = vadd.f32 %v3344_v12, %v1397_v16  ;;  %v1104_v55 = vmul.f32 %v2012_v11, %v3330_v41  ;;  %v5885_v36 = vld [vmem:[#allocation63_spill] sm:$0xff] }
 0x18e   : > { %v1573_v31 = vadd.f32 %v3348_v23, %v1398_v59  ;;  %v1574_v24 = vadd.f32 %v3350_v21, %v1399_v3  ;;  %v1575_v63 = vadd.f32 %v3352_v8, %v1400_v19  ;;  %v1105_v25 = vmul.f32 %v2012_v11, %v3332_v2  ;;  %v5891_v59 = vld [vmem:[#allocation80_spill] sm:$0xff]  ;;  %v5893_v3 = vld [vmem:[#allocation81_spill] sm:$0xff]  ;;  %v5895_v19 = vld [vmem:[#allocation82_spill] sm:$0xff] }
 0x18f   : > { %v1576_v47 = vadd.f32 %v3371_v10, %v1401_v38  ;;  %1715 = vst [vmem:[%s4131_s23 + $0x210] sm:$0xff] %v1571_v57  ;;  %1716 = vst [vmem:[%s4131_s23 + $0x218] sm:$0xff] %v1572_v37  ;;  %v1106_v5 = vmul.f32 %v2012_v11, %v3334_v18  ;;  %v1107_v27 = vmul.f32 %v2012_v11, %v3340_v43  ;;  %v5889_v11 = vld [vmem:[#allocation79_spill] sm:$0xff]  ;;  %v4613_v38 = vpop.eup %2019  ;;  %2025 = vrsqrt.f32 %v4501_v50 }
 0x190   : > { %1717 = vst [vmem:[%s4131_s23 + $0x220] sm:$0xff] %v1573_v31  ;;  %1718 = vst [vmem:[%s4131_s23 + $0x228] sm:$0xff] %v1574_v24  ;;  %v5886_v54 = vsub.f32 %v5884_v60, %v5885_v36  ;;  %v5888_v30 = vsub.f32 %v5887_v7, %v5885_v36  ;;  %v1120_v44 = vmul.f32 %v2014_v35, %v3326_v6  ;;  %v5898_v60 = vld [vmem:[#allocation70_spill] sm:$0xff]  ;;  %2027 = vrsqrt.f32 %v4533_v4 }
 0x191   : > { %1719 = vst [vmem:[%s4131_s23 + $0x230] sm:$0xff] %v1575_v63  ;;  %1720 = vst [vmem:[%s4131_s23 + $0x238] sm:$0xff] %v1576_v47  ;;  %v1121_v16 = vmul.f32 %v2014_v35, %v3328_v40  ;;  %v5890_v0 = vsub.f32 %v5889_v11, %v5885_v36  ;;  %v5892_v53 = vsub.f32 %v5891_v59, %v5885_v36  ;;  %v957_v50 = vmax.f32 %v933_v61, 0.0  ;;  %v4883_v61 = vld [vmem:[%s2494_s9 + $0x3b0] sm:$0xff] }
 0x192   : > { %v1390_v32 = vmul.f32 %v5886_v54, %v1102_v33  ;;  %v1391_v52 = vmul.f32 %v5888_v30, %v1103_v29  ;;  %v5894_v20 = vsub.f32 %v5893_v3, %v5885_v36  ;;  %v5896_v39 = vsub.f32 %v5895_v19, %v5885_v36 }
 0x193   : > { %v1392_v46 = vmul.f32 %v5890_v0, %v1104_v55  ;;  %v1393_v28 = vmul.f32 %v5892_v53, %v1105_v25  ;;  %v1122_v33 = vmul.f32 %v2014_v35, %v3330_v41  ;;  %v1123_v29 = vmul.f32 %v2014_v35, %v3332_v2  ;;  %v4623_v55 = vpop.eup %2021 }
 0x194   : > { %v1394_v49 = vmul.f32 %v5894_v20, %v1106_v5  ;;  %v1395_v13 = vmul.f32 %v5896_v39, %v1107_v27  ;;  %v1565_v57 = vadd.f32 %v3342_v15, %v1390_v32  ;;  %v1566_v37 = vadd.f32 %v3344_v12, %v1391_v52  ;;  %v5897_v27 = vld [vmem:[#allocation83_spill] sm:$0xff]  ;;  %v5900_v32 = vld [vmem:[#allocation84_spill] sm:$0xff]  ;;  %v5902_v52 = vld [vmem:[#allocation85_spill] sm:$0xff] }
 0x195   : > { %v1567_v31 = vadd.f32 %v3348_v23, %v1392_v46  ;;  %v1568_v24 = vadd.f32 %v3350_v21, %v1393_v28  ;;  %v1124_v25 = vmul.f32 %v2014_v35, %v3334_v18  ;;  %v1125_v5 = vmul.f32 %v2014_v35, %v3340_v43  ;;  %v5904_v46 = vld [vmem:[#allocation86_spill] sm:$0xff]  ;;  %v5906_v28 = vld [vmem:[#allocation87_spill] sm:$0xff]  ;;  %v5908_v20 = vld [vmem:[#allocation89_spill] sm:$0xff] }
 0x196   : > { %v1569_v63 = vadd.f32 %v3352_v8, %v1394_v49  ;;  %v1570_v47 = vadd.f32 %v3371_v10, %v1395_v13  ;;  %1709 = vst [vmem:[%s4131_s23 + $0x1e0] sm:$0xff] %v1565_v57  ;;  %1710 = vst [vmem:[%s4131_s23 + $0x1e8] sm:$0xff] %v1566_v37  ;;  %v5899_v36 = vsub.f32 %v5897_v27, %v5898_v60 }
 0x197   : > { %v5901_v7 = vsub.f32 %v5900_v32, %v5898_v60  ;;  %1711 = vst [vmem:[%s4131_s23 + $0x1f0] sm:$0xff] %v1567_v31  ;;  %1712 = vst [vmem:[%s4131_s23 + $0x1f8] sm:$0xff] %v1568_v24  ;;  %v5903_v11 = vsub.f32 %v5902_v52, %v5898_v60  ;;  %v5905_v35 = vsub.f32 %v5904_v46, %v5898_v60  ;;  %v4659_v31 = vpop.eup %2023 }
 0x198   : > { %v1408_v54 = vmul.f32 %v5899_v36, %v1120_v44  ;;  %1713 = vst [vmem:[%s4131_s23 + $0x200] sm:$0xff] %v1569_v63  ;;  %1714 = vst [vmem:[%s4131_s23 + $0x208] sm:$0xff] %v1570_v47  ;;  %v1114_v44 = vmul.f32 %v2016_v48, %v3326_v6  ;;  %v1115_v53 = vmul.f32 %v2016_v48, %v3328_v40  ;;  %v5912_v36 = vld [vmem:[#allocation93_spill] sm:$0xff] }
 0x199   : > { %v1409_v30 = vmul.f32 %v5901_v7, %v1121_v16  ;;  %v1410_v0 = vmul.f32 %v5903_v11, %v1122_v33  ;;  %v1411_v59 = vmul.f32 %v5905_v35, %v1123_v29  ;;  %v5907_v16 = vsub.f32 %v5906_v28, %v5898_v60  ;;  %v5914_v7 = vld [vmem:[#allocation94_spill] sm:$0xff]  ;;  %v5916_v11 = vld [vmem:[#allocation96_spill] sm:$0xff] }
 0x19a   : > { %v5909_v49 = vsub.f32 %v5908_v20, %v5898_v60  ;;  %v1583_v39 = vadd.f32 %v3342_v15, %v1408_v54  ;;  %v1116_v33 = vmul.f32 %v2016_v48, %v3330_v41  ;;  %v1117_v29 = vmul.f32 %v2016_v48, %v3332_v2 }
 0x19b   : > { %v1412_v3 = vmul.f32 %v5907_v16, %v1124_v25  ;;  %v1584_v13 = vadd.f32 %v3344_v12, %v1409_v30  ;;  %v1585_v57 = vadd.f32 %v3348_v23, %v1410_v0  ;;  %v1586_v37 = vadd.f32 %v3350_v21, %v1411_v59 }
 0x19c   : > { %v1413_v19 = vmul.f32 %v5909_v49, %v1125_v5  ;;  %1727 = vst [vmem:[%s4131_s23 + $0x270] sm:$0xff] %v1583_v39  ;;  %v1118_v47 = vmul.f32 %v2016_v48, %v3334_v18  ;;  %v1119_v25 = vmul.f32 %v2016_v48, %v3340_v43  ;;  %v5910_v5 = vld [vmem:[#allocation92_spill] sm:$0xff]  ;;  %v5913_v54 = vsub.f32 %v5912_v36, %v3798_v62  ;;  %v5918_v48 = vld [vmem:[#allocation97_spill] sm:$0xff] }
 0x19d   : > { %v1587_v24 = vadd.f32 %v3352_v8, %v1412_v3  ;;  %1728 = vst [vmem:[%s4131_s23 + $0x278] sm:$0xff] %v1584_v13  ;;  %1729 = vst [vmem:[%s4131_s23 + $0x280] sm:$0xff] %v1585_v57  ;;  %v5911_v27 = vsub.f32 %v5910_v5, %v3798_v62  ;;  %v5915_v30 = vsub.f32 %v5914_v7, %v3798_v62  ;;  %v5925_v5 = vld [vmem:[#allocation100_spill] sm:$0xff]  ;;  %v5927_v36 = vld [vmem:[#allocation101_spill] sm:$0xff] }
 0x19e   : > { %v1588_v63 = vadd.f32 %v3371_v10, %v1413_v19  ;;  %1730 = vst [vmem:[%s4131_s23 + $0x288] sm:$0xff] %v1586_v37  ;;  %v1403_v32 = vmul.f32 %v5913_v54, %v1115_v53  ;;  %v5917_v0 = vsub.f32 %v5916_v11, %v3798_v62  ;;  %v5919_v35 = vsub.f32 %v5918_v48, %v3798_v62  ;;  %v5929_v7 = vld [vmem:[#allocation102_spill] sm:$0xff] }
 0x19f   : > { %v1402_v60 = vmul.f32 %v5911_v27, %v1114_v44  ;;  %v1404_v52 = vmul.f32 %v5915_v30, %v1116_v33  ;;  %1731 = vst [vmem:[%s4131_s23 + $0x290] sm:$0xff] %v1587_v24  ;;  %v5920_v44 = vld [vmem:[#allocation98_spill] sm:$0xff]  ;;  %v1132_v16 = vmul.f32 %v4587_v26, %v3326_v6  ;;  %v1133_v3 = vmul.f32 %v4587_v26, %v3328_v40  ;;  %v5922_v24 = vld [vmem:[#allocation99_spill] sm:$0xff] }
 0x1a0   : > { %v1405_v46 = vmul.f32 %v5917_v0, %v1117_v29  ;;  %1732 = vst [vmem:[%s4131_s23 + $0x298] sm:$0xff] %v1588_v63  ;;  %v1406_v59 = vmul.f32 %v5919_v35, %v1118_v47  ;;  %v5921_v53 = vsub.f32 %v5920_v44, %v3798_v62  ;;  %v1578_v49 = vadd.f32 %v3344_v12, %v1403_v32  ;;  %v5923_v63 = vld [vmem:[#allocation88_spill] sm:$0xff]  ;;  %v5931_v0 = vld [vmem:[#allocation103_spill] sm:$0xff] }
 0x1a1   : > { %v1577_v20 = vadd.f32 %v3342_v15, %v1402_v60  ;;  %v1579_v19 = vadd.f32 %v3348_v23, %v1404_v52  ;;  %v1134_v57 = vmul.f32 %v4587_v26, %v3330_v41  ;;  %v1135_v37 = vmul.f32 %v4587_v26, %v3332_v2  ;;  %v5933_v35 = vld [vmem:[#allocation44_spill] sm:$0xff] }
 0x1a2   : > { %v1407_v28 = vmul.f32 %v5921_v53, %v1119_v25  ;;  %v1580_v39 = vadd.f32 %v3350_v21, %v1405_v46  ;;  %v1581_v13 = vadd.f32 %v3352_v8, %v1406_v59  ;;  %1722 = vst [vmem:[%s4131_s23 + $0x248] sm:$0xff] %v1578_v49  ;;  %v1136_v33 = vmul.f32 %v4587_v26, %v3334_v18 }
 0x1a3   : > { %1721 = vst [vmem:[%s4131_s23 + $0x240] sm:$0xff] %v1577_v20  ;;  %1723 = vst [vmem:[%s4131_s23 + $0x250] sm:$0xff] %v1579_v19  ;;  %v1137_v29 = vmul.f32 %v4587_v26, %v3340_v43  ;;  %v5924_v47 = vsub.f32 %v5922_v24, %v5923_v63  ;;  %v5926_v27 = vsub.f32 %v5925_v5, %v5923_v63  ;;  %v5938_v24 = vld [vmem:[#allocation105_spill] sm:$0xff] }
 0x1a4   : > { %v1582_v62 = vadd.f32 %v3371_v10, %v1407_v28  ;;  %1724 = vst [vmem:[%s4131_s23 + $0x258] sm:$0xff] %v1580_v39  ;;  %1725 = vst [vmem:[%s4131_s23 + $0x260] sm:$0xff] %v1581_v13  ;;  %v5928_v54 = vsub.f32 %v5927_v36, %v5923_v63  ;;  %v5930_v30 = vsub.f32 %v5929_v7, %v5923_v63 }
 0x1a5   : > { %v1420_v25 = vmul.f32 %v5924_v47, %v1132_v16  ;;  %v1421_v60 = vmul.f32 %v5926_v27, %v1133_v3  ;;  %v1126_v52 = vmul.f32 %v4613_v38, %v3326_v6  ;;  %v1127_v11 = vmul.f32 %v4613_v38, %v3328_v40 }
 0x1a6   : > { %1726 = vst [vmem:[%s4131_s23 + $0x268] sm:$0xff] %v1582_v62  ;;  %v1422_v32 = vmul.f32 %v5928_v54, %v1134_v57  ;;  %v1423_v26 = vmul.f32 %v5930_v30, %v1135_v37  ;;  %v5932_v46 = vsub.f32 %v5931_v0, %v5923_v63  ;;  %v5934_v59 = vsub.f32 %v5933_v35, %v5923_v63  ;;  %v5935_v57 = vld [vmem:[#allocation104_spill] sm:$0xff]  ;;  %v5936_v37 = vld [vmem:[#allocation90_spill] sm:$0xff]  ;;  %v5946_v30 = vld [vmem:[#allocation49_spill] sm:$0xff] }
 0x1a7   : > { %v1595_v53 = vadd.f32 %v3342_v15, %v1420_v25  ;;  %v1596_v28 = vadd.f32 %v3344_v12, %v1421_v60  ;;  %v1128_v20 = vmul.f32 %v4613_v38, %v3330_v41  ;;  %v1129_v49 = vmul.f32 %v4613_v38, %v3332_v2  ;;  %v5940_v25 = vld [vmem:[#allocation106_spill] sm:$0xff]  ;;  %v5942_v60 = vld [vmem:[#allocation107_spill] sm:$0xff] }
 0x1a8   : > { %v1424_v48 = vmul.f32 %v5932_v46, %v1136_v33  ;;  %v1425_v44 = vmul.f32 %v5934_v59, %v1137_v29  ;;  %v1597_v16 = vadd.f32 %v3348_v23, %v1422_v32  ;;  %v1598_v3 = vadd.f32 %v3350_v21, %v1423_v26 }
 0x1a9   : > { %1739 = vst [vmem:[%s4131_s23 + $0x2d0] sm:$0xff] %v1595_v53  ;;  %1740 = vst [vmem:[%s4131_s23 + $0x2d8] sm:$0xff] %v1596_v28  ;;  %v1130_v13 = vmul.f32 %v4613_v38, %v3334_v18  ;;  %v1131_v62 = vmul.f32 %v4613_v38, %v3340_v43  ;;  %v5937_v33 = vsub.f32 %v5935_v57, %v5936_v37  ;;  %v5944_v38 = vld [vmem:[#allocation108_spill] sm:$0xff] }
 0x1aa   : > { %v1599_v19 = vadd.f32 %v3352_v8, %v1424_v48  ;;  %v1600_v39 = vadd.f32 %v3371_v10, %v1425_v44  ;;  %1741 = vst [vmem:[%s4131_s23 + $0x2e0] sm:$0xff] %v1597_v16  ;;  %1742 = vst [vmem:[%s4131_s23 + $0x2e8] sm:$0xff] %v1598_v3  ;;  %v5939_v63 = vsub.f32 %v5938_v24, %v5936_v37  ;;  %v5954_v24 = vld [vmem:[#allocation112_spill] sm:$0xff] }
 0x1ab   : > { %v1414_v29 = vmul.f32 %v5937_v33, %v1126_v52  ;;  %v5941_v5 = vsub.f32 %v5940_v25, %v5936_v37  ;;  %v5943_v36 = vsub.f32 %v5942_v60, %v5936_v37  ;;  %v5945_v32 = vsub.f32 %v5944_v38, %v5936_v37 }
 0x1ac   : > { %v1415_v47 = vmul.f32 %v5939_v63, %v1127_v11  ;;  %1743 = vst [vmem:[%s4131_s23 + $0x2f0] sm:$0xff] %v1599_v19  ;;  %1744 = vst [vmem:[%s4131_s23 + $0x2f8] sm:$0xff] %v1600_v39  ;;  %v5947_v26 = vsub.f32 %v5946_v30, %v5936_v37  ;;  %v1144_v11 = vmul.f32 %v4623_v55, %v3326_v6  ;;  %v5952_v37 = vld [vmem:[#allocation111_spill] sm:$0xff] }
 0x1ad   : > { %v1416_v27 = vmul.f32 %v5941_v5, %v1128_v20  ;;  %v1417_v54 = vmul.f32 %v5943_v36, %v1129_v49  ;;  %v1418_v7 = vmul.f32 %v5945_v32, %v1130_v13  ;;  %v1145_v0 = vmul.f32 %v4623_v55, %v3328_v40  ;;  %v5948_v49 = vld [vmem:[#allocation109_spill] sm:$0xff]  ;;  %v5950_v13 = vld [vmem:[#allocation110_spill] sm:$0xff] }
 0x1ae   : > { %v1419_v52 = vmul.f32 %v5947_v26, %v1131_v62  ;;  %v1589_v46 = vadd.f32 %v3342_v15, %v1414_v29  ;;  %v1590_v48 = vadd.f32 %v3344_v12, %v1415_v47  ;;  %v1146_v28 = vmul.f32 %v4623_v55, %v3330_v41  ;;  %v5956_v5 = vld [vmem:[#allocation113_spill] sm:$0xff]  ;;  %v5958_v36 = vld [vmem:[#allocation114_spill] sm:$0xff] }
 0x1af   : > { %v1591_v35 = vadd.f32 %v3348_v23, %v1416_v27  ;;  %v1592_v59 = vadd.f32 %v3350_v21, %v1417_v54  ;;  %v1593_v44 = vadd.f32 %v3352_v8, %v1418_v7  ;;  %v1147_v16 = vmul.f32 %v4623_v55, %v3332_v2 }
 0x1b0   : > { %v1594_v53 = vadd.f32 %v3371_v10, %v1419_v52  ;;  %1733 = vst [vmem:[%s4131_s23 + $0x2a0] sm:$0xff] %v1589_v46  ;;  %1734 = vst [vmem:[%s4131_s23 + $0x2a8] sm:$0xff] %v1590_v48  ;;  %v1148_v3 = vmul.f32 %v4623_v55, %v3334_v18  ;;  %v1149_v20 = vmul.f32 %v4623_v55, %v3340_v43 }
 0x1b1   : > { %1735 = vst [vmem:[%s4131_s23 + $0x2b0] sm:$0xff] %v1591_v35  ;;  %1736 = vst [vmem:[%s4131_s23 + $0x2b8] sm:$0xff] %v1592_v59  ;;  %v5949_v19 = vsub.f32 %v5948_v49, %v3945_v45  ;;  %v5951_v62 = vsub.f32 %v5950_v13, %v3945_v45  ;;  %v5953_v33 = vsub.f32 %v5952_v37, %v3945_v45  ;;  %v5960_v35 = vld [vmem:[#allocation115_spill] sm:$0xff]  ;;  %v5970_v37 = vld [vmem:[#allocation120_spill] sm:$0xff] }
 0x1b2   : > { %1737 = vst [vmem:[%s4131_s23 + $0x2c0] sm:$0xff] %v1593_v44  ;;  %1738 = vst [vmem:[%s4131_s23 + $0x2c8] sm:$0xff] %v1594_v53  ;;  %v5955_v63 = vsub.f32 %v5954_v24, %v3945_v45  ;;  %v1138_v47 = vmul.f32 %v4659_v31, %v3326_v6  ;;  %v1139_v25 = vmul.f32 %v4659_v31, %v3328_v40  ;;  %v5962_v53 = vld [vmem:[#allocation116_spill] sm:$0xff]  ;;  %v982_v24 = vadd.f32 1e-12, %v4559_v1 }
 0x1b3   : > { %v1432_v39 = vmul.f32 %v5949_v19, %v1144_v11  ;;  %v1433_v57 = vmul.f32 %v5951_v62, %v1145_v0  ;;  %v1434_v29 = vmul.f32 %v5953_v33, %v1146_v28  ;;  %v5957_v27 = vsub.f32 %v5956_v5, %v3945_v45  ;;  %v5966_v19 = vld [vmem:[#allocation118_spill] sm:$0xff]  ;;  %v4870_v1 = vld [vmem:[%s2494_s9 + $0x3a8] sm:$0xff] }
 0x1b4   : > { %v1435_v55 = vmul.f32 %v5955_v63, %v1147_v16  ;;  %v5959_v54 = vsub.f32 %v5958_v36, %v3945_v45  ;;  %v1140_v52 = vmul.f32 %v4659_v31, %v3330_v41  ;;  %v1141_v11 = vmul.f32 %v4659_v31, %v3332_v2  ;;  %v833_v63 = vpop.xlane.xlu0 %832 }
 0x1b5   : > { %v1436_v60 = vmul.f32 %v5957_v27, %v1148_v3  ;;  %v1607_v32 = vadd.f32 %v3342_v15, %v1432_v39  ;;  %v1608_v7 = vadd.f32 %v3344_v12, %v1433_v57  ;;  %v1609_v30 = vadd.f32 %v3348_v23, %v1434_v29  ;;  %v5964_v3 = vld [vmem:[#allocation117_spill] sm:$0xff] }
 0x1b6   : > { %v1437_v38 = vmul.f32 %v5959_v54, %v1149_v20  ;;  %v1610_v26 = vadd.f32 %v3350_v21, %v1435_v55  ;;  %v1142_v46 = vmul.f32 %v4659_v31, %v3334_v18  ;;  %v1143_v48 = vmul.f32 %v4659_v31, %v3340_v43  ;;  %v5968_v31 = vld [vmem:[#allocation119_spill] sm:$0xff]  ;;  %v4888_v54 = vld [vmem:[%s2494_s9 + $0x3b8] sm:$0xff] }
 0x1b7   : > { %v1611_v0 = vadd.f32 %v3352_v8, %v1436_v60  ;;  %1751 = vst [vmem:[%s4131_s23 + $0x330] sm:$0xff] %v1607_v32  ;;  %1752 = vst [vmem:[%s4131_s23 + $0x338] sm:$0xff] %v1608_v7  ;;  %v5961_v59 = vsub.f32 %v5960_v35, %v3951_v56  ;;  %v5963_v28 = vsub.f32 %v5962_v53, %v3951_v56  ;;  %v887_v9 = vmul.f32 0.0013020834, %v833_v63  ;;  %v4893_v32 = vld [vmem:[%s2494_s9 + $0x360] sm:$0xff]  ;;  %v4898_v7 = vld [vmem:[%s2494_s9 + $0x368] sm:$0xff] }
 0x1b8   : > { %v1612_v45 = vadd.f32 %v3371_v10, %v1437_v38  ;;  %1753 = vst [vmem:[%s4131_s23 + $0x340] sm:$0xff] %v1609_v30  ;;  %1754 = vst [vmem:[%s4131_s23 + $0x348] sm:$0xff] %v1610_v26  ;;  %v5965_v20 = vsub.f32 %v5964_v3, %v3951_v56  ;;  %v5967_v39 = vsub.f32 %v5966_v19, %v3951_v56  ;;  %v4905_v26 = vld [vmem:[%s2494_s9 + $0x370] sm:$0xff]  ;;  %2029 = vrsqrt.f32 %v982_v24  ;;  %v4935_v19 = vld [vmem:[%s2494_s9 + $0x400] sm:$0xff] }
 0x1b9   : > { %v1426_v44 = vmul.f32 %v5961_v59, %v1138_v47  ;;  %v1427_v16 = vmul.f32 %v5963_v28, %v1139_v25  ;;  %1755 = vst [vmem:[%s4131_s23 + $0x350] sm:$0xff] %v1611_v0  ;;  %v5969_v62 = vsub.f32 %v5968_v31, %v3951_v56  ;;  %v5971_v33 = vsub.f32 %v5970_v37, %v3951_v56  ;;  %v4920_v59 = vld [vmem:[%s2494_s9 + $0x388] sm:$0xff]  ;;  %v4925_v28 = vld [vmem:[%s2494_s9 + $0x3f0] sm:$0xff]  ;;  %v4955_v24 = vld [vmem:[%s2494_s9 + $0x3c0] sm:$0xff] }
 0x1ba   : > { %v1428_v49 = vmul.f32 %v5965_v20, %v1140_v52  ;;  %v1429_v13 = vmul.f32 %v5967_v39, %v1141_v11  ;;  %1756 = vst [vmem:[%s4131_s23 + $0x358] sm:$0xff] %v1612_v45  ;;  %v936_v4 = vsub.f32 %v4503_v22, %v4497_v58  ;;  %v911_v42 = vmul.f32 %v4077_v14, %v4077_v14  ;;  %v5972_v58 = vld [vmem:[#allocation123_spill] sm:$0xff]  ;;  %v4910_v45 = vld [vmem:[%s2494_s9 + $0x378] sm:$0xff]  ;;  %v5025_v3 = vld [vmem:[%s2494_s9 + $0x430] sm:$0xff] }
 0x1bb   : > { %v1430_v57 = vmul.f32 %v5969_v62, %v1142_v46  ;;  %v1431_v29 = vmul.f32 %v5971_v33, %v1143_v48  ;;  %v1601_v55 = vadd.f32 %v3342_v15, %v1426_v44  ;;  %v1602_v47 = vadd.f32 %v3344_v12, %v1427_v16  ;;  %v4915_v48 = vld [vmem:[%s2494_s9 + $0x380] sm:$0xff]  ;;  %v5973_v16 = vld [vmem:[#allocation125_spill] sm:$0xff]  ;;  %v4940_v31 = vld [vmem:[%s2494_s9 + $0x408] sm:$0xff]  ;;  %5977 = vst [vmem:[#allocation22_spill] sm:$0xff] %v5025_v3 }
 0x1bc   : > { %v1603_v25 = vadd.f32 %v3348_v23, %v1428_v49  ;;  %v1604_v5 = vadd.f32 %v3350_v21, %v1429_v13  ;;  %v960_v11 = vmax.f32 %v936_v4, 0.0  ;;  %v935_v0 = vsub.f32 %v887_v9, %v911_v42  ;;  %v4930_v20 = vld [vmem:[%s2494_s9 + $0x3f8] sm:$0xff]  ;;  %v4975_v4 = vld [vmem:[%s2494_s9 + $0x3e0] sm:$0xff]  ;;  %v4980_v9 = vld [vmem:[%s2494_s9 + $0x3e8] sm:$0xff] }
 0x1bd   : > { %v1605_v56 = vadd.f32 %v3352_v8, %v1430_v57  ;;  %v1606_v27 = vadd.f32 %v3371_v10, %v1431_v29  ;;  %1745 = vst [vmem:[%s4131_s23 + $0x300] sm:$0xff] %v1601_v55  ;;  %1746 = vst [vmem:[%s4131_s23 + $0x308] sm:$0xff] %v1602_v47  ;;  %v981_v53 = vadd.f32 1e-12, %v957_v50  ;;  %v4945_v57 = vld [vmem:[%s2494_s9 + $0x410] sm:$0xff]  ;;  %v4950_v33 = vld [vmem:[%s2494_s9 + $0x418] sm:$0xff]  ;;  %v2026_v29 = vpop.eup %2025  ;;  %v5987_v47 = vsub.f32 %v4870_v1, %v3954_v17 }
 0x1be   : > { %1747 = vst [vmem:[%s4131_s23 + $0x310] sm:$0xff] %v1603_v25  ;;  %1748 = vst [vmem:[%s4131_s23 + $0x318] sm:$0xff] %v1604_v5  ;;  %v959_v13 = vmax.f32 %v935_v0, 0.0  ;;  %v4960_v55 = vld [vmem:[%s2494_s9 + $0x3c8] sm:$0xff]  ;;  %v4965_v25 = vld [vmem:[%s2494_s9 + $0x3d0] sm:$0xff]  ;;  %v1156_v46 = vmul.f32 %v2026_v29, %v3326_v6  ;;  %v1158_v52 = vmul.f32 %v2026_v29, %v3330_v41  ;;  %v1159_v30 = vmul.f32 %v2026_v29, %v3332_v2  ;;  %v2028_v37 = vpop.eup %2027 }
 0x1bf   : > { %1749 = vst [vmem:[%s4131_s23 + $0x320] sm:$0xff] %v1605_v56  ;;  %1750 = vst [vmem:[%s4131_s23 + $0x328] sm:$0xff] %v1606_v27  ;;  %v4970_v56 = vld [vmem:[%s2494_s9 + $0x3d8] sm:$0xff]  ;;  %v984_v50 = vadd.f32 1e-12, %v960_v11  ;;  %v4985_v5 = vld [vmem:[%s2494_s9 + $0x450] sm:$0xff]  ;;  %2031 = vrsqrt.f32 %v981_v53  ;;  %v1160_v38 = vmul.f32 %v2026_v29, %v3334_v18  ;;  %v1161_v36 = vmul.f32 %v2026_v29, %v3340_v43 }
 0x1c0   : > { %v4990_v11 = vld [vmem:[%s2494_s9 + $0x458] sm:$0xff]  ;;  %v4995_v42 = vld [vmem:[%s2494_s9 + $0x460] sm:$0xff]  ;;  %v5000_v0 = vld [vmem:[%s2494_s9 + $0x468] sm:$0xff]  ;;  %v983_v27 = vadd.f32 1e-12, %v959_v13  ;;  %v1157_v13 = vmul.f32 %v2026_v29, %v3328_v40  ;;  %v5988_v29 = vsub.f32 %v4883_v61, %v3954_v17 }
 0x1c1   : > { %v5005_v53 = vld [vmem:[%s2494_s9 + $0x470] sm:$0xff]  ;;  %v5010_v62 = vld [vmem:[%s2494_s9 + $0x478] sm:$0xff]  ;;  %v5015_v39 = vld [vmem:[%s2494_s9 + $0x420] sm:$0xff]  ;;  %2033 = vrsqrt.f32 %v984_v50 }
 0x1c2   : > { %5974 = vst [vmem:[#allocation19_spill] sm:$0xff] %v5010_v62  ;;  %5975 = vst [vmem:[#allocation21_spill] sm:$0xff] %v5015_v39  ;;  %v5020_v49 = vld [vmem:[%s2494_s9 + $0x428] sm:$0xff]  ;;  %v5030_v44 = vld [vmem:[%s2494_s9 + $0x438] sm:$0xff]  ;;  %2035 = vrsqrt.f32 %v983_v27  ;;  %v1448_v27 = vmul.f32 %v5988_v29, %v1160_v38  ;;  %v5993_v29 = vsub.f32 %v4910_v45, %v5972_v58 }
 0x1c3   : > { %5976 = vst [vmem:[#allocation20_spill] sm:$0xff] %v5020_v49  ;;  %5978 = vst [vmem:[#allocation23_spill] sm:$0xff] %v5030_v44  ;;  %v5035_v35 = vld [vmem:[%s2494_s9 + $0x440] sm:$0xff]  ;;  %v5044_v22 = vld [vmem:[%s2494_s9 + $0x448] sm:$0xff] }
 0x1c4   : > { %5979 = vst [vmem:[#allocation13_spill] sm:$0xff] %v5035_v35  ;;  %5980 = vst [vmem:[#allocation12_spill] sm:$0xff] %v5044_v22  ;;  %v5981_v50 = vld [vmem:[#allocation121_spill] sm:$0xff]  ;;  %v5983_v35 = vld [vmem:[#allocation122_spill] sm:$0xff]  ;;  %v1447_v22 = vmul.f32 %v5987_v47, %v1159_v30  ;;  %v1623_v30 = vadd.f32 %v3352_v8, %v1448_v27 }
 0x1c5   : > { %v5982_v63 = vsub.f32 %v5981_v50, %v3954_v17  ;;  %v5984_v44 = vsub.f32 %v5983_v35, %v3954_v17  ;;  %v5985_v49 = vld [vmem:[#allocation124_spill] sm:$0xff] }
 0x1c6   : > { %v5986_v39 = vsub.f32 %v5985_v49, %v3954_v17  ;;  %v1151_v49 = vmul.f32 %v2028_v37, %v3328_v40  ;;  %v1622_v38 = vadd.f32 %v3350_v21, %v1447_v22  ;;  %1767 = vst [vmem:[%s4131_s23 + $0x3b0] sm:$0xff] %v1623_v30 }
 0x1c7   : > { %v1444_v60 = vmul.f32 %v5982_v63, %v1156_v46  ;;  %v1445_v3 = vmul.f32 %v5984_v44, %v1157_v13  ;;  %v5989_v46 = vsub.f32 %v4888_v54, %v3954_v17  ;;  %v1150_v44 = vmul.f32 %v2028_v37, %v3326_v6 }
 0x1c8   : > { %v1446_v62 = vmul.f32 %v5986_v39, %v1158_v52  ;;  %v2030_v52 = vpop.eup %2029  ;;  %v1153_v54 = vmul.f32 %v2028_v37, %v3332_v2  ;;  %1766 = vst [vmem:[%s4131_s23 + $0x3a8] sm:$0xff] %v1622_v38  ;;  %v5991_v63 = vsub.f32 %v4898_v7, %v5972_v58  ;;  %v5992_v13 = vsub.f32 %v4905_v26, %v5972_v58 }
 0x1c9   : > { %v1449_v35 = vmul.f32 %v5989_v46, %v1161_v36  ;;  %v1619_v39 = vadd.f32 %v3342_v15, %v1444_v60  ;;  %v1620_v1 = vadd.f32 %v3344_v12, %v1445_v3  ;;  %v1152_v36 = vmul.f32 %v2028_v37, %v3330_v41 }
 0x1ca   : > { %v1621_v61 = vadd.f32 %v3348_v23, %v1446_v62  ;;  %v1154_v60 = vmul.f32 %v2028_v37, %v3334_v18  ;;  %v1155_v3 = vmul.f32 %v2028_v37, %v3340_v43  ;;  %v5990_v62 = vsub.f32 %v4893_v32, %v5972_v58 }
 0x1cb   : > { %v1624_v17 = vadd.f32 %v3371_v10, %v1449_v35  ;;  %1763 = vst [vmem:[%s4131_s23 + $0x390] sm:$0xff] %v1619_v39  ;;  %1764 = vst [vmem:[%s4131_s23 + $0x398] sm:$0xff] %v1620_v1  ;;  %v1439_v47 = vmul.f32 %v5991_v63, %v1151_v49  ;;  %v1440_v50 = vmul.f32 %v5992_v13, %v1152_v36 }
 0x1cc   : > { %1765 = vst [vmem:[%s4131_s23 + $0x3a0] sm:$0xff] %v1621_v61  ;;  %v1438_v22 = vmul.f32 %v5990_v62, %v1150_v44  ;;  %v1441_v37 = vmul.f32 %v5993_v29, %v1153_v54  ;;  %v1168_v27 = vmul.f32 %v2030_v52, %v3326_v6  ;;  %v1169_v32 = vmul.f32 %v2030_v52, %v3328_v40  ;;  %v2032_v49 = vpop.eup %2031 }
 0x1cd   : > { %1768 = vst [vmem:[%s4131_s23 + $0x3b8] sm:$0xff] %v1624_v17  ;;  %v5994_v7 = vsub.f32 %v4915_v48, %v5972_v58  ;;  %v5995_v35 = vsub.f32 %v4920_v59, %v5972_v58  ;;  %v1614_v45 = vadd.f32 %v3344_v12, %v1439_v47  ;;  %v1615_v39 = vadd.f32 %v3348_v23, %v1440_v50 }
 0x1ce   : > { %v1613_v44 = vadd.f32 %v3342_v15, %v1438_v22  ;;  %v1616_v1 = vadd.f32 %v3350_v21, %v1441_v37  ;;  %v1170_v61 = vmul.f32 %v2030_v52, %v3330_v41  ;;  %v1171_v48 = vmul.f32 %v2030_v52, %v3332_v2  ;;  %v2034_v47 = vpop.eup %2033 }
 0x1cf   : > { %v1442_v46 = vmul.f32 %v5994_v7, %v1154_v60  ;;  %v1443_v26 = vmul.f32 %v5995_v35, %v1155_v3  ;;  %1758 = vst [vmem:[%s4131_s23 + $0x368] sm:$0xff] %v1614_v45  ;;  %v1172_v59 = vmul.f32 %v2030_v52, %v3334_v18  ;;  %v1173_v30 = vmul.f32 %v2030_v52, %v3340_v43 }
 0x1d0   : > { %1757 = vst [vmem:[%s4131_s23 + $0x360] sm:$0xff] %v1613_v44  ;;  %1759 = vst [vmem:[%s4131_s23 + $0x370] sm:$0xff] %v1615_v39  ;;  %v5996_v17 = vsub.f32 %v4925_v28, %v5973_v16  ;;  %v5997_v54 = vsub.f32 %v4930_v20, %v5973_v16  ;;  %v5998_v3 = vsub.f32 %v4935_v19, %v5973_v16 }
 0x1d1   : > { %v1617_v38 = vadd.f32 %v3352_v8, %v1442_v46  ;;  %v1618_v58 = vadd.f32 %v3371_v10, %v1443_v26  ;;  %1760 = vst [vmem:[%s4131_s23 + $0x378] sm:$0xff] %v1616_v1  ;;  %v5999_v22 = vsub.f32 %v4940_v31, %v5973_v16  ;;  %v6000_v28 = vsub.f32 %v4945_v57, %v5973_v16 }
 0x1d2   : > { %v1456_v36 = vmul.f32 %v5996_v17, %v1168_v27  ;;  %v1457_v60 = vmul.f32 %v5997_v54, %v1169_v32  ;;  %v1458_v62 = vmul.f32 %v5998_v3, %v1170_v61  ;;  %v6001_v20 = vsub.f32 %v4950_v33, %v5973_v16  ;;  %v2036_v27 = vpop.eup %2035 }
 0x1d3   : > { %v1459_v63 = vmul.f32 %v5999_v22, %v1171_v48  ;;  %1761 = vst [vmem:[%s4131_s23 + $0x380] sm:$0xff] %v1617_v38  ;;  %1762 = vst [vmem:[%s4131_s23 + $0x388] sm:$0xff] %v1618_v58  ;;  %v1460_v52 = vmul.f32 %v6000_v28, %v1172_v59  ;;  %v1162_v13 = vmul.f32 %v2032_v49, %v3326_v6 }
 0x1d4   : > { %v1461_v19 = vmul.f32 %v6001_v20, %v1173_v30  ;;  %v1163_v31 = vmul.f32 %v2032_v49, %v3328_v40  ;;  %v1631_v50 = vadd.f32 %v3342_v15, %v1456_v36  ;;  %v1632_v29 = vadd.f32 %v3344_v12, %v1457_v60 }
 0x1d5   : > { %v1633_v37 = vadd.f32 %v3348_v23, %v1458_v62  ;;  %v1634_v57 = vadd.f32 %v3350_v21, %v1459_v63  ;;  %v1635_v32 = vadd.f32 %v3352_v8, %v1460_v52  ;;  %v1164_v33 = vmul.f32 %v2032_v49, %v3330_v41 }
 0x1d6   : > { %v1636_v16 = vadd.f32 %v3371_v10, %v1461_v19  ;;  %v1165_v7 = vmul.f32 %v2032_v49, %v3332_v2  ;;  %1775 = vst [vmem:[%s4131_s23 + $0x3f0] sm:$0xff] %v1631_v50  ;;  %1776 = vst [vmem:[%s4131_s23 + $0x3f8] sm:$0xff] %v1632_v29  ;;  %v1166_v46 = vmul.f32 %v2032_v49, %v3334_v18 }
 0x1d7   : > { %1777 = vst [vmem:[%s4131_s23 + $0x400] sm:$0xff] %v1633_v37  ;;  %1778 = vst [vmem:[%s4131_s23 + $0x408] sm:$0xff] %v1634_v57  ;;  %v1167_v35 = vmul.f32 %v2032_v49, %v3340_v43  ;;  %v6002_v26 = vsub.f32 %v4955_v24, %v4057_v51  ;;  %v6003_v45 = vsub.f32 %v4960_v55, %v4057_v51 }
 0x1d8   : > { %1779 = vst [vmem:[%s4131_s23 + $0x410] sm:$0xff] %v1635_v32  ;;  %1780 = vst [vmem:[%s4131_s23 + $0x418] sm:$0xff] %v1636_v16  ;;  %v6004_v1 = vsub.f32 %v4965_v25, %v4057_v51  ;;  %v6005_v48 = vsub.f32 %v4970_v56, %v4057_v51  ;;  %v1180_v38 = vmul.f32 %v2034_v47, %v3326_v6 }
 0x1d9   : > { %v1450_v44 = vmul.f32 %v6002_v26, %v1162_v13  ;;  %v1451_v39 = vmul.f32 %v6003_v45, %v1163_v31  ;;  %v1181_v24 = vmul.f32 %v2034_v47, %v3328_v40  ;;  %v6006_v55 = vsub.f32 %v4975_v4, %v4057_v51  ;;  %v6017_v26 = vld [vmem:[#allocation20_spill] sm:$0xff] }
 0x1da   : > { %v1452_v61 = vmul.f32 %v6004_v1, %v1164_v33  ;;  %v1453_v49 = vmul.f32 %v6005_v48, %v1165_v7  ;;  %v6007_v59 = vsub.f32 %v4980_v9, %v4057_v51  ;;  %v1182_v54 = vmul.f32 %v2034_v47, %v3330_v41  ;;  %v6015_v7 = vld [vmem:[#allocation21_spill] sm:$0xff] }
 0x1db   : > { %v1454_v58 = vmul.f32 %v6006_v55, %v1166_v46  ;;  %v1625_v30 = vadd.f32 %v3342_v15, %v1450_v44  ;;  %v1626_v17 = vadd.f32 %v3344_v12, %v1451_v39  ;;  %v1183_v4 = vmul.f32 %v2034_v47, %v3332_v2  ;;  %v6023_v1 = vld [vmem:[#allocation13_spill] sm:$0xff] }
 0x1dc   : > { %v1455_v25 = vmul.f32 %v6007_v59, %v1167_v35  ;;  %v1627_v56 = vadd.f32 %v3348_v23, %v1452_v61  ;;  %v1628_v36 = vadd.f32 %v3350_v21, %v1453_v49  ;;  %v1184_v51 = vmul.f32 %v2034_v47, %v3334_v18  ;;  %v6025_v49 = vld [vmem:[#allocation12_spill] sm:$0xff] }
 0x1dd   : > { %v1629_v60 = vadd.f32 %v3352_v8, %v1454_v58  ;;  %1769 = vst [vmem:[%s4131_s23 + $0x3c0] sm:$0xff] %v1625_v30  ;;  %1770 = vst [vmem:[%s4131_s23 + $0x3c8] sm:$0xff] %v1626_v17  ;;  %v1185_v9 = vmul.f32 %v2034_v47, %v3340_v43  ;;  %v6008_v62 = vsub.f32 %v4985_v5, %v4074_v34 }
 0x1de   : > { %v1630_v3 = vadd.f32 %v3371_v10, %v1455_v25  ;;  %1771 = vst [vmem:[%s4131_s23 + $0x3d0] sm:$0xff] %v1627_v56  ;;  %1772 = vst [vmem:[%s4131_s23 + $0x3d8] sm:$0xff] %v1628_v36  ;;  %v6009_v63 = vsub.f32 %v4990_v11, %v4074_v34  ;;  %v6010_v52 = vsub.f32 %v4995_v42, %v4074_v34  ;;  %v6013_v11 = vld [vmem:[#allocation19_spill] sm:$0xff] }
 0x1df   : > { %v1468_v22 = vmul.f32 %v6008_v62, %v1180_v38  ;;  %v6011_v19 = vsub.f32 %v5000_v0, %v4074_v34  ;;  %1773 = vst [vmem:[%s4131_s23 + $0x3e0] sm:$0xff] %v1629_v60  ;;  %v6012_v5 = vsub.f32 %v5005_v53, %v4074_v34  ;;  %v6014_v31 = vsub.f32 %v6013_v11, %v4074_v34 }
 0x1e0   : > { %v1469_v28 = vmul.f32 %v6009_v63, %v1181_v24  ;;  %v1470_v20 = vmul.f32 %v6010_v52, %v1182_v54  ;;  %1774 = vst [vmem:[%s4131_s23 + $0x3e8] sm:$0xff] %v1630_v3  ;;  %v1174_v50 = vmul.f32 %v2036_v27, %v3326_v6  ;;  %v1175_v0 = vmul.f32 %v2036_v27, %v3328_v40 }
 0x1e1   : > { %v1471_v13 = vmul.f32 %v6011_v19, %v1183_v4  ;;  %v1472_v47 = vmul.f32 %v6012_v5, %v1184_v51  ;;  %v1473_v42 = vmul.f32 %v6014_v31, %v1185_v9  ;;  %v1643_v29 = vadd.f32 %v3342_v15, %v1468_v22 }
 0x1e2   : > { %v1644_v37 = vadd.f32 %v3344_v12, %v1469_v28  ;;  %v1645_v57 = vadd.f32 %v3348_v23, %v1470_v20  ;;  %v1176_v16 = vmul.f32 %v2036_v27, %v3330_v41  ;;  %v1177_v6 = vmul.f32 %v2036_v27, %v3332_v2  ;;  %v6019_v41 = vld [vmem:[#allocation22_spill] sm:$0xff] }
 0x1e3   : > { %v1646_v53 = vadd.f32 %v3350_v21, %v1471_v13  ;;  %v1647_v32 = vadd.f32 %v3352_v8, %v1472_v47  ;;  %v1648_v34 = vadd.f32 %v3371_v10, %v1473_v42  ;;  %1787 = vst [vmem:[%s4131_s23 + $0x450] sm:$0xff] %v1643_v29  ;;  %v1178_v40 = vmul.f32 %v2036_v27, %v3334_v18 }
 0x1e4   : > { %1788 = vst [vmem:[%s4131_s23 + $0x458] sm:$0xff] %v1644_v37  ;;  %1789 = vst [vmem:[%s4131_s23 + $0x460] sm:$0xff] %v1645_v57  ;;  %v1179_v33 = vmul.f32 %v2036_v27, %v3340_v43  ;;  %v6016_v46 = vsub.f32 %v6015_v7, %v4077_v14  ;;  %v6018_v44 = vsub.f32 %v6017_v26, %v4077_v14  ;;  %v6021_v43 = vld [vmem:[#allocation23_spill] sm:$0xff] }
 0x1e5   : > { %1790 = vst [vmem:[%s4131_s23 + $0x468] sm:$0xff] %v1646_v53  ;;  %1791 = vst [vmem:[%s4131_s23 + $0x470] sm:$0xff] %v1647_v32  ;;  %v6020_v2 = vsub.f32 %v6019_v41, %v4077_v14  ;;  %v6022_v27 = vsub.f32 %v6021_v43, %v4077_v14  ;;  %v6024_v61 = vsub.f32 %v6023_v1, %v4077_v14 }
 0x1e6   : > { %v1462_v35 = vmul.f32 %v6016_v46, %v1174_v50  ;;  %v1463_v45 = vmul.f32 %v6018_v44, %v1175_v0  ;;  %1792 = vst [vmem:[%s4131_s23 + $0x478] sm:$0xff] %v1648_v34  ;;  %v6026_v38 = vsub.f32 %v6025_v49, %v4077_v14 }
 0x1e7   : > { %v1464_v18 = vmul.f32 %v6020_v2, %v1176_v16  ;;  %v1465_v39 = vmul.f32 %v6022_v27, %v1177_v6  ;;  %v1466_v48 = vmul.f32 %v6024_v61, %v1178_v40 }
 0x1e8   : > { %v1467_v24 = vmul.f32 %v6026_v38, %v1179_v33  ;;  %v1637_v55 = vadd.f32 %v3342_v15, %v1462_v35  ;;  %v1638_v58 = vadd.f32 %v3344_v12, %v1463_v45 }
 0x1e9   : > { %v1639_v59 = vadd.f32 %v3348_v23, %v1464_v18  ;;  %v1640_v25 = vadd.f32 %v3350_v21, %v1465_v39  ;;  %v1641_v14 = vadd.f32 %v3352_v8, %v1466_v48 }
 0x1ea   : > { %v1642_v15 = vadd.f32 %v3371_v10, %v1467_v24  ;;  %1781 = vst [vmem:[%s4131_s23 + $0x420] sm:$0xff] %v1637_v55  ;;  %1782 = vst [vmem:[%s4131_s23 + $0x428] sm:$0xff] %v1638_v58 }
 0x1eb   : > { %1783 = vst [vmem:[%s4131_s23 + $0x430] sm:$0xff] %v1639_v59  ;;  %1784 = vst [vmem:[%s4131_s23 + $0x438] sm:$0xff] %v1640_v25 }
 0x1ec   : > { %1785 = vst [vmem:[%s4131_s23 + $0x440] sm:$0xff] %v1641_v14  ;;  %1786 = vst [vmem:[%s4131_s23 + $0x448] sm:$0xff] %v1642_v15 }
 0x1ed   : > { %2272 = shalt.err (!%p2269_p1)
}
 0x1ee   : > { %s2273_s20 = scalar_lea.hbm %s5257_s29, 18432  ;;  %s2277_s4 = scalar_lea.hbm %s5313_s3, 36864 }
 0x1ef   : > { %p2274_p6 = scmp.ne.s32.totalorder %s5257_s29, %s2273_s20  ;;  %p2278_p13 = scmp.lt.s32.totalorder %s5257_s29, %s5313_s3 }
 0x1f0   : > { %p2279_p3 = scmp.lt.s32.totalorder %s2277_s4, %s2273_s20 }
 0x1f1   : > { %p2275_p12 = pnand %p2274_p6, %p6027_p2 }
 0x1f2   : > { %p2280_p7 = por %p2279_p3, %p2278_p13 }
 0x1f3   : > { %p2276_p11 = pneg %p2275_p12 }
 0x1f5   : > { %p2281_p8 = pnand %p2280_p7, %p2276_p11 }
 0x1f7   : > { %2284 = shalt.err (!%p2281_p8)
}
 0x1f8   : > { %s2335_s9 = smov 768   ;;  %s2336_s23 = smov 48  }
 0x1f9   : > { %1926 = dma.vmem_to_hbm [thread:$0]  (%p6027_p2), %s5259_s30, 18432, %s5257_s29, %s1794_s6, %s2335_s9, %s2335_s9, %s2336_s23  }
 0x1fa PF: > { %s1823_s26 = sand.u32 1, %s2315_s12   ;;  %p6028_p0 = scmp.ne.s32.totalorder %s5512_s25, 0 }
 0x1fb   : > { %p6029_p4 = scmp.ge.s32.totalorder %s2327_s15, 2  ;;  %s1824_s16 = scalar_lea.sflag [#allocation4], %s1823_s26 }
 0x1fd   : > { %p1940_p5 = pnand %p6029_p4, %p6028_p0 }
 0x1ff   : > { %p1941_p9 = pneg %p1940_p5 }
 0x201   : > { %2310 = dma.done.wait (%p1941_p9), %s1824_s16, 18432  }
 0x202   : > { %2312 = vsyncadd (%p1941_p9), %s1824_s16, 4294948864  ;;  %p17_p10 = scmp.ge.s32.totalorder %s2382_s18, 4   ;;  %s6030_s12 = smov %s2319_s13 }
 0x203   : > { %s6031_s13 = smov %s2323_s14  ;;  %s6032_s14 = smov %s2394_s21 }
 0x204   : > { %s6033_s15 = smov %s2382_s18  ;;  %19 = sbr.rel (!%p17_p10) target bundleno = 6 (0x6), region = 85 }
 0x209   :  { %1829 = vsyncpa [#allocation3], 1 }
 0x20a   :  { %1831 = vsyncpa [#allocation3 + $0x1], 1 }
 0x20b   :  { %1832 = vsyncpa [#allocation6], 1 }
 0x20c   :  { %1833 = vsyncpa [#allocation4], 1 }
 0x20d   :  { %1835 = vsyncpa [#allocation4 + $0x1], 1 }

</bundles_post_ra>
